<compile_context>
chip_gen: v7x
topology: tpu7x:2x2x1
jax: 0.10.0
libtpu: 0.0.40
codegen_flags: <defaults>
</compile_context>

<pallas_src>
import functools

import jax
import jax.numpy as jnp
import numpy as np
from jax import lax
from jax.experimental import pallas as pl
from jax.experimental.pallas import tpu as pltpu


# ----------------------------------------------------------------------------
# Pallas kernel: one grid step = (batch b, point-tile t); feature-major layout
# (channels x points) so the point tile lives in the lane dimension.
# ----------------------------------------------------------------------------
def _patch_local_decoder_kernel(pts_ref, plane_ref, w_c_ref, w_res_ref,
                                w_out_ref, misc_ref, out_ref, *,
                                n_blocks, plane_h, plane_w):
  f32, bf16 = jnp.float32, jnp.bfloat16
  dim = pts_ref.shape[1] - 2            # raw point dimension (xy coords appended)
  tn = pts_ref.shape[2]                 # point-tile width (lane dim)
  hidden = w_res_ref.shape[0]
  HW = plane_h * plane_w

  # Packed f32 slab column offsets (static python ints; see wrapper packing).
  col_bp = dim                          # bp + bc[0]
  col_bc = dim + 1                      # bc[1..nb-1]
  col_b0 = dim + n_blocks               # b0[0..nb-1]
  col_b1 = dim + 2 * n_blocks           # b1[0..nb-1]
  col_bout = dim + 3 * n_blocks         # fc_out bias in row 0

  pts = pts_ref[0]                                               # (dim+2, TN) f32
  p_t = pts[0:dim, :]                                            # raw points
  # grid_sample(align_corners=True): pixel coord = xy * (size - 1);
  # padding_mode='border': clamp the sampling coordinate itself.
  ix = jnp.clip(pts[dim:dim + 1, :] * (plane_w - 1.0), 0.0, plane_w - 1.0)  # (1,TN)
  iy = jnp.clip(pts[dim + 1:dim + 2, :] * (plane_h - 1.0), 0.0, plane_h - 1.0)

  # Separable bilinear hat weights: only (Wp+Hp)*TN of abs/sub/max work, then a
  # single broadcasted outer-product multiply to form the (HW, TN) matrix.
  xg = lax.broadcasted_iota(jnp.int32, (plane_w, 1), 0).astype(f32)   # (Wp, 1)
  yg = lax.broadcasted_iota(jnp.int32, (plane_h, 1), 0).astype(f32)   # (Hp, 1)
  wx = jnp.maximum(0.0, 1.0 - jnp.abs(ix - xg))                  # (Wp, TN)
  wy = jnp.maximum(0.0, 1.0 - jnp.abs(iy - yg))                  # (Hp, TN)
  wmat = (wy.reshape(plane_h, 1, tn) * wx.reshape(1, plane_w, tn)
          ).reshape(HW, tn)                                      # row = y*Wp + x
  # TODO(synk): chunk HW with an inner accumulation loop if Hp*Wp*TN f32
  # intermediates approach the VMEM budget (relevant for Hp,Wp >= 64 on v7x).

  # Bilinear sample as one MXU matmul: (C, HW) x (HW, TN) -> (C, TN) f32.
  c_t = jnp.dot(plane_ref[0], wmat.astype(bf16), preferred_element_type=f32)

  # All fc_c[i] share the same c: one stacked (nb*H, C) x (C, TN) matmul.
  c_all = jnp.dot(w_c_ref[...], c_t.astype(bf16), preferred_element_type=f32)

  # net = fc_p(p) + (bp + bc[0]): K=dim=3 done as f32 VPU FMAs (no MXU pass,
  # raw coordinates stay f32).
  net = misc_ref[:, col_bp:col_bp + 1] + misc_ref[:, 0:1] * p_t[0:1, :]
  for d in range(1, dim):
    net = net + misc_ref[:, d:d + 1] * p_t[d:d + 1, :]           # (H, TN) f32

  for i in range(n_blocks):
    # net = net + fc_c[i](c)   (bias for i==0 was pre-summed into col_bp)
    net = net + c_all[i * hidden:(i + 1) * hidden, :]
    if i > 0:
      net = net + misc_ref[:, col_bc + (i - 1):col_bc + i]
    # ResnetBlockFC: net = net + fc_1(relu(fc_0(relu(net))))  (identity shortcut)
    w0 = w_res_ref[:, i * hidden:(i + 1) * hidden]
    w1 = w_res_ref[:, (n_blocks + i) * hidden:(n_blocks + i + 1) * hidden]
    h = (jnp.dot(w0, jnp.maximum(net, 0.0).astype(bf16), preferred_element_type=f32)
         + misc_ref[:, col_b0 + i:col_b0 + i + 1])
    dx = (jnp.dot(w1, jnp.maximum(h, 0.0).astype(bf16), preferred_element_type=f32)
          + misc_ref[:, col_b1 + i:col_b1 + i + 1])
    net = net + dx

  # out = fc_out(relu(net)) -- (1, TN), lane-dense store.
  b_out = misc_ref[0:1, col_bout:col_bout + 1]                   # (1, 1)
  out = (jnp.dot(w_out_ref[...], jnp.maximum(net, 0.0).astype(bf16),
                 preferred_element_type=f32) + b_out)
  out_ref[0] = out.astype(out_ref.dtype)


# ----------------------------------------------------------------------------
# VMEM footprint estimate (per grid step) -> vmem_limit_bytes derivation.
# ----------------------------------------------------------------------------
def _estimate_tile_vmem_bytes(dim, c_dim, plane_h, plane_w, hidden, n_blocks, tn):
  def pad8(x):
    return ((x + 7) // 8) * 8

  def pad128(x):
    return ((x + 127) // 128) * 128

  hw = plane_h * plane_w
  f32, bf16 = 4, 2
  dbuf = 2  # BlockSpec double-buffering
  io = dbuf * (pad8(dim + 2) * tn * f32                             # points tile
               + pad8(c_dim) * pad128(hw) * bf16                    # feature plane
               + pad8(n_blocks * hidden) * pad128(c_dim) * bf16     # stacked fc_c
               + pad8(hidden) * pad128(2 * n_blocks * hidden) * bf16  # w0/w1 slab
               + pad8(1) * pad128(hidden) * bf16                    # fc_out
               + pad8(hidden) * pad128(dim + 3 * n_blocks + 1) * f32  # f32 slab
               + pad8(1) * tn * f32)                                # output tile
  interm = (pad8(hw) * tn * (f32 + bf16)                            # wmat f32+bf16
            + (pad8(plane_h) + pad8(plane_w)) * tn * f32            # wy / wx
            + pad8(n_blocks * hidden) * tn * (f32 + bf16)           # stacked fc_c out
            + pad8(c_dim) * tn * (f32 + bf16)                       # sampled c
            + 6 * pad8(hidden) * tn * (f32 + bf16))                 # net/h/dx temps
  return io + interm


# ----------------------------------------------------------------------------
# Wrapper
# ----------------------------------------------------------------------------
def patch_local_decoder_forward(p, p_n_xy, c_plane, params, *, n_blocks, tn=1024,
                                vmem_limit_bytes=None):
  """Single-'xy'-plane PatchLocalDecoder forward.

  params are stored in PyTorch nn.Linear layout (out_features, in_features):
    wp (H,dim), bp (H,), wc (nb,H,C), bc (nb,H), w0/w1 (nb,H,H), b0/b1 (nb,H),
    wout (1,H), bout (1,)
  """
  wp, bp, wc, bc, w0, b0, w1, b1, wout, bout = params
  B, N, dim = p.shape
  _, C, Hp, Wp = c_plane.shape
  H = wp.shape[0]
  assert tn % 128 == 0, "point tile must be a multiple of 128 (lane width)"

  # Don't over-pad when N is small (padded points are computed then discarded).
  tn = min(tn, ((N + 127) // 128) * 128)
  n_pad = ((N + tn - 1) // tn) * tn
  nt = n_pad // tn

  # Pack raw points + normalized xy coords into one feature-major input (1 DMA).
  pts = jnp.concatenate([jnp.transpose(p, (0, 2, 1)),
                         jnp.transpose(p_n_xy, (0, 2, 1))], axis=1)  # (B, dim+2, N)
  if n_pad != N:
    pts = jnp.pad(pts, ((0, 0), (0, 0), (0, n_pad - N)))
  pts = pts.astype(jnp.float32)

  # Feature plane as (B, C, Hp*Wp), bf16 for the MXU sampling matmul.
  plane = c_plane.reshape(B, C, Hp * Wp).astype(jnp.bfloat16)

  # Stacked fc_c weights: (nb*H, C) bf16 -> one MXU matmul for all blocks.
  w_c = wc.reshape(n_blocks * H, C).astype(jnp.bfloat16)
  # Resnet fc_0 / fc_1 weights side by side: (H, 2*nb*H) bf16.
  w_res = jnp.concatenate([w0[i] for i in range(n_blocks)]
                          + [w1[i] for i in range(n_blocks)],
                          axis=1).astype(jnp.bfloat16)
  w_out = wout.astype(jnp.bfloat16)                                  # (1, H)

  # f32 slab: fc_p weight columns (kept f32 for the VPU FMAs) + biases.
  cols = [wp.astype(jnp.float32)]                                    # [0:dim]
  cols.append((bp + bc[0])[:, None])                                 # col dim
  for i in range(1, n_blocks):
    cols.append(bc[i][:, None])                                      # dim+1 ..
  for i in range(n_blocks):
    cols.append(b0[i][:, None])                                      # dim+nb ..
  for i in range(n_blocks):
    cols.append(b1[i][:, None])                                      # dim+2nb ..
  cols.append(jnp.zeros((H, 1), jnp.float32).at[0, 0].set(bout[0]))  # dim+3nb
  misc = jnp.concatenate(cols, axis=1).astype(jnp.float32)

  if vmem_limit_bytes is None:
    est = _estimate_tile_vmem_bytes(dim, C, Hp, Wp, H, n_blocks, tn)
    # 2x headroom for Mosaic internal scratch; stay well under v7x's 64 MiB.
    vmem_limit_bytes = int(min(max(2 * est + (4 << 20), 24 << 20), 48 << 20))

  kernel = functools.partial(_patch_local_decoder_kernel,
                             n_blocks=n_blocks, plane_h=Hp, plane_w=Wp)

  out = pl.pallas_call(
      kernel,
      out_shape=jax.ShapeDtypeStruct((B, 1, n_pad), jnp.float32),
      grid_spec=pltpu.PrefetchScalarGridSpec(
          num_scalar_prefetch=0,
          grid=(B, nt),       # both parallel -> shards across v7x's 2 TensorCores
          in_specs=[
              pl.BlockSpec((1, dim + 2, tn), lambda b, t: (b, 0, t)),
              pl.BlockSpec((1, C, Hp * Wp), lambda b, t: (b, 0, 0)),
              pl.BlockSpec(w_c.shape, lambda b, t: (0, 0)),
              pl.BlockSpec(w_res.shape, lambda b, t: (0, 0)),
              pl.BlockSpec(w_out.shape, lambda b, t: (0, 0)),
              pl.BlockSpec(misc.shape, lambda b, t: (0, 0)),
          ],
          out_specs=pl.BlockSpec((1, 1, tn), lambda b, t: (b, 0, t)),
      ),
      compiler_params=pltpu.CompilerParams(
          dimension_semantics=("parallel", "parallel"),
          vmem_limit_bytes=vmem_limit_bytes),
  )(pts, plane, w_c, w_res, w_out, misc)

  return out.reshape(B, n_pad)[:, :N]


# ----------------------------------------------------------------------------
# Pure-JAX f32 reference (mirrors the PyTorch forward, incl. grid_sample
# bilinear / align_corners=True / padding_mode='border' semantics).
# ----------------------------------------------------------------------------
def patch_local_decoder_reference(p, p_n_xy, c_plane, params, *, n_blocks):
  wp, bp, wc, bc, w0, b0, w1, b1, wout, bout = params
  B, C, Hp, Wp = c_plane.shape

  ix = jnp.clip(p_n_xy[..., 0] * (Wp - 1), 0.0, Wp - 1.0)     # (B, N)
  iy = jnp.clip(p_n_xy[..., 1] * (Hp - 1), 0.0, Hp - 1.0)
  x0 = jnp.floor(ix); y0 = jnp.floor(iy)
  x1 = jnp.minimum(x0 + 1.0, Wp - 1.0); y1 = jnp.minimum(y0 + 1.0, Hp - 1.0)
  wx1 = ix - x0; wx0 = 1.0 - wx1
  wy1 = iy - y0; wy0 = 1.0 - wy1

  def gather(yy, xx):
    yi = yy.astype(jnp.int32); xi = xx.astype(jnp.int32)
    return jax.vmap(lambda plane, yv, xv: plane[:, yv, xv])(c_plane, yi, xi)  # (B,C,N)

  c_s = (gather(y0, x0) * (wx0 * wy0)[:, None]
         + gather(y0, x1) * (wx1 * wy0)[:, None]
         + gather(y1, x0) * (wx0 * wy1)[:, None]
         + gather(y1, x1) * (wx1 * wy1)[:, None])
  c = jnp.transpose(c_s, (0, 2, 1))                            # (B, N, C)

  net = p @ wp.T + bp
  for i in range(n_blocks):
    net = net + c @ wc[i].T + bc[i]
    h = jax.nn.relu(net) @ w0[i].T + b0[i]
    dx = jax.nn.relu(h) @ w1[i].T + b1[i]
    net = net + dx
  out = jax.nn.relu(net) @ wout.T + bout
  return out[..., 0]


# ----------------------------------------------------------------------------
# Main
# ----------------------------------------------------------------------------
if __name__ == "__main__":
  B, N = 2, 2048         # N tiled as 2 tiles of TN=1024 per batch -> grid (2, 2)
  DIM = 3                # point dimension (fc_p input)
  C = 16                 # c_dim (local feature channels)
  Hp = Wp = 16           # feature-plane resolution
  HIDDEN = 32            # hidden_size
  N_BLOCKS = 3

  key = jax.random.PRNGKey(0)
  keys = jax.random.split(key, 16)

  p = jax.random.normal(keys[0], (B, N, DIM), jnp.float32)
  # Normalized plane coords, deliberately slightly outside [0, 1] to exercise
  # padding_mode='border'.
  p_n_xy = jax.random.uniform(keys[1], (B, N, 2), jnp.float32, -0.1, 1.1)
  c_plane = jax.random.normal(keys[2], (B, C, Hp, Wp), jnp.float32)

  def rnd(k, shape, scale=0.1):
    return scale * jax.random.normal(k, shape, jnp.float32)

  # PyTorch nn.Linear layout: weight (out_features, in_features), bias (out,).
  params = (
      rnd(keys[3], (HIDDEN, DIM)), rnd(keys[4], (HIDDEN,)),                       # fc_p
      rnd(keys[5], (N_BLOCKS, HIDDEN, C)), rnd(keys[6], (N_BLOCKS, HIDDEN)),      # fc_c
      rnd(keys[7], (N_BLOCKS, HIDDEN, HIDDEN)), rnd(keys[8], (N_BLOCKS, HIDDEN)), # fc_0
      rnd(keys[9], (N_BLOCKS, HIDDEN, HIDDEN)), rnd(keys[10], (N_BLOCKS, HIDDEN)),# fc_1
      rnd(keys[11], (1, HIDDEN)), rnd(keys[12], (1,)),                            # fc_out
  )

  out = patch_local_decoder_forward(p, p_n_xy, c_plane, params, n_blocks=N_BLOCKS)
  out = jax.block_until_ready(out)

  ref = patch_local_decoder_reference(p, p_n_xy, c_plane, params, n_blocks=N_BLOCKS)
  # Kernel uses bf16 MXU inputs with f32 accumulation (fc_p is pure f32) vs a
  # pure-f32 reference; tolerance loosened accordingly.
  np.testing.assert_allclose(np.asarray(out), np.asarray(ref), rtol=3e-2, atol=3e-2)

  print("KERNEL_OK")
</pallas_src>

<mosaic_0001>
module attributes {stable_mosaic.version = 11 : i64} {
  func.func @_patch_local_decoder_kernel(%arg0: i32, %arg1: i32, %arg2: memref<1x5x1024xf32, #tpu.memory_space<vmem>>, %arg3: memref<1x16x256xbf16, #tpu.memory_space<vmem>>, %arg4: memref<96x16xbf16, #tpu.memory_space<vmem>>, %arg5: memref<32x192xbf16, #tpu.memory_space<vmem>>, %arg6: memref<1x32xbf16, #tpu.memory_space<vmem>>, %arg7: memref<32x13xf32, #tpu.memory_space<vmem>>, %arg8: memref<1x1x1024xf32, #tpu.memory_space<vmem>>) attributes {dimension_semantics = [#tpu.dimension_semantics<parallel>, #tpu.dimension_semantics<parallel>], iteration_bounds = array<i64: 2, 2>, scalar_prefetch = 0 : i64, scratch_operands = 0 : i64, tpu.core_type = #tpu.core_type<tc>, window_params = [{transform_indices = @transform_0, window_bounds = array<i64: 1, 5, 1024>}, {transform_indices = @transform_1, window_bounds = array<i64: 1, 16, 256>}, {pipeline_mode = #tpu.pipeline_mode<synchronous>, transform_indices = @transform_2, window_bounds = array<i64: 96, 16>}, {pipeline_mode = #tpu.pipeline_mode<synchronous>, transform_indices = @transform_3, window_bounds = array<i64: 32, 192>}, {pipeline_mode = #tpu.pipeline_mode<synchronous>, transform_indices = @transform_4, window_bounds = array<i64: 1, 32>}, {pipeline_mode = #tpu.pipeline_mode<synchronous>, transform_indices = @transform_5, window_bounds = array<i64: 32, 13>}, {transform_indices = @transform_6, window_bounds = array<i64: 1, 1, 1024>}]} {
    %c0 = arith.constant 0 : index
    %c0_0 = arith.constant 0 : index
    %c0_1 = arith.constant 0 : index
    %0 = vector.load %arg2[%c0, %c0_0, %c0_1] : memref<1x5x1024xf32, #tpu.memory_space<vmem>>, vector<1x5x1024xf32>
    %1 = vector.shape_cast %0 : vector<1x5x1024xf32> to vector<5x1024xf32>
    %2 = vector.extract_strided_slice %1 {offsets = [0, 0], sizes = [3, 1024], strides = [1, 1]} : vector<5x1024xf32> to vector<3x1024xf32>
    %3 = vector.extract_strided_slice %1 {offsets = [3, 0], sizes = [1, 1024], strides = [1, 1]} : vector<5x1024xf32> to vector<1x1024xf32>
    %cst = arith.constant 1.500000e+01 : f32
    %4 = vector.broadcast %cst : f32 to vector<1x1024xf32>
    %5 = arith.mulf %3, %4 : vector<1x1024xf32>
    %cst_2 = arith.constant 0.000000e+00 : f32
    %cst_3 = arith.constant 1.500000e+01 : f32
    %6 = vector.broadcast %cst_2 : f32 to vector<1x1024xf32>
    %7 = arith.maximumf %6, %5 : vector<1x1024xf32>
    %8 = vector.broadcast %cst_3 : f32 to vector<1x1024xf32>
    %9 = arith.minimumf %8, %7 : vector<1x1024xf32>
    %10 = vector.extract_strided_slice %1 {offsets = [4, 0], sizes = [1, 1024], strides = [1, 1]} : vector<5x1024xf32> to vector<1x1024xf32>
    %cst_4 = arith.constant 1.500000e+01 : f32
    %11 = vector.broadcast %cst_4 : f32 to vector<1x1024xf32>
    %12 = arith.mulf %10, %11 : vector<1x1024xf32>
    %cst_5 = arith.constant 0.000000e+00 : f32
    %cst_6 = arith.constant 1.500000e+01 : f32
    %13 = vector.broadcast %cst_5 : f32 to vector<1x1024xf32>
    %14 = arith.maximumf %13, %12 : vector<1x1024xf32>
    %15 = vector.broadcast %cst_6 : f32 to vector<1x1024xf32>
    %16 = arith.minimumf %15, %14 : vector<1x1024xf32>
    %17 = tpu.iota {dimensions = array<i32: 0>} : vector<16x1xi32>
    %18 = arith.sitofp %17 : vector<16x1xi32> to vector<16x1xf32>
    %19 = tpu.iota {dimensions = array<i32: 0>} : vector<16x1xi32>
    %20 = arith.sitofp %19 : vector<16x1xi32> to vector<16x1xf32>
    %21 = vector.broadcast %9 : vector<1x1024xf32> to vector<16x1024xf32>
    %22 = vector.broadcast %18 : vector<16x1xf32> to vector<16x1024xf32>
    %23 = arith.subf %21, %22 : vector<16x1024xf32>
    %24 = math.absf %23 : vector<16x1024xf32>
    %cst_7 = arith.constant 1.000000e+00 : f32
    %25 = vector.broadcast %cst_7 : f32 to vector<16x1024xf32>
    %26 = arith.subf %25, %24 : vector<16x1024xf32>
    %cst_8 = arith.constant 0.000000e+00 : f32
    %27 = vector.broadcast %cst_8 : f32 to vector<16x1024xf32>
    %28 = arith.maximumf %27, %26 : vector<16x1024xf32>
    %29 = vector.broadcast %16 : vector<1x1024xf32> to vector<16x1024xf32>
    %30 = vector.broadcast %20 : vector<16x1xf32> to vector<16x1024xf32>
    %31 = arith.subf %29, %30 : vector<16x1024xf32>
    %32 = math.absf %31 : vector<16x1024xf32>
    %cst_9 = arith.constant 1.000000e+00 : f32
    %33 = vector.broadcast %cst_9 : f32 to vector<16x1024xf32>
    %34 = arith.subf %33, %32 : vector<16x1024xf32>
    %cst_10 = arith.constant 0.000000e+00 : f32
    %35 = vector.broadcast %cst_10 : f32 to vector<16x1024xf32>
    %36 = arith.maximumf %35, %34 : vector<16x1024xf32>
    %37 = vector.shape_cast %36 : vector<16x1024xf32> to vector<16x1x1024xf32>
    %38 = vector.shape_cast %28 : vector<16x1024xf32> to vector<1x16x1024xf32>
    %39 = vector.broadcast %37 : vector<16x1x1024xf32> to vector<16x16x1024xf32>
    %40 = vector.broadcast %38 : vector<1x16x1024xf32> to vector<16x16x1024xf32>
    %41 = arith.mulf %39, %40 : vector<16x16x1024xf32>
    %42 = vector.shape_cast %41 : vector<16x16x1024xf32> to vector<256x1024xf32>
    %c0_11 = arith.constant 0 : index
    %c0_12 = arith.constant 0 : index
    %c0_13 = arith.constant 0 : index
    %43 = vector.load %arg3[%c0_11, %c0_12, %c0_13] : memref<1x16x256xbf16, #tpu.memory_space<vmem>>, vector<1x16x256xbf16>
    %44 = vector.shape_cast %43 : vector<1x16x256xbf16> to vector<16x256xbf16>
    %45 = arith.truncf %42 : vector<256x1024xf32> to vector<256x1024xbf16>
    %cst_14 = arith.constant dense<0.000000e+00> : vector<16x1024xf32>
    %46 = tpu.matmul %44, %45, %cst_14 {dimension_numbers = #tpu.dot_dimension_numbers<[1], [0], [0], [1], [0, 0, 1, 1], [], []>} : vector<16x256xbf16>, vector<256x1024xbf16>, vector<16x1024xf32> -> vector<16x1024xf32>
    %c0_15 = arith.constant 0 : index
    %c0_16 = arith.constant 0 : index
    %47 = vector.load %arg4[%c0_15, %c0_16] : memref<96x16xbf16, #tpu.memory_space<vmem>>, vector<96x16xbf16>
    %48 = arith.truncf %46 : vector<16x1024xf32> to vector<16x1024xbf16>
    %cst_17 = arith.constant dense<0.000000e+00> : vector<96x1024xf32>
    %49 = tpu.matmul %47, %48, %cst_17 {dimension_numbers = #tpu.dot_dimension_numbers<[1], [0], [0], [1], [0, 0, 1, 1], [], []>} : vector<96x16xbf16>, vector<16x1024xbf16>, vector<96x1024xf32> -> vector<96x1024xf32>
    %c0_18 = arith.constant 0 : index
    %c3 = arith.constant 3 : index
    %50 = vector.load %arg7[%c0_18, %c3] : memref<32x13xf32, #tpu.memory_space<vmem>>, vector<32x1xf32>
    %c0_19 = arith.constant 0 : index
    %c0_20 = arith.constant 0 : index
    %51 = vector.load %arg7[%c0_19, %c0_20] : memref<32x13xf32, #tpu.memory_space<vmem>>, vector<32x1xf32>
    %52 = vector.extract_strided_slice %2 {offsets = [0, 0], sizes = [1, 1024], strides = [1, 1]} : vector<3x1024xf32> to vector<1x1024xf32>
    %53 = vector.broadcast %51 : vector<32x1xf32> to vector<32x1024xf32>
    %54 = vector.broadcast %52 : vector<1x1024xf32> to vector<32x1024xf32>
    %55 = arith.mulf %53, %54 : vector<32x1024xf32>
    %56 = vector.broadcast %50 : vector<32x1xf32> to vector<32x1024xf32>
    %57 = arith.addf %56, %55 : vector<32x1024xf32>
    %c0_21 = arith.constant 0 : index
    %c1 = arith.constant 1 : index
    %58 = vector.load %arg7[%c0_21, %c1] : memref<32x13xf32, #tpu.memory_space<vmem>>, vector<32x1xf32>
    %59 = vector.extract_strided_slice %2 {offsets = [1, 0], sizes = [1, 1024], strides = [1, 1]} : vector<3x1024xf32> to vector<1x1024xf32>
    %60 = vector.broadcast %58 : vector<32x1xf32> to vector<32x1024xf32>
    %61 = vector.broadcast %59 : vector<1x1024xf32> to vector<32x1024xf32>
    %62 = arith.mulf %60, %61 : vector<32x1024xf32>
    %63 = arith.addf %57, %62 : vector<32x1024xf32>
    %c0_22 = arith.constant 0 : index
    %c2 = arith.constant 2 : index
    %64 = vector.load %arg7[%c0_22, %c2] : memref<32x13xf32, #tpu.memory_space<vmem>>, vector<32x1xf32>
    %65 = vector.extract_strided_slice %2 {offsets = [2, 0], sizes = [1, 1024], strides = [1, 1]} : vector<3x1024xf32> to vector<1x1024xf32>
    %66 = vector.broadcast %64 : vector<32x1xf32> to vector<32x1024xf32>
    %67 = vector.broadcast %65 : vector<1x1024xf32> to vector<32x1024xf32>
    %68 = arith.mulf %66, %67 : vector<32x1024xf32>
    %69 = arith.addf %63, %68 : vector<32x1024xf32>
    %70 = vector.extract_strided_slice %49 {offsets = [0, 0], sizes = [32, 1024], strides = [1, 1]} : vector<96x1024xf32> to vector<32x1024xf32>
    %71 = arith.addf %69, %70 : vector<32x1024xf32>
    %c0_23 = arith.constant 0 : index
    %c0_24 = arith.constant 0 : index
    %72 = vector.load %arg5[%c0_23, %c0_24] : memref<32x192xbf16, #tpu.memory_space<vmem>>, vector<32x32xbf16>
    %c0_25 = arith.constant 0 : index
    %c96 = arith.constant 96 : index
    %73 = vector.load %arg5[%c0_25, %c96] : memref<32x192xbf16, #tpu.memory_space<vmem>>, vector<32x32xbf16>
    %cst_26 = arith.constant 0.000000e+00 : f32
    %74 = vector.broadcast %cst_26 : f32 to vector<32x1024xf32>
    %75 = arith.maximumf %71, %74 : vector<32x1024xf32>
    %76 = arith.truncf %75 : vector<32x1024xf32> to vector<32x1024xbf16>
    %cst_27 = arith.constant dense<0.000000e+00> : vector<32x1024xf32>
    %77 = tpu.matmul %72, %76, %cst_27 {dimension_numbers = #tpu.dot_dimension_numbers<[1], [0], [0], [1], [0, 0, 1, 1], [], []>} : vector<32x32xbf16>, vector<32x1024xbf16>, vector<32x1024xf32> -> vector<32x1024xf32>
    %c0_28 = arith.constant 0 : index
    %c6 = arith.constant 6 : index
    %78 = vector.load %arg7[%c0_28, %c6] : memref<32x13xf32, #tpu.memory_space<vmem>>, vector<32x1xf32>
    %79 = vector.broadcast %78 : vector<32x1xf32> to vector<32x1024xf32>
    %80 = arith.addf %77, %79 : vector<32x1024xf32>
    %cst_29 = arith.constant 0.000000e+00 : f32
    %81 = vector.broadcast %cst_29 : f32 to vector<32x1024xf32>
    %82 = arith.maximumf %80, %81 : vector<32x1024xf32>
    %83 = arith.truncf %82 : vector<32x1024xf32> to vector<32x1024xbf16>
    %cst_30 = arith.constant dense<0.000000e+00> : vector<32x1024xf32>
    %84 = tpu.matmul %73, %83, %cst_30 {dimension_numbers = #tpu.dot_dimension_numbers<[1], [0], [0], [1], [0, 0, 1, 1], [], []>} : vector<32x32xbf16>, vector<32x1024xbf16>, vector<32x1024xf32> -> vector<32x1024xf32>
    %c0_31 = arith.constant 0 : index
    %c9 = arith.constant 9 : index
    %85 = vector.load %arg7[%c0_31, %c9] : memref<32x13xf32, #tpu.memory_space<vmem>>, vector<32x1xf32>
    %86 = vector.broadcast %85 : vector<32x1xf32> to vector<32x1024xf32>
    %87 = arith.addf %84, %86 : vector<32x1024xf32>
    %88 = arith.addf %71, %87 : vector<32x1024xf32>
    %89 = vector.extract_strided_slice %49 {offsets = [32, 0], sizes = [32, 1024], strides = [1, 1]} : vector<96x1024xf32> to vector<32x1024xf32>
    %90 = arith.addf %88, %89 : vector<32x1024xf32>
    %c0_32 = arith.constant 0 : index
    %c4 = arith.constant 4 : index
    %91 = vector.load %arg7[%c0_32, %c4] : memref<32x13xf32, #tpu.memory_space<vmem>>, vector<32x1xf32>
    %92 = vector.broadcast %91 : vector<32x1xf32> to vector<32x1024xf32>
    %93 = arith.addf %90, %92 : vector<32x1024xf32>
    %c0_33 = arith.constant 0 : index
    %c32 = arith.constant 32 : index
    %94 = vector.load %arg5[%c0_33, %c32] : memref<32x192xbf16, #tpu.memory_space<vmem>>, vector<32x32xbf16>
    %c0_34 = arith.constant 0 : index
    %c128 = arith.constant 128 : index
    %95 = vector.load %arg5[%c0_34, %c128] : memref<32x192xbf16, #tpu.memory_space<vmem>>, vector<32x32xbf16>
    %cst_35 = arith.constant 0.000000e+00 : f32
    %96 = vector.broadcast %cst_35 : f32 to vector<32x1024xf32>
    %97 = arith.maximumf %93, %96 : vector<32x1024xf32>
    %98 = arith.truncf %97 : vector<32x1024xf32> to vector<32x1024xbf16>
    %cst_36 = arith.constant dense<0.000000e+00> : vector<32x1024xf32>
    %99 = tpu.matmul %94, %98, %cst_36 {dimension_numbers = #tpu.dot_dimension_numbers<[1], [0], [0], [1], [0, 0, 1, 1], [], []>} : vector<32x32xbf16>, vector<32x1024xbf16>, vector<32x1024xf32> -> vector<32x1024xf32>
    %c0_37 = arith.constant 0 : index
    %c7 = arith.constant 7 : index
    %100 = vector.load %arg7[%c0_37, %c7] : memref<32x13xf32, #tpu.memory_space<vmem>>, vector<32x1xf32>
    %101 = vector.broadcast %100 : vector<32x1xf32> to vector<32x1024xf32>
    %102 = arith.addf %99, %101 : vector<32x1024xf32>
    %cst_38 = arith.constant 0.000000e+00 : f32
    %103 = vector.broadcast %cst_38 : f32 to vector<32x1024xf32>
    %104 = arith.maximumf %102, %103 : vector<32x1024xf32>
    %105 = arith.truncf %104 : vector<32x1024xf32> to vector<32x1024xbf16>
    %cst_39 = arith.constant dense<0.000000e+00> : vector<32x1024xf32>
    %106 = tpu.matmul %95, %105, %cst_39 {dimension_numbers = #tpu.dot_dimension_numbers<[1], [0], [0], [1], [0, 0, 1, 1], [], []>} : vector<32x32xbf16>, vector<32x1024xbf16>, vector<32x1024xf32> -> vector<32x1024xf32>
    %c0_40 = arith.constant 0 : index
    %c10 = arith.constant 10 : index
    %107 = vector.load %arg7[%c0_40, %c10] : memref<32x13xf32, #tpu.memory_space<vmem>>, vector<32x1xf32>
    %108 = vector.broadcast %107 : vector<32x1xf32> to vector<32x1024xf32>
    %109 = arith.addf %106, %108 : vector<32x1024xf32>
    %110 = arith.addf %93, %109 : vector<32x1024xf32>
    %111 = vector.extract_strided_slice %49 {offsets = [64, 0], sizes = [32, 1024], strides = [1, 1]} : vector<96x1024xf32> to vector<32x1024xf32>
    %112 = arith.addf %110, %111 : vector<32x1024xf32>
    %c0_41 = arith.constant 0 : index
    %c5 = arith.constant 5 : index
    %113 = vector.load %arg7[%c0_41, %c5] : memref<32x13xf32, #tpu.memory_space<vmem>>, vector<32x1xf32>
    %114 = vector.broadcast %113 : vector<32x1xf32> to vector<32x1024xf32>
    %115 = arith.addf %112, %114 : vector<32x1024xf32>
    %c0_42 = arith.constant 0 : index
    %c64 = arith.constant 64 : index
    %116 = vector.load %arg5[%c0_42, %c64] : memref<32x192xbf16, #tpu.memory_space<vmem>>, vector<32x32xbf16>
    %c0_43 = arith.constant 0 : index
    %c160 = arith.constant 160 : index
    %117 = vector.load %arg5[%c0_43, %c160] : memref<32x192xbf16, #tpu.memory_space<vmem>>, vector<32x32xbf16>
    %cst_44 = arith.constant 0.000000e+00 : f32
    %118 = vector.broadcast %cst_44 : f32 to vector<32x1024xf32>
    %119 = arith.maximumf %115, %118 : vector<32x1024xf32>
    %120 = arith.truncf %119 : vector<32x1024xf32> to vector<32x1024xbf16>
    %cst_45 = arith.constant dense<0.000000e+00> : vector<32x1024xf32>
    %121 = tpu.matmul %116, %120, %cst_45 {dimension_numbers = #tpu.dot_dimension_numbers<[1], [0], [0], [1], [0, 0, 1, 1], [], []>} : vector<32x32xbf16>, vector<32x1024xbf16>, vector<32x1024xf32> -> vector<32x1024xf32>
    %c0_46 = arith.constant 0 : index
    %c8 = arith.constant 8 : index
    %122 = vector.load %arg7[%c0_46, %c8] : memref<32x13xf32, #tpu.memory_space<vmem>>, vector<32x1xf32>
    %123 = vector.broadcast %122 : vector<32x1xf32> to vector<32x1024xf32>
    %124 = arith.addf %121, %123 : vector<32x1024xf32>
    %cst_47 = arith.constant 0.000000e+00 : f32
    %125 = vector.broadcast %cst_47 : f32 to vector<32x1024xf32>
    %126 = arith.maximumf %124, %125 : vector<32x1024xf32>
    %127 = arith.truncf %126 : vector<32x1024xf32> to vector<32x1024xbf16>
    %cst_48 = arith.constant dense<0.000000e+00> : vector<32x1024xf32>
    %128 = tpu.matmul %117, %127, %cst_48 {dimension_numbers = #tpu.dot_dimension_numbers<[1], [0], [0], [1], [0, 0, 1, 1], [], []>} : vector<32x32xbf16>, vector<32x1024xbf16>, vector<32x1024xf32> -> vector<32x1024xf32>
    %c0_49 = arith.constant 0 : index
    %c11 = arith.constant 11 : index
    %129 = vector.load %arg7[%c0_49, %c11] : memref<32x13xf32, #tpu.memory_space<vmem>>, vector<32x1xf32>
    %130 = vector.broadcast %129 : vector<32x1xf32> to vector<32x1024xf32>
    %131 = arith.addf %128, %130 : vector<32x1024xf32>
    %132 = arith.addf %115, %131 : vector<32x1024xf32>
    %c0_50 = arith.constant 0 : index
    %c12 = arith.constant 12 : index
    %133 = vector.load %arg7[%c0_50, %c12] : memref<32x13xf32, #tpu.memory_space<vmem>>, vector<1x1xf32>
    %c0_51 = arith.constant 0 : index
    %c0_52 = arith.constant 0 : index
    %134 = vector.load %arg6[%c0_51, %c0_52] : memref<1x32xbf16, #tpu.memory_space<vmem>>, vector<1x32xbf16>
    %cst_53 = arith.constant 0.000000e+00 : f32
    %135 = vector.broadcast %cst_53 : f32 to vector<32x1024xf32>
    %136 = arith.maximumf %132, %135 : vector<32x1024xf32>
    %137 = arith.truncf %136 : vector<32x1024xf32> to vector<32x1024xbf16>
    %cst_54 = arith.constant dense<0.000000e+00> : vector<1x1024xf32>
    %138 = tpu.matmul %134, %137, %cst_54 {dimension_numbers = #tpu.dot_dimension_numbers<[1], [0], [0], [1], [0, 0, 1, 1], [], []>} : vector<1x32xbf16>, vector<32x1024xbf16>, vector<1x1024xf32> -> vector<1x1024xf32>
    %139 = vector.broadcast %133 : vector<1x1xf32> to vector<1x1024xf32>
    %140 = arith.addf %138, %139 : vector<1x1024xf32>
    %c0_55 = arith.constant 0 : index
    %c0_56 = arith.constant 0 : index
    %c0_57 = arith.constant 0 : index
    %141 = vector.load %arg8[%c0_55, %c0_56, %c0_57] : memref<1x1x1024xf32, #tpu.memory_space<vmem>>, vector<1x1x1024xf32>
    %142 = vector.shape_cast %141 : vector<1x1x1024xf32> to vector<1x1024xf32>
    %143 = vector.shape_cast %140 : vector<1x1024xf32> to vector<1x1x1024xf32>
    tpu.vector_store %arg8[%c0_55, %c0_56, %c0_57], %143 {strides = array<i32>} : memref<1x1x1024xf32, #tpu.memory_space<vmem>>, vector<1x1x1024xf32>,
    return
  }
  func.func @transform_0(%arg0: i32, %arg1: i32) -> (i32, i32, i32) {
    %c0_i32 = arith.constant 0 : i32
    %c0_i32_0 = arith.constant 0 : i32
    return %arg0, %c0_i32, %arg1 : i32, i32, i32
  }
  func.func @transform_1(%arg0: i32, %arg1: i32) -> (i32, i32, i32) {
    %c0_i32 = arith.constant 0 : i32
    %c0_i32_0 = arith.constant 0 : i32
    %c0_i32_1 = arith.constant 0 : i32
    return %arg0, %c0_i32, %c0_i32_0 : i32, i32, i32
  }
  func.func @transform_2(%arg0: i32, %arg1: i32) -> (i32, i32) {
    %c0_i32 = arith.constant 0 : i32
    %c0_i32_0 = arith.constant 0 : i32
    %c0_i32_1 = arith.constant 0 : i32
    return %c0_i32, %c0_i32_0 : i32, i32
  }
  func.func @transform_3(%arg0: i32, %arg1: i32) -> (i32, i32) {
    %c0_i32 = arith.constant 0 : i32
    %c0_i32_0 = arith.constant 0 : i32
    %c0_i32_1 = arith.constant 0 : i32
    return %c0_i32, %c0_i32_0 : i32, i32
  }
  func.func @transform_4(%arg0: i32, %arg1: i32) -> (i32, i32) {
    %c0_i32 = arith.constant 0 : i32
    %c0_i32_0 = arith.constant 0 : i32
    %c0_i32_1 = arith.constant 0 : i32
    return %c0_i32, %c0_i32_0 : i32, i32
  }
  func.func @transform_5(%arg0: i32, %arg1: i32) -> (i32, i32) {
    %c0_i32 = arith.constant 0 : i32
    %c0_i32_0 = arith.constant 0 : i32
    %c0_i32_1 = arith.constant 0 : i32
    return %c0_i32, %c0_i32_0 : i32, i32
  }
  func.func @transform_6(%arg0: i32, %arg1: i32) -> (i32, i32, i32) {
    %c0_i32 = arith.constant 0 : i32
    %c0_i32_0 = arith.constant 0 : i32
    return %arg0, %c0_i32, %arg1 : i32, i32, i32
  }
}

</mosaic_0001>

<bundles_post_ra>
// kernel: tpu_custom_call.1
= control target key start
LH: loop header
LB: loop body
LE: loop exit
PB: predicated region body
PF: predicated region fallthrough
CT: control target
= control target key end

     0   :  { %11 = vsyncpa [#allocation3], 0  ;;  %s8307_s0 = inlined_call_operand.vmem [shape: f32[2,5,2048], index: 0, kind: input, shape index: {}]   ;;  %s8308_s1 = inlined_call_operand.vmem [shape: bf16[2,16,256], index: 1, kind: input, shape index: {}]   ;;  %s8309_s2 = inlined_call_operand.vmem [shape: bf16[96,16], index: 2, kind: input, shape index: {}]   ;;  %s8310_s3 = inlined_call_operand.vmem [shape: bf16[32,192], index: 3, kind: input, shape index: {}]   ;;  %s8311_s4 = inlined_call_operand.vmem [shape: bf16[1,32], index: 4, kind: input, shape index: {}]   ;;  %s8312_s5 = inlined_call_operand.vmem [shape: f32[32,13], index: 5, kind: input, shape index: {}]   ;;  %s8313_s6 = inlined_call_operand.hbm [shape: f32[2,1,2048], index: 6, kind: output, shape index: {}]  }
   0x1   :  { %13 = vsyncpa [#allocation3 + $0x1], 0  ;;  %s5836_s21 = smov 0   ;;  %s5838_s22 = smov 0  }
   0x2   :  { %s5840_s23 = smov 0   ;;  %s5842_s24 = smov 0  }
   0x3   :  { %s5844_s25 = smov 0   ;;  %s5846_s26 = smov 0  }
   0x4   :  { %s5848_s27 = smov 0   ;;  %s5850_s28 = smov 0  }
   0x5 LB: > { %s5242_s29 = sadd.s32 4294967295, %s5781_s28   ;;  %s5243_s30 = sadd.s32 4294967294, %s5781_s28   ;;  %s5781_s28 = sphi %s5850_s28, %s19_s28   ;;  %s5777_s27 = sphi %s5848_s27, %s8410_s27   ;;  %s5773_s26 = sphi %s5846_s26, %s8409_s26   ;;  %s5769_s25 = sphi %s5844_s25, %s8408_s25   ;;  %s5765_s24 = sphi %s5842_s24, %s8407_s24   ;;  %s5761_s23 = sphi %s5840_s23, %s8406_s23   ;;  %s5757_s22 = sphi %s5838_s22, %s8405_s22   ;;  %s5753_s21 = sphi %s5836_s21, %s8404_s21  }
   0x6   : > { %s28_s7 = sadd.s32 1, %s5773_s26  ;;  %s31_s8 = sadd.s32 1, %s5777_s27 }
   0x7   : > { %p29_p0 = scmp.ge.s32.totalorder %s28_s7, 2  ;;  %p188_p1 = scmp.ne.s32.totalorder %s5761_s23, %s5757_s22 }
   0x8   : > { %p189_p2 = scmp.eq.s32.totalorder %s5242_s29, 3  ;;  %p194_p5 = scmp.ne.s32.totalorder %s5757_s22, %s5753_s21 }
   0x9   : > { %s8412_s7 = smov (%p29_p0, %s28_s7), 0  ;;  %s8414_s8 = smov (!%p29_p0, %s31_s8), %s5777_s27 }
   0xa   : > { %s174_s9 = ssub.s32 %s5773_s26, %s8412_s7  ;;  %p5887_p3 = por %p189_p2, %p188_p1 }
   0xb   : > { %p33_p4 = scmp.ge.s32.totalorder %s8414_s8, 2  ;;  %p195_p6 = scmp.eq.s32.totalorder %s5243_s30, 3 }
   0xc   : > { %p5246_p7 = scmp.ge.s32.totalorder %s5781_s28, 1  ;;  %p246_p9 = scmp.lt.s32.totalorder %s5781_s28, 5 }
   0xd   : > { %s8416_s8 = smov (%p33_p4, %s8414_s8), 0  ;;  %p5896_p8 = por %p195_p6, %p194_p5 }
   0xe   : > { %s173_s12 = ssub.s32 %s5777_s27, %s8416_s8  ;;  %s178_s13 = sadd.s32 1, %s5761_s23 }
   0xf   : > { %s175_s14 = sor.u32 %s174_s9, %s173_s12  ;;  %p247_p10 = pnand %p5246_p7, %p246_p9 }
  0x10   : > { %p176_p11 = scmp.eq.s32.totalorder %s175_s14, 0 }
  0x11   : > { %250 = sbr.rel (%p247_p10) target bundleno = 2335 (0x91f), region = 44 }
  0x12   : > { %s5905_s15 = scalar_select %p176_p11, %s5761_s23, %s178_s13  }
  0x18   : > { %s5908_s16 = sshll.u32 %s5765_s24, 3  ;;  %p286_p12 = scmp.lt.s32.totalorder %s5769_s25, 1  ;;  %v334_v0 = vlaneseq  ;;  %v5783_v4 = vmov 1966171168   ;;  %vm2077_vm0 = vcmask 130048   ;;  %vm2938_vm1 = vcmask 261120  }
  0x19   : > { %p288_p13 = scmp.lt.s32.totalorder %s5908_s16, 15  ;;  %v556_v5 = vunpack.c.l.s4 %v5783_v4  ;;  %s5792_s13 = smov 96  }
  0x1a   : > { %s5913_s17 = scalar_select %p286_p12, %s5769_s25, 1  ;;  %v5916_v1 = vshrl.u32 %v334_v0, 7 }
  0x1b   : > { %s289_s18 = scalar_select %p288_p13, %s5908_s16, 15  ;;  %v557_v17 = vunpack.c.0.s8 %v556_v5 }
  0x1c   : > { %s5249_s19 = sshll.u32 %s5913_s17, 4  ;;  %v336_v2 = vadd.s32 8, %v5916_v1  ;;  %v5923_v3 = vsub.s32 3, %v5916_v1  ;;  %v5939_v16 = vcvt.s32.f32 %v5916_v1  ;;  %v5983_v58 = vsub.s32 4, %v5916_v1 }
  0x1d   : > { %s291_s20 = sadd.s32 %s5249_s19, %s289_s18  ;;  %s5958_s14 = scalar_lea.vmem %s8308_s1, %s5249_s19  ;;  %v5986_v59 = vsub.s32 %v557_v17, %v5916_v1  ;;  %v5992_v63 = vsub.s32 1, %v5916_v1  ;;  %v5997_v4 = vsub.s32 0, %v5916_v1  ;;  %v6000_v5 = vsub.s32 2, %v5916_v1 }
  0x1e   : > { %s5250_s29 = sshll.u32 %s291_s20, 3  ;;  %v5655_v46 = vld [vmem:[%s5958_s14 + $0x4] ss:$8 sps:$4 sm:$0xff]   ;;  %v5968_v47 = vcvt.s32.f32 %v336_v2  ;;  %s5789_s19 = smov 32  }
  0x1f   : > { %s5928_s9 = scalar_lea.vmem %s8307_s0, %s5250_s29  ;;  %1887 = vmatprep.mubr.bf16.mxu0 %v5655_v46  ;;  %1930 = vmatprep.mubr.bf16.mxu1 %v5655_v46  ;;  %8344 = vst [vmem:[#allocation5_spill] sm:$0xff] %v5986_v59  ;;  %s282_s20 = sand.u32 1, %s5757_s22  }
  0x20   : > { %v302_v6 = vld [vmem:[%s5928_s9] sm:$0x1f]  ;;  %v303_v7 = vld [vmem:[%s5928_s9 + $0x8] sm:$0x1f]  ;;  %v304_v8 = vld [vmem:[%s5928_s9 + $0x10] sm:$0x1f] }
  0x21   : > { %v305_v9 = vld [vmem:[%s5928_s9 + $0x18] sm:$0x1f]  ;;  %v306_v10 = vld [vmem:[%s5928_s9 + $0x20] sm:$0x1f]  ;;  %v307_v11 = vld [vmem:[%s5928_s9 + $0x28] sm:$0x1f] }
  0x22   : > { %v308_v12 = vld [vmem:[%s5928_s9 + $0x30] sm:$0x1f]  ;;  %v309_v13 = vld [vmem:[%s5928_s9 + $0x38] sm:$0x1f]  ;;  %v310_v14 = vmul.f32 15.0, %v302_v6  ;;  %v311_v15 = vmul.f32 15.0, %v303_v7 }
  0x23   : > { %v312_v18 = vmul.f32 15.0, %v304_v8  ;;  %v313_v19 = vmul.f32 15.0, %v305_v9  ;;  %v314_v20 = vmul.f32 15.0, %v306_v10  ;;  %v315_v21 = vmul.f32 15.0, %v307_v11  ;;  %s5247_s29 = sshll.u32 %s282_s20, 3 }
  0x24   : > { %v316_v22 = vmul.f32 15.0, %v308_v12  ;;  %v317_v23 = vmul.f32 15.0, %v309_v13  ;;  %v318_v24 = vmax.f32 %v310_v14, 0.0  ;;  %v319_v25 = vmax.f32 %v311_v15, 0.0  ;;  %s284_s12 = scalar_lea.vmem [#allocation2], %s5247_s29 }
  0x25   : > { %v320_v26 = vmax.f32 %v312_v18, 0.0  ;;  %v321_v27 = vmax.f32 %v313_v19, 0.0  ;;  %v322_v28 = vmax.f32 %v314_v20, 0.0  ;;  %v323_v29 = vmax.f32 %v315_v21, 0.0 }
  0x26   : > { %v324_v30 = vmax.f32 %v316_v22, 0.0  ;;  %v325_v31 = vmax.f32 %v317_v23, 0.0  ;;  %v326_v32 = vmin.f32 %v318_v24, 15.0  ;;  %v327_v33 = vmin.f32 %v319_v25, 15.0 }
  0x27   : > { %v328_v34 = vmin.f32 %v320_v26, 15.0  ;;  %v5941_v35 = vmin.f32 %v321_v27, 15.0  ;;  %v5943_v36 = vmin.f32 %v322_v28, 15.0  ;;  %v5945_v37 = vmin.f32 %v323_v29, 15.0 }
  0x28   : > { %v5947_v38 = vmin.f32 %v324_v30, 15.0  ;;  %v5949_v39 = vmin.f32 %v325_v31, 15.0  ;;  %v342_v40 = vrot.slane %v326_v32, %v5923_v3  ;;  %v346_v41 = vrot.slane %v327_v33, %v5923_v3 }
  0x29   : > { %v350_v42 = vrot.slane %v328_v34, %v5923_v3  ;;  %v354_v43 = vrot.slane %v5941_v35, %v5923_v3  ;;  %v358_v44 = vrot.slane %v5943_v36, %v5923_v3  ;;  %v362_v45 = vrot.slane %v5945_v37, %v5923_v3 }
  0x2a   : > { %v366_v48 = vrot.slane %v5947_v38, %v5923_v3  ;;  %v370_v49 = vrot.slane %v5949_v39, %v5923_v3  ;;  %v371_v50 = vsub.f32 %v342_v40, %v5939_v16  ;;  %v372_v53 = vsub.f32 %v346_v41, %v5939_v16 }
  0x2b   : > { %v375_v51 = vsub.f32 %v358_v44, %v5939_v16  ;;  %v376_v52 = vsub.f32 %v362_v45, %v5939_v16  ;;  %v373_v54 = vsub.f32 %v350_v42, %v5939_v16  ;;  %v374_v57 = vsub.f32 %v354_v43, %v5939_v16 }
  0x2c   : > { %v377_v55 = vsub.f32 %v366_v48, %v5939_v16  ;;  %v378_v56 = vsub.f32 %v370_v49, %v5939_v16  ;;  %v379_v60 = vsub.f32 %v342_v40, %v5968_v47  ;;  %v380_v61 = vsub.f32 %v346_v41, %v5968_v47 }
  0x2d   : > { %v381_v62 = vsub.f32 %v350_v42, %v5968_v47  ;;  %v382_v0 = vsub.f32 %v354_v43, %v5968_v47  ;;  %v384_v2 = vsub.f32 %v362_v45, %v5968_v47  ;;  %v383_v6 = vsub.f32 %v358_v44, %v5968_v47 }
  0x2e   : > { %v387_v7 = vand.u32 2147483647, %v371_v50  ;;  %v388_v8 = vand.u32 2147483647, %v372_v53  ;;  %v389_v9 = vand.u32 2147483647, %v373_v54  ;;  %v385_v10 = vsub.f32 %v366_v48, %v5968_v47 }
  0x2f   : > { %v390_v11 = vand.u32 2147483647, %v374_v57  ;;  %v6004_v12 = vand.u32 2147483647, %v375_v51  ;;  %v392_v13 = vand.u32 2147483647, %v376_v52  ;;  %v386_v14 = vsub.f32 %v370_v49, %v5968_v47 }
  0x30   : > { %v395_v15 = vand.u32 2147483647, %v379_v60  ;;  %v396_v17 = vand.u32 2147483647, %v380_v61  ;;  %v397_v18 = vand.u32 2147483647, %v381_v62  ;;  %v6010_v22 = vrot.slane %v326_v32, %v5983_v58 }
  0x31   : > { %v6007_v19 = vand.u32 2147483647, %v377_v55  ;;  %v398_v20 = vand.u32 2147483647, %v382_v0  ;;  %v400_v21 = vand.u32 2147483647, %v384_v2  ;;  %v6017_v25 = vrot.slane %v327_v33, %v5983_v58 }
  0x32   : > { %v6012_v23 = vand.u32 2147483647, %v378_v56  ;;  %v6014_v24 = vand.u32 2147483647, %v383_v6  ;;  %v6020_v26 = vrot.slane %v328_v34, %v5983_v58  ;;  %v403_v27 = vsub.f32 1.0, %v387_v7 }
  0x33   : > { %v404_v28 = vsub.f32 1.0, %v388_v8  ;;  %v405_v29 = vsub.f32 1.0, %v389_v9  ;;  %v406_v30 = vsub.f32 1.0, %v390_v11  ;;  %v408_v31 = vsub.f32 1.0, %v392_v13 }
  0x34   : > { %v411_v40 = vsub.f32 1.0, %v395_v15  ;;  %v412_v41 = vsub.f32 1.0, %v396_v17  ;;  %v413_v42 = vsub.f32 1.0, %v397_v18  ;;  %v6022_v32 = vand.u32 2147483647, %v385_v10 }
  0x35   : > { %v414_v43 = vsub.f32 1.0, %v398_v20  ;;  %v416_v44 = vsub.f32 1.0, %v400_v21  ;;  %v6026_v45 = vrot.slane %v5941_v35, %v5983_v58  ;;  %v6028_v33 = vand.u32 2147483647, %v386_v14 }
  0x36   : > { %v6033_v49 = vmax.f32 %v403_v27, 0.0  ;;  %v6035_v50 = vmax.f32 %v404_v28, 0.0  ;;  %v6037_v51 = vmax.f32 %v405_v29, 0.0  ;;  %v6039_v52 = vmax.f32 %v406_v30, 0.0 }
  0x37   : > { %v6041_v53 = vmax.f32 %v408_v31, 0.0  ;;  %v6043_v35 = vmax.f32 %v411_v40, 0.0  ;;  %v6045_v54 = vmax.f32 %v412_v41, 0.0  ;;  %v6047_v55 = vmax.f32 %v413_v42, 0.0 }
  0x38   : > { %v6049_v56 = vmax.f32 %v414_v43, 0.0  ;;  %v6051_v57 = vmax.f32 %v416_v44, 0.0  ;;  %v6055_v60 = vrot.slane %v5943_v36, %v5983_v58  ;;  %v6059_v61 = vrot.slane %v5945_v37, %v5983_v58 }
  0x39   : > { %v6063_v62 = vrot.slane %v5947_v38, %v5983_v58  ;;  %v6067_v0 = vrot.slane %v5949_v39, %v5983_v58  ;;  %v467_v2 = vsub.f32 %v6010_v22, %v5939_v16  ;;  %v468_v6 = vsub.f32 %v6017_v25, %v5939_v16 }
  0x3a   : > { %v469_v36 = vsub.f32 %v6020_v26, %v5939_v16  ;;  %v470_v37 = vsub.f32 %v6026_v45, %v5939_v16  ;;  %v471_v38 = vsub.f32 %v6055_v60, %v5939_v16  ;;  %v472_v7 = vsub.f32 %v6059_v61, %v5939_v16 }
  0x3b   : > { %v473_v39 = vsub.f32 %v6063_v62, %v5939_v16  ;;  %v474_v8 = vsub.f32 %v6067_v0, %v5939_v16  ;;  %v483_v9 = vand.u32 2147483647, %v467_v2  ;;  %v484_v10 = vand.u32 2147483647, %v468_v6 }
  0x3c   : > { %v485_v11 = vand.u32 2147483647, %v469_v36  ;;  %v486_v13 = vand.u32 2147483647, %v470_v37  ;;  %v487_v14 = vand.u32 2147483647, %v471_v38 }
  0x3d   : > { %v488_v17 = vand.u32 2147483647, %v472_v7  ;;  %v489_v18 = vand.u32 2147483647, %v473_v39  ;;  %v490_v20 = vand.u32 2147483647, %v474_v8 }
  0x3e   : > { %v499_v27 = vsub.f32 1.0, %v483_v9  ;;  %v500_v28 = vsub.f32 1.0, %v484_v10  ;;  %v501_v29 = vsub.f32 1.0, %v485_v11  ;;  %v502_v30 = vsub.f32 1.0, %v486_v13 }
  0x3f   : > { %v503_v31 = vsub.f32 1.0, %v487_v14  ;;  %v504_v16 = vsub.f32 1.0, %v488_v17  ;;  %v505_v40 = vsub.f32 1.0, %v489_v18  ;;  %v506_v41 = vsub.f32 1.0, %v490_v20 }
  0x40   : > { %v515_v42 = vmax.f32 %v499_v27, 0.0  ;;  %v516_v43 = vmax.f32 %v500_v28, 0.0  ;;  %v517_v44 = vmax.f32 %v501_v29, 0.0  ;;  %v518_v2 = vmax.f32 %v502_v30, 0.0 }
  0x41   : > { %v519_v6 = vmax.f32 %v503_v31, 0.0  ;;  %v520_v36 = vmax.f32 %v504_v16, 0.0  ;;  %v521_v37 = vmax.f32 %v505_v40, 0.0  ;;  %v522_v38 = vmax.f32 %v506_v41, 0.0 }
  0x42   : > { %v547_v7 = vcombine.low %v515_v42, %v516_v43  ;;  %v549_v39 = vcombine.low %v517_v44, %v518_v2  ;;  %v548_v8 = vcombine.high %v515_v42, %v516_v43  ;;  %v550_v48 = vcombine.high %v517_v44, %v518_v2 }
  0x43   : > { %v551_v9 = vcombine.low %v519_v6, %v520_v36  ;;  %v553_v10 = vcombine.low %v521_v37, %v522_v38  ;;  %v552_v11 = vcombine.high %v519_v6, %v520_v36  ;;  %v554_v13 = vcombine.high %v521_v37, %v522_v38 }
  0x44   : > { %v561_v14 = vrot.slane %v547_v7, %v5986_v59  ;;  %v575_v17 = vrot.slane %v549_v39, %v5986_v59  ;;  %v568_v18 = vrot.slane %v548_v8, %v5986_v59  ;;  %v582_v20 = vrot.slane %v550_v48, %v5986_v59 }
  0x45   : > { %v589_v27 = vrot.slane %v551_v9, %v5986_v59  ;;  %v603_v28 = vrot.slane %v553_v10, %v5986_v59  ;;  %v596_v29 = vrot.slane %v552_v11, %v5986_v59  ;;  %v610_v30 = vrot.slane %v554_v13, %v5986_v59 }
  0x46   : > { %v611_v31 = vcombine.low %v561_v14, %v575_v17  ;;  %v612_v16 = vcombine.high %v561_v14, %v575_v17  ;;  %v613_v40 = vcombine.low %v568_v18, %v582_v20  ;;  %v614_v41 = vcombine.high %v568_v18, %v582_v20 }
  0x47   : > { %v615_v42 = vcombine.low %v589_v27, %v603_v28  ;;  %v616_v43 = vcombine.high %v589_v27, %v603_v28  ;;  %v617_v44 = vcombine.low %v596_v29, %v610_v30  ;;  %v618_v2 = vcombine.high %v596_v29, %v610_v30 }
  0x48   : > { %v625_v6 = vrot.slane %v611_v31, %v5986_v59  ;;  %v639_v48 = vrot.slane %v612_v16, %v5986_v59  ;;  %v632_v36 = vrot.slane %v613_v40, %v5986_v59  ;;  %v646_v37 = vrot.slane %v614_v41, %v5986_v59 }
  0x49   : > { %v653_v38 = vrot.slane %v615_v42, %v5986_v59  ;;  %v667_v7 = vrot.slane %v616_v43, %v5986_v59  ;;  %v660_v39 = vrot.slane %v617_v44, %v5986_v59  ;;  %v674_v8 = vrot.slane %v618_v2, %v5986_v59 }
  0x4b   : > { %v6113_v14 = vcombine.low %v625_v6, %v653_v38  ;;  %v6115_v17 = vcombine.low %v639_v48, %v667_v7  ;;  %v6117_v18 = vcombine.high %v625_v6, %v653_v38  ;;  %v6119_v20 = vcombine.high %v639_v48, %v667_v7 }
  0x4c   : > { %v6121_v27 = vcombine.low %v632_v36, %v660_v39  ;;  %v6123_v28 = vcombine.low %v646_v37, %v674_v8  ;;  %v6125_v29 = vcombine.high %v632_v36, %v660_v39  ;;  %v6127_v30 = vcombine.high %v646_v37, %v674_v8 }
  0x4d   : > { %v826_v31 = vrot.slane %v6113_v14, %v5992_v63  ;;  %v834_v16 = vrot.slane %v6113_v14, %v5923_v3  ;;  %v822_v40 = vrot.slane %v6113_v14, %v5997_v4  ;;  %v830_v41 = vrot.slane %v6113_v14, %v6000_v5 }
  0x4e   : > { %8345 = vst [vmem:[#allocation6_spill] sm:$0xff] %v6123_v28  ;;  %8346 = vst [vmem:[#allocation7_spill] sm:$0xff] %v6125_v29  ;;  %v858_v42 = vrot.slane %v6115_v17, %v5992_v63  ;;  %v866_v43 = vrot.slane %v6115_v17, %v5923_v3  ;;  %v854_v44 = vrot.slane %v6115_v17, %v5997_v4 }
  0x4f   : > { %8347 = vst [vmem:[#allocation8_spill] sm:$0xff] %v6127_v30  ;;  %v862_v2 = vrot.slane %v6115_v17, %v6000_v5  ;;  %v1460_v6 = vmul.f32 %v826_v31, %v6035_v50  ;;  %v1468_v48 = vmul.f32 %v826_v31, %v6045_v54  ;;  %v1462_v36 = vmul.f32 %v834_v16, %v6039_v52 }
  0x50   : > { %v1470_v37 = vmul.f32 %v834_v16, %v6049_v56  ;;  %v1459_v38 = vmul.f32 %v822_v40, %v6033_v49  ;;  %v1467_v7 = vmul.f32 %v822_v40, %v6043_v35  ;;  %v1461_v39 = vmul.f32 %v830_v41, %v6037_v51 }
  0x51   : > { %v1469_v8 = vmul.f32 %v830_v41, %v6047_v55  ;;  %v1718_v46 = vpack.c.bf16 %v1468_v48, %v1460_v6  ;;  %v1476_v13 = vmul.f32 %v858_v42, %v6035_v50  ;;  %v1484_v11 = vmul.f32 %v858_v42, %v6045_v54 }
  0x52   : > { %v1720_v34 = vpack.c.bf16 %v1470_v37, %v1462_v36  ;;  %v1717_v10 = vpack.c.bf16 %v1467_v7, %v1459_v38  ;;  %v1478_v9 = vmul.f32 %v866_v43, %v6039_v52  ;;  %v1486_v16 = vmul.f32 %v866_v43, %v6049_v56 }
  0x53   : > { %v1719_v31 = vpack.c.bf16 %v1469_v8, %v1461_v39  ;;  %1855 = vmatprep.subr.bf16.mxu0 %v1718_v46  ;;  %v1726_v21 = vpack.c.bf16 %v1484_v11, %v1476_v13  ;;  %v1475_v40 = vmul.f32 %v854_v44, %v6033_v49  ;;  %v1483_v15 = vmul.f32 %v854_v44, %v6043_v35 }
  0x54   : > { %1898 = vmatprep.subr.bf16.mxu1 %v1720_v34  ;;  %v8348_v41 = vsub.f32 %v6010_v22, %v5968_v47  ;;  %1856 = vmatpush1.bf16.msra.mxu0 %v1717_v10  ;;  %v1728_v42 = vpack.c.bf16 %v1486_v16, %v1478_v9  ;;  %v1477_v48 = vmul.f32 %v862_v2, %v6037_v51 }
  0x55   : > { %1899 = vmatpush1.bf16.msra.mxu1 %v1719_v31  ;;  %v1485_v36 = vmul.f32 %v862_v2, %v6047_v55  ;;  %v8349_v34 = vsub.f32 %v6017_v25, %v5968_v47  ;;  %1857 = vmatprep.subr.bf16.mxu0 %v1726_v21  ;;  %v1725_v11 = vpack.c.bf16 %v1483_v15, %v1475_v40 }
  0x56   : > { %v6162_v6 = vand.u32 2147483647, %v8348_v41  ;;  %v890_v13 = vrot.slane %v6117_v18, %v5992_v63  ;;  %v898_v22 = vrot.slane %v6117_v18, %v5923_v3  ;;  %v886_v9 = vrot.slane %v6117_v18, %v5997_v4  ;;  %1900 = vmatprep.subr.bf16.mxu1 %v1728_v42 }
  0x57   : > { %v6169_v46 = vand.u32 2147483647, %v8349_v34  ;;  %v1727_v10 = vpack.c.bf16 %v1485_v36, %v1477_v48  ;;  %v894_v43 = vrot.slane %v6117_v18, %v6000_v5  ;;  %v922_v25 = vrot.slane %v6119_v20, %v5992_v63 }
  0x58   : > { %v930_v15 = vrot.slane %v6119_v20, %v5923_v3  ;;  %v1492_v21 = vmul.f32 %v890_v13, %v6035_v50  ;;  %v1500_v44 = vmul.f32 %v890_v13, %v6045_v54  ;;  %v1494_v2 = vmul.f32 %v898_v22, %v6039_v52  ;;  %1858 = vmatpush1.bf16.msra.mxu0 %v1725_v11 }
  0x59   : > { %v1502_v37 = vmul.f32 %v898_v22, %v6049_v56  ;;  %1901 = vmatpush1.bf16.msra.mxu1 %v1727_v10  ;;  %v1491_v38 = vmul.f32 %v886_v9, %v6033_v49  ;;  %v1499_v7 = vmul.f32 %v886_v9, %v6043_v35  ;;  %v1493_v39 = vmul.f32 %v894_v43, %v6037_v51 }
  0x5a   : > { %v8350_v8 = vsub.f32 %v6020_v26, %v5968_v47  ;;  %v1734_v16 = vpack.c.bf16 %v1500_v44, %v1492_v21  ;;  %v1501_v41 = vmul.f32 %v894_v43, %v6047_v55  ;;  %v1508_v42 = vmul.f32 %v922_v25, %v6035_v50 }
  0x5b   : > { %v1736_v40 = vpack.c.bf16 %v1502_v37, %v1494_v2  ;;  %v1733_v48 = vpack.c.bf16 %v1499_v7, %v1491_v38  ;;  %v1516_v36 = vmul.f32 %v922_v25, %v6045_v54  ;;  %v1510_v34 = vmul.f32 %v930_v15, %v6039_v52 }
  0x5c   : > { %v6193_v31 = vand.u32 2147483647, %v8350_v8  ;;  %v1518_v11 = vmul.f32 %v930_v15, %v6049_v56  ;;  %1859 = vmatprep.subr.bf16.mxu0 %v1734_v16  ;;  %v1735_v13 = vpack.c.bf16 %v1501_v41, %v1493_v39  ;;  %v918_v26 = vrot.slane %v6119_v20, %v5997_v4 }
  0x5d   : > { %1902 = vmatprep.subr.bf16.mxu1 %v1736_v40  ;;  %v926_v22 = vrot.slane %v6119_v20, %v6000_v5  ;;  %v8351_v9 = vsub.f32 %v6026_v45, %v5968_v47  ;;  %1860 = vmatpush1.bf16.msra.mxu0 %v1733_v48  ;;  %v1742_v43 = vpack.c.bf16 %v1516_v36, %v1508_v42 }
  0x5e   : > { %v1744_v25 = vpack.c.bf16 %v1518_v11, %v1510_v34  ;;  %v954_v15 = vrot.slane %v6121_v27, %v5992_v63  ;;  %v962_v21 = vrot.slane %v6121_v27, %v5923_v3  ;;  %1903 = vmatpush1.bf16.msra.mxu1 %v1735_v13  ;;  %v1507_v44 = vmul.f32 %v918_v26, %v6033_v49 }
  0x5f   : > { %v6207_v10 = vand.u32 2147483647, %v8351_v9  ;;  %v1515_v2 = vmul.f32 %v918_v26, %v6043_v35  ;;  %v1509_v37 = vmul.f32 %v926_v22, %v6037_v51  ;;  %v1517_v45 = vmul.f32 %v926_v22, %v6047_v55  ;;  %1861 = vmatprep.subr.bf16.mxu0 %v1742_v43 }
  0x60   : > { %1904 = vmatprep.subr.bf16.mxu1 %v1744_v25  ;;  %v1524_v38 = vmul.f32 %v954_v15, %v6035_v50  ;;  %v1532_v7 = vmul.f32 %v954_v15, %v6045_v54  ;;  %v1526_v39 = vmul.f32 %v962_v21, %v6039_v52  ;;  %v8352_v8 = vsub.f32 %v6055_v60, %v5968_v47 }
  0x61   : > { %v1741_v40 = vpack.c.bf16 %v1515_v2, %v1507_v44  ;;  %v1743_v41 = vpack.c.bf16 %v1517_v45, %v1509_v37  ;;  %v1534_v42 = vmul.f32 %v962_v21, %v6049_v56  ;;  %v950_v48 = vrot.slane %v6121_v27, %v5997_v4 }
  0x62   : > { %v6223_v16 = vand.u32 2147483647, %v8352_v8  ;;  %v1750_v36 = vpack.c.bf16 %v1532_v7, %v1524_v38  ;;  %v958_v34 = vrot.slane %v6121_v27, %v6000_v5  ;;  %v986_v11 = vrot.slane %v6123_v28, %v5992_v63 }
  0x63   : > { %v994_v13 = vrot.slane %v6123_v28, %v5923_v3  ;;  %1862 = vmatpush1.bf16.msra.mxu0 %v1741_v40  ;;  %1905 = vmatpush1.bf16.msra.mxu1 %v1743_v41  ;;  %v1752_v60 = vpack.c.bf16 %v1534_v42, %v1526_v39  ;;  %v1523_v26 = vmul.f32 %v950_v48, %v6033_v49 }
  0x64   : > { %v1531_v22 = vmul.f32 %v950_v48, %v6043_v35  ;;  %v8353_v9 = vsub.f32 %v6059_v61, %v5968_v47  ;;  %1863 = vmatprep.subr.bf16.mxu0 %v1750_v36  ;;  %v1525_v25 = vmul.f32 %v958_v34, %v6037_v51  ;;  %v1533_v15 = vmul.f32 %v958_v34, %v6047_v55 }
  0x65   : > { %v1540_v21 = vmul.f32 %v986_v11, %v6035_v50  ;;  %v1548_v44 = vmul.f32 %v986_v11, %v6045_v54  ;;  %1906 = vmatprep.subr.bf16.mxu1 %v1752_v60  ;;  %v1542_v37 = vmul.f32 %v994_v13, %v6039_v52  ;;  %v1550_v45 = vmul.f32 %v994_v13, %v6049_v56 }
  0x66   : > { %v6239_v43 = vand.u32 2147483647, %v8353_v9  ;;  %v1749_v2 = vpack.c.bf16 %v1531_v22, %v1523_v26  ;;  %v982_v61 = vrot.slane %v6123_v28, %v5997_v4  ;;  %v1751_v38 = vpack.c.bf16 %v1533_v15, %v1525_v25 }
  0x67   : > { %v1758_v7 = vpack.c.bf16 %v1548_v44, %v1540_v21  ;;  %v990_v39 = vrot.slane %v6123_v28, %v6000_v5  ;;  %v1018_v8 = vrot.slane %v6125_v29, %v5992_v63  ;;  %v1760_v40 = vpack.c.bf16 %v1550_v45, %v1542_v37 }
  0x68   : > { %1864 = vmatpush1.bf16.msra.mxu0 %v1749_v2  ;;  %v1539_v41 = vmul.f32 %v982_v61, %v6033_v49  ;;  %v1547_v42 = vmul.f32 %v982_v61, %v6043_v35  ;;  %v1026_v48 = vrot.slane %v6125_v29, %v5923_v3  ;;  %1907 = vmatpush1.bf16.msra.mxu1 %v1751_v38  ;;  %v507_v13 = vsub.f32 1.0, %v6162_v6 }
  0x69   : > { %1865 = vmatprep.subr.bf16.mxu0 %v1758_v7  ;;  %v1541_v36 = vmul.f32 %v990_v39, %v6037_v51  ;;  %v1549_v34 = vmul.f32 %v990_v39, %v6047_v55  ;;  %v1556_v11 = vmul.f32 %v1018_v8, %v6035_v50  ;;  %1908 = vmatprep.subr.bf16.mxu1 %v1760_v40 }
  0x6a   : > { %v1757_v60 = vpack.c.bf16 %v1547_v42, %v1539_v41  ;;  %v1564_v26 = vmul.f32 %v1018_v8, %v6045_v54  ;;  %v1558_v22 = vmul.f32 %v1026_v48, %v6039_v52  ;;  %v1566_v9 = vmul.f32 %v1026_v48, %v6049_v56 }
  0x6b   : > { %v1759_v25 = vpack.c.bf16 %v1549_v34, %v1541_v36  ;;  %v1014_v15 = vrot.slane %v6125_v29, %v5997_v4  ;;  %v1022_v21 = vrot.slane %v6125_v29, %v6000_v5  ;;  %v1050_v44 = vrot.slane %v6127_v30, %v5992_v63 }
  0x6c   : > { %1866 = vmatpush1.bf16.msra.mxu0 %v1757_v60  ;;  %v1766_v6 = vpack.c.bf16 %v1564_v26, %v1556_v11  ;;  %v1768_v2 = vpack.c.bf16 %v1566_v9, %v1558_v22  ;;  %v1058_v37 = vrot.slane %v6127_v30, %v5923_v3  ;;  %v1046_v45 = vrot.slane %v6127_v30, %v5997_v4 }
  0x6d   : > { %1909 = vmatpush1.bf16.msra.mxu1 %v1759_v25  ;;  %v1555_v61 = vmul.f32 %v1014_v15, %v6033_v49  ;;  %v1563_v38 = vmul.f32 %v1014_v15, %v6043_v35  ;;  %v1557_v7 = vmul.f32 %v1022_v21, %v6037_v51  ;;  %v1565_v39 = vmul.f32 %v1022_v21, %v6047_v55 }
  0x6e   : > { %1867 = vmatprep.subr.bf16.mxu0 %v1766_v6  ;;  %1910 = vmatprep.subr.bf16.mxu1 %v1768_v2  ;;  %v1572_v8 = vmul.f32 %v1050_v44, %v6035_v50  ;;  %v1580_v40 = vmul.f32 %v1050_v44, %v6045_v54  ;;  %v1574_v41 = vmul.f32 %v1058_v37, %v6039_v52  ;;  %v508_v42 = vsub.f32 1.0, %v6169_v46 }
  0x6f   : > { %v1765_v48 = vpack.c.bf16 %v1563_v38, %v1555_v61  ;;  %v1767_v36 = vpack.c.bf16 %v1565_v39, %v1557_v7  ;;  %v1582_v34 = vmul.f32 %v1058_v37, %v6049_v56  ;;  %v1571_v11 = vmul.f32 %v1046_v45, %v6033_v49 }
  0x70   : > { %v1774_v60 = vpack.c.bf16 %v1580_v40, %v1572_v8  ;;  %v1579_v26 = vmul.f32 %v1046_v45, %v6043_v35  ;;  %v1054_v22 = vrot.slane %v6127_v30, %v6000_v5  ;;  %v481_v9 = vsub.f32 %v6063_v62, %v5968_v47 }
  0x71   : > { %1868 = vmatpush1.bf16.msra.mxu0 %v1765_v48  ;;  %1911 = vmatpush1.bf16.msra.mxu1 %v1767_v36  ;;  %v1776_v25 = vpack.c.bf16 %v1582_v34, %v1574_v41  ;;  %v482_v46 = vsub.f32 %v6067_v0, %v5968_v47  ;;  %v509_v15 = vsub.f32 1.0, %v6193_v31  ;;  %v510_v21 = vsub.f32 1.0, %v6207_v10 }
  0x72   : > { %1869 = vmatprep.subr.bf16.mxu0 %v1774_v60  ;;  %v1773_v44 = vpack.c.bf16 %v1579_v26, %v1571_v11  ;;  %v1573_v6 = vmul.f32 %v1054_v22, %v6037_v51  ;;  %v1581_v2 = vmul.f32 %v1054_v22, %v6047_v55  ;;  %v497_v37 = vand.u32 2147483647, %v481_v9 }
  0x73   : > { %1912 = vmatprep.subr.bf16.mxu1 %v1776_v25  ;;  %v498_v45 = vand.u32 2147483647, %v482_v46  ;;  %v511_v62 = vsub.f32 1.0, %v6223_v16  ;;  %v512_v61 = vsub.f32 1.0, %v6239_v43  ;;  %v523_v38 = vmax.f32 %v507_v13, 0.0 }
  0x74   : > { %v1775_v7 = vpack.c.bf16 %v1581_v2, %v1573_v6  ;;  %v513_v47 = vsub.f32 1.0, %v497_v37  ;;  %v524_v0 = vmax.f32 %v508_v42, 0.0  ;;  %v525_v31 = vmax.f32 %v509_v15, 0.0 }
  0x75   : > { %1870 = vmatpush1.bf16.msra.mxu0 %v1773_v44  ;;  %v514_v10 = vsub.f32 1.0, %v498_v45  ;;  %v526_v39 = vmax.f32 %v510_v21, 0.0  ;;  %v527_v8 = vmax.f32 %v511_v62, 0.0  ;;  %v528_v40 = vmax.f32 %v512_v61, 0.0 }
  0x76   : > { %1913 = vmatpush1.bf16.msra.mxu1 %v1775_v7  ;;  %v529_v41 = vmax.f32 %v513_v47, 0.0  ;;  %v683_v48 = vcombine.low %v523_v38, %v524_v0  ;;  %v684_v36 = vcombine.high %v523_v38, %v524_v0  ;;  %v6298_v34 = vsub.s32 5, %v5916_v1 }
  0x77   : > { %v530_v16 = vmax.f32 %v514_v10, 0.0  ;;  %v685_v11 = vcombine.low %v525_v31, %v526_v39  ;;  %v687_v43 = vcombine.low %v527_v8, %v528_v40  ;;  %v686_v13 = vcombine.high %v525_v31, %v526_v39 }
  0x78   : > { %v697_v60 = vrot.slane %v683_v48, %v5986_v59  ;;  %v688_v42 = vcombine.high %v527_v8, %v528_v40  ;;  %v704_v26 = vrot.slane %v684_v36, %v5986_v59  ;;  %v842_v22 = vrot.slane %v6113_v14, %v6298_v34 }
  0x79   : > { %v689_v9 = vcombine.low %v529_v41, %v530_v16  ;;  %v711_v25 = vrot.slane %v685_v11, %v5986_v59  ;;  %v725_v46 = vrot.slane %v687_v43, %v5986_v59  ;;  %v690_v15 = vcombine.high %v529_v41, %v530_v16 }
  0x7a   : > { %v718_v21 = vrot.slane %v686_v13, %v5986_v59  ;;  %v732_v44 = vrot.slane %v688_v42, %v5986_v59  ;;  %v6309_v6 = vmul.f32 %v842_v22, %v6041_v53  ;;  %v6312_v2 = vmul.f32 %v842_v22, %v6051_v57 }
  0x7b   : > { %v739_v37 = vrot.slane %v689_v9, %v5986_v59  ;;  %v747_v45 = vcombine.low %v697_v60, %v711_v25  ;;  %v748_v62 = vcombine.high %v697_v60, %v711_v25  ;;  %v746_v61 = vrot.slane %v690_v15, %v5986_v59 }
  0x7c   : > { %v749_v38 = vcombine.low %v704_v26, %v718_v21  ;;  %v750_v7 = vcombine.high %v704_v26, %v718_v21  ;;  %v6319_v0 = vsub.s32 7, %v5916_v1  ;;  %v6336_v26 = vrot.slane %v6113_v14, %v5983_v58 }
  0x7d   : > { %v751_v31 = vcombine.low %v725_v46, %v739_v37  ;;  %v761_v10 = vrot.slane %v747_v45, %v5986_v59  ;;  %v752_v39 = vcombine.high %v725_v46, %v739_v37  ;;  %v775_v8 = vrot.slane %v748_v62, %v5986_v59 }
  0x7e   : > { %v753_v40 = vcombine.low %v732_v44, %v746_v61  ;;  %v768_v41 = vrot.slane %v749_v38, %v5986_v59  ;;  %v754_v48 = vcombine.high %v732_v44, %v746_v61  ;;  %v782_v36 = vrot.slane %v750_v7, %v5986_v59 }
  0x7f   : > { %v789_v11 = vrot.slane %v751_v31, %v5986_v59  ;;  %v803_v43 = vrot.slane %v752_v39, %v5986_v59  ;;  %v6330_v13 = vrot.slane %v6113_v14, %v6319_v0  ;;  %v6340_v22 = vrot.slane %v6115_v17, %v6298_v34 }
  0x80   : > { %v796_v60 = vrot.slane %v753_v40, %v5986_v59  ;;  %v810_v42 = vrot.slane %v754_v48, %v5986_v59  ;;  %v417_v29 = vsub.f32 1.0, %v6022_v32 }
  0x81   : > { %v6342_v9 = vcombine.low %v761_v10, %v789_v11  ;;  %v6344_v25 = vcombine.low %v775_v8, %v803_v43  ;;  %v6346_v46 = vcombine.high %v761_v10, %v789_v11  ;;  %v6348_v15 = vcombine.high %v775_v8, %v803_v43 }
  0x82   : > { %v6350_v21 = vcombine.low %v768_v41, %v796_v60  ;;  %v6352_v44 = vcombine.low %v782_v36, %v810_v42  ;;  %v6354_v37 = vcombine.high %v768_v41, %v796_v60  ;;  %v6356_v45 = vcombine.high %v782_v36, %v810_v42 }
  0x83   : > { %8354 = vst [vmem:[#allocation9_spill] sm:$0xff] %v6342_v9  ;;  %8355 = vst [vmem:[#allocation10_spill] sm:$0xff] %v6344_v25  ;;  %v1082_v62 = vrot.slane %v6342_v9, %v5992_v63  ;;  %v1090_v61 = vrot.slane %v6342_v9, %v5923_v3  ;;  %v1078_v38 = vrot.slane %v6342_v9, %v5997_v4 }
  0x84   : > { %v1086_v7 = vrot.slane %v6342_v9, %v6000_v5  ;;  %v1114_v31 = vrot.slane %v6344_v25, %v5992_v63  ;;  %v1122_v10 = vrot.slane %v6344_v25, %v5923_v3  ;;  %v1110_v39 = vrot.slane %v6344_v25, %v5997_v4 }
  0x85   : > { %v1118_v8 = vrot.slane %v6344_v25, %v6000_v5  ;;  %v1588_v40 = vmul.f32 %v1082_v62, %v6035_v50  ;;  %v1596_v41 = vmul.f32 %v1082_v62, %v6045_v54  ;;  %v1590_v48 = vmul.f32 %v1090_v61, %v6039_v52 }
  0x86   : > { %v1598_v36 = vmul.f32 %v1090_v61, %v6049_v56  ;;  %v1587_v11 = vmul.f32 %v1078_v38, %v6033_v49  ;;  %v1595_v43 = vmul.f32 %v1078_v38, %v6043_v35  ;;  %v1589_v60 = vmul.f32 %v1086_v7, %v6037_v51 }
  0x87   : > { %v1597_v42 = vmul.f32 %v1086_v7, %v6047_v55  ;;  %v1782_v47 = vpack.c.bf16 %v1596_v41, %v1588_v40  ;;  %v1604_v59 = vmul.f32 %v1114_v31, %v6035_v50  ;;  %v1612_v25 = vmul.f32 %v1114_v31, %v6045_v54 }
  0x88   : > { %v1784_v16 = vpack.c.bf16 %v1598_v36, %v1590_v48  ;;  %v1781_v9 = vpack.c.bf16 %v1595_v43, %v1587_v11  ;;  %v1606_v30 = vmul.f32 %v1122_v10, %v6039_v52  ;;  %v1614_v61 = vmul.f32 %v1122_v10, %v6049_v56 }
  0x89   : > { %v1783_v62 = vpack.c.bf16 %v1597_v42, %v1589_v60  ;;  %1871 = vmatprep.subr.bf16.mxu0 %v1782_v47  ;;  %v1790_v38 = vpack.c.bf16 %v1612_v25, %v1604_v59  ;;  %v1603_v28 = vmul.f32 %v1110_v39, %v6033_v49  ;;  %v1611_v7 = vmul.f32 %v1110_v39, %v6043_v35 }
  0x8a   : > { %1914 = vmatprep.subr.bf16.mxu1 %v1784_v16  ;;  %v418_v40 = vsub.f32 1.0, %v6028_v33  ;;  %1872 = vmatpush1.bf16.msra.mxu0 %v1781_v9  ;;  %v1792_v31 = vpack.c.bf16 %v1614_v61, %v1606_v30  ;;  %v1605_v41 = vmul.f32 %v1118_v8, %v6037_v51  ;;  %v1613_v48 = vmul.f32 %v1118_v8, %v6047_v55 }
  0x8b   : > { %1915 = vmatpush1.bf16.msra.mxu1 %v1783_v62  ;;  %1873 = vmatprep.subr.bf16.mxu0 %v1790_v38  ;;  %v1789_v10 = vpack.c.bf16 %v1611_v7, %v1603_v28  ;;  %v1146_v47 = vrot.slane %v6346_v46, %v5992_v63  ;;  %v1154_v59 = vrot.slane %v6346_v46, %v5923_v3  ;;  %v8356_v43 = vsub.f32 1.0, %v6004_v12 }
  0x8c   : > { %v1142_v16 = vrot.slane %v6346_v46, %v5997_v4  ;;  %1916 = vmatprep.subr.bf16.mxu1 %v1792_v31  ;;  %v1791_v25 = vpack.c.bf16 %v1613_v48, %v1605_v41  ;;  %v1150_v30 = vrot.slane %v6346_v46, %v6000_v5  ;;  %v1178_v9 = vrot.slane %v6348_v15, %v5992_v63 }
  0x8d   : > { %v1186_v28 = vrot.slane %v6348_v15, %v5923_v3  ;;  %v1620_v39 = vmul.f32 %v1146_v47, %v6035_v50  ;;  %v1628_v8 = vmul.f32 %v1146_v47, %v6045_v54  ;;  %v1622_v36 = vmul.f32 %v1154_v59, %v6039_v52 }
  0x8e   : > { %v1630_v11 = vmul.f32 %v1154_v59, %v6049_v56  ;;  %v6410_v60 = vmax.f32 %v8356_v43, 0.0  ;;  %1874 = vmatpush1.bf16.msra.mxu0 %v1789_v10  ;;  %v1619_v42 = vmul.f32 %v1142_v16, %v6033_v49  ;;  %v1627_v62 = vmul.f32 %v1142_v16, %v6043_v35 }
  0x8f   : > { %1917 = vmatpush1.bf16.msra.mxu1 %v1791_v25  ;;  %v1621_v61 = vmul.f32 %v1150_v30, %v6037_v51  ;;  %v1798_v38 = vpack.c.bf16 %v1628_v8, %v1620_v39  ;;  %v1629_v31 = vmul.f32 %v1150_v30, %v6047_v55  ;;  %v1636_v41 = vmul.f32 %v1178_v9, %v6035_v50 }
  0x90   : > { %v1800_v7 = vpack.c.bf16 %v1630_v11, %v1622_v36  ;;  %v1797_v48 = vpack.c.bf16 %v1627_v62, %v1619_v42  ;;  %v1644_v47 = vmul.f32 %v1178_v9, %v6045_v54  ;;  %v1638_v12 = vmul.f32 %v1186_v28, %v6039_v52 }
  0x91   : > { %v1646_v10 = vmul.f32 %v1186_v28, %v6049_v56  ;;  %v8357_v59 = vsub.f32 1.0, %v6007_v19  ;;  %1875 = vmatprep.subr.bf16.mxu0 %v1798_v38  ;;  %v1799_v16 = vpack.c.bf16 %v1629_v31, %v1621_v61  ;;  %v1174_v39 = vrot.slane %v6348_v15, %v5997_v4 }
  0x92   : > { %1918 = vmatprep.subr.bf16.mxu1 %v1800_v7  ;;  %v1182_v30 = vrot.slane %v6348_v15, %v6000_v5  ;;  %1876 = vmatpush1.bf16.msra.mxu0 %v1797_v48  ;;  %v1806_v8 = vpack.c.bf16 %v1644_v47, %v1636_v41  ;;  %v1210_v36 = vrot.slane %v6350_v21, %v5992_v63  ;;  %v8358_v62 = vsub.f32 1.0, %v6012_v23 }
  0x93   : > { %v6422_v25 = vmax.f32 %v8357_v59, 0.0  ;;  %v1808_v9 = vpack.c.bf16 %v1646_v10, %v1638_v12  ;;  %v1218_v19 = vrot.slane %v6350_v21, %v5923_v3  ;;  %1919 = vmatpush1.bf16.msra.mxu1 %v1799_v16  ;;  %v1635_v28 = vmul.f32 %v1174_v39, %v6033_v49 }
  0x94   : > { %v1643_v11 = vmul.f32 %v1174_v39, %v6043_v35  ;;  %v1637_v43 = vmul.f32 %v1182_v30, %v6037_v51  ;;  %v1645_v42 = vmul.f32 %v1182_v30, %v6047_v55  ;;  %v6438_v61 = vmax.f32 %v8358_v62, 0.0  ;;  %1877 = vmatprep.subr.bf16.mxu0 %v1806_v8 }
  0x95   : > { %1920 = vmatprep.subr.bf16.mxu1 %v1808_v9  ;;  %v1652_v38 = vmul.f32 %v1210_v36, %v6035_v50  ;;  %v1660_v7 = vmul.f32 %v1210_v36, %v6045_v54  ;;  %v1654_v31 = vmul.f32 %v1218_v19, %v6039_v52  ;;  %v1662_v47 = vmul.f32 %v1218_v19, %v6049_v56 }
  0x96   : > { %v1805_v41 = vpack.c.bf16 %v1643_v11, %v1635_v28  ;;  %v1807_v48 = vpack.c.bf16 %v1645_v42, %v1637_v43  ;;  %v1206_v12 = vrot.slane %v6350_v21, %v5997_v4  ;;  %v1214_v23 = vrot.slane %v6350_v21, %v6000_v5 }
  0x97   : > { %v1814_v10 = vpack.c.bf16 %v1660_v7, %v1652_v38  ;;  %v1242_v59 = vrot.slane %v6352_v44, %v5992_v63  ;;  %v1250_v16 = vrot.slane %v6352_v44, %v5923_v3  ;;  %v8359_v39 = vsub.f32 1.0, %v6014_v24 }
  0x98   : > { %1878 = vmatpush1.bf16.msra.mxu0 %v1805_v41  ;;  %1921 = vmatpush1.bf16.msra.mxu1 %v1807_v48  ;;  %v1816_v8 = vpack.c.bf16 %v1662_v47, %v1654_v31  ;;  %v1651_v9 = vmul.f32 %v1206_v12, %v6033_v49  ;;  %v1659_v36 = vmul.f32 %v1206_v12, %v6043_v35 }
  0x99   : > { %v6454_v30 = vmax.f32 %v8359_v39, 0.0  ;;  %1879 = vmatprep.subr.bf16.mxu0 %v1814_v10  ;;  %v1653_v19 = vmul.f32 %v1214_v23, %v6037_v51  ;;  %v1661_v28 = vmul.f32 %v1214_v23, %v6047_v55  ;;  %v1668_v11 = vmul.f32 %v1242_v59, %v6035_v50 }
  0x9a   : > { %v1676_v43 = vmul.f32 %v1242_v59, %v6045_v54  ;;  %1922 = vmatprep.subr.bf16.mxu1 %v1816_v8  ;;  %v1813_v24 = vpack.c.bf16 %v1659_v36, %v1651_v9  ;;  %v1670_v42 = vmul.f32 %v1250_v16, %v6039_v52  ;;  %v1678_v62 = vmul.f32 %v1250_v16, %v6049_v56 }
  0x9b   : > { %v1238_v38 = vrot.slane %v6352_v44, %v5997_v4  ;;  %v1815_v7 = vpack.c.bf16 %v1661_v28, %v1653_v19  ;;  %v1246_v41 = vrot.slane %v6352_v44, %v6000_v5  ;;  %v1274_v48 = vrot.slane %v6354_v37, %v5992_v63 }
  0x9c   : > { %v1822_v31 = vpack.c.bf16 %v1676_v43, %v1668_v11  ;;  %1880 = vmatpush1.bf16.msra.mxu0 %v1813_v24  ;;  %v1824_v47 = vpack.c.bf16 %v1678_v62, %v1670_v42  ;;  %v1282_v23 = vrot.slane %v6354_v37, %v5923_v3  ;;  %v6476_v59 = vmax.f32 %v418_v40, 0.0 }
  0x9d   : > { %v1667_v12 = vmul.f32 %v1238_v38, %v6033_v49  ;;  %v1675_v10 = vmul.f32 %v1238_v38, %v6043_v35  ;;  %1923 = vmatpush1.bf16.msra.mxu1 %v1815_v7  ;;  %v1669_v16 = vmul.f32 %v1246_v41, %v6037_v51  ;;  %v1677_v39 = vmul.f32 %v1246_v41, %v6047_v55 }
  0x9e   : > { %1881 = vmatprep.subr.bf16.mxu0 %v1822_v31  ;;  %v1684_v8 = vmul.f32 %v1274_v48, %v6035_v50  ;;  %1924 = vmatprep.subr.bf16.mxu1 %v1824_v47  ;;  %v1692_v36 = vmul.f32 %v1274_v48, %v6045_v54  ;;  %v1686_v19 = vmul.f32 %v1282_v23, %v6039_v52 }
  0x9f   : > { %v1821_v9 = vpack.c.bf16 %v1675_v10, %v1667_v12  ;;  %v1694_v28 = vmul.f32 %v1282_v23, %v6049_v56  ;;  %v1823_v11 = vpack.c.bf16 %v1677_v39, %v1669_v16  ;;  %v1270_v33 = vrot.slane %v6354_v37, %v5997_v4 }
  0xa0   : > { %v1278_v40 = vrot.slane %v6354_v37, %v6000_v5  ;;  %v1306_v43 = vrot.slane %v6356_v45, %v5992_v63  ;;  %v1830_v24 = vpack.c.bf16 %v1692_v36, %v1684_v8  ;;  %v1314_v62 = vrot.slane %v6356_v45, %v5923_v3 }
  0xa1   : > { %1882 = vmatpush1.bf16.msra.mxu0 %v1821_v9  ;;  %v1832_v42 = vpack.c.bf16 %v1694_v28, %v1686_v19  ;;  %v1302_v38 = vrot.slane %v6356_v45, %v5997_v4  ;;  %1925 = vmatpush1.bf16.msra.mxu1 %v1823_v11  ;;  %v1683_v7 = vmul.f32 %v1270_v33, %v6033_v49  ;;  %v6502_v10 = vsub.s32 6, %v5916_v1 }
  0xa2   : > { %v1691_v31 = vmul.f32 %v1270_v33, %v6043_v35  ;;  %v1685_v41 = vmul.f32 %v1278_v40, %v6037_v51  ;;  %v1693_v48 = vmul.f32 %v1278_v40, %v6047_v55  ;;  %1883 = vmatprep.subr.bf16.mxu0 %v1830_v24  ;;  %v1700_v47 = vmul.f32 %v1306_v43, %v6035_v50 }
  0xa3   : > { %1926 = vmatprep.subr.bf16.mxu1 %v1832_v42  ;;  %v1708_v12 = vmul.f32 %v1306_v43, %v6045_v54  ;;  %v1702_v3 = vmul.f32 %v1314_v62, %v6039_v52  ;;  %v1710_v39 = vmul.f32 %v1314_v62, %v6049_v56  ;;  %v1699_v8 = vmul.f32 %v1302_v38, %v6033_v49  ;;  %v6530_v43 = vld [vmem:[%s5958_s14] ss:$8 sps:$4 sm:$0xff]  }
  0xa4   : > { %v1829_v23 = vpack.c.bf16 %v1691_v31, %v1683_v7  ;;  %v1831_v16 = vpack.c.bf16 %v1693_v48, %v1685_v41  ;;  %v1707_v36 = vmul.f32 %v1302_v38, %v6043_v35  ;;  %v1310_v19 = vrot.slane %v6356_v45, %v6000_v5 }
  0xa5   : > { %v1838_v9 = vpack.c.bf16 %v1708_v12, %v1700_v47  ;;  %v1466_v50 = vmul.f32 %v6330_v13, %v6438_v61  ;;  %v6513_v52 = vmax.f32 %v417_v29, 0.0  ;;  %v1840_v1 = vpack.c.bf16 %v1710_v39, %v1702_v3 }
  0xa6   : > { %1884 = vmatpush1.bf16.msra.mxu0 %v1829_v23  ;;  %1927 = vmatpush1.bf16.msra.mxu1 %v1831_v16  ;;  %v1474_v49 = vmul.f32 %v6330_v13, %v6476_v59  ;;  %v1463_v35 = vmul.f32 %v6336_v26, %v6410_v60  ;;  %v1837_v54 = vpack.c.bf16 %v1707_v36, %v1699_v8 }
  0xa7   : > { %1885 = vmatprep.subr.bf16.mxu0 %v1838_v9  ;;  %v1701_v56 = vmul.f32 %v1310_v19, %v6037_v51  ;;  %v1709_v28 = vmul.f32 %v1310_v19, %v6047_v55  ;;  %v1471_v32 = vmul.f32 %v6336_v26, %v6454_v30  ;;  %1928 = vmatprep.subr.bf16.mxu1 %v1840_v1 }
  0xa8   : > { %v1724_v29 = vpack.c.bf16 %v1474_v49, %v1466_v50  ;;  %v846_v11 = vrot.slane %v6113_v14, %v6502_v10  ;;  %v1480_v13 = vmul.f32 %v6340_v22, %v6041_v53  ;;  %v1488_v33 = vmul.f32 %v6340_v22, %v6051_v57 }
  0xa9   : > { %v1839_v40 = vpack.c.bf16 %v1709_v28, %v1701_v56  ;;  %v1721_v51 = vpack.c.bf16 %v1471_v32, %v1463_v35  ;;  %v882_v55 = vrot.slane %v6115_v17, %v6319_v0  ;;  %v870_v26 = vrot.slane %v6115_v17, %v5983_v58  ;;  %v5668_v28 = vld [vmem:[%s5958_s14 + $0x4] ss:$8 sps:$4 sm:$0xff]   ;;  %s5151_s14 = sshll.u32 %s284_s12, 4  ;;  %s8256_s14 = int_to_ptr.vmem [resolvable:$true] %s5151_s14 }
  0xaa   : > { %1886 = vmatpush1.bf16.msra.mxu0 %v1837_v54  ;;  %v1465_v24 = vmul.f32 %v846_v11, %v6422_v25  ;;  %v1473_v14 = vmul.f32 %v846_v11, %v6513_v52  ;;  %v1730_v42 = vpack.c.bf16 %v1488_v33, %v1480_v13  ;;  %v878_v62 = vrot.slane %v6115_v17, %v6502_v10  ;;  %s5687_s18 = scalar_lea.vmem %s8256_s14, 128 }
  0xab   : > { %1929 = vmatpush1.bf16.msra.mxu1 %v1839_v40  ;;  %v8360_v22 = vpack.c.bf16 %v6312_v2, %v6309_v6  ;;  %v1482_v38 = vmul.f32 %v882_v55, %v6438_v61  ;;  %v1490_v7 = vmul.f32 %v882_v55, %v6476_v59  ;;  %v1479_v31 = vmul.f32 %v870_v26, %v6410_v60  ;;  %p5688_p0 = scmp.ne.s32.totalorder %s8256_s14, %s5687_s18 }
  0xac   : > { %1984 = vmatprep.subr.bf16.mxu1 %v1724_v29  ;;  %v1723_v41 = vpack.c.bf16 %v1473_v14, %v1465_v24  ;;  %v1487_v48 = vmul.f32 %v870_v26, %v6454_v30  ;;  %v1481_v47 = vmul.f32 %v878_v62, %v6422_v25  ;;  %v1489_v12 = vmul.f32 %v878_v62, %v6513_v52 }
  0xad   : > { %1941 = vmatprep.subr.bf16.mxu0 %v8360_v22  ;;  %1888 = vmatmul.mubr.bf16.vlgmr.msra.gmra.mrb[0].mxu0 %v6530_v43  ;;  %v1732_v17 = vpack.c.bf16 %v1490_v7, %v1482_v38  ;;  %v906_v6 = vrot.slane %v6117_v18, %v6298_v34  ;;  %v914_v2 = vrot.slane %v6117_v18, %v6319_v0  ;;  %p5689_p1 = pnand %p5688_p0, %p5887_p3 }
  0xae   : > { %v902_v3 = vrot.slane %v6117_v18, %v5983_v58  ;;  %1931 = vmatmul.mubr.bf16.vlgmr.msra.gmra.mrb[0].mxu1 %v6530_v43  ;;  %1942 = vmatpush1.bf16.msra.mxu0 %v1721_v51  ;;  %v1729_v23 = vpack.c.bf16 %v1487_v48, %v1479_v31  ;;  %v1731_v16 = vpack.c.bf16 %v1489_v12, %v1481_v47 }
  0xaf   : > { %v910_v39 = vrot.slane %v6117_v18, %v6502_v10  ;;  %1985 = vmatpush1.bf16.msra.mxu1 %v1723_v41  ;;  %1943 = vmatprep.subr.bf16.mxu0 %v1730_v42  ;;  %v1496_v8 = vmul.f32 %v906_v6, %v6041_v53  ;;  %v1504_v9 = vmul.f32 %v906_v6, %v6051_v57  ;;  %p5690_p2 = pneg %p5689_p1 }
  0xb0   : > { %v1498_v36 = vmul.f32 %v914_v2, %v6438_v61  ;;  %1986 = vmatprep.subr.bf16.mxu1 %v1732_v17  ;;  %v1506_v19 = vmul.f32 %v914_v2, %v6476_v59  ;;  %v1495_v50 = vmul.f32 %v902_v3, %v6410_v60  ;;  %v1503_v1 = vmul.f32 %v902_v3, %v6454_v30 }
  0xb1   : > { %v1497_v49 = vmul.f32 %v910_v39, %v6422_v25  ;;  %v1738_v35 = vpack.c.bf16 %v1504_v9, %v1496_v8  ;;  %v1505_v18 = vmul.f32 %v910_v39, %v6513_v52  ;;  %v938_v54 = vrot.slane %v6119_v20, %v6298_v34  ;;  %1973 = vmatprep.mubr.bf16.mxu0 %v5668_v28  ;;  %v8361_v39 = vld [vmem:[#allocation6_spill] sm:$0xff] }
  0xb2   : > { %v946_v56 = vrot.slane %v6119_v20, %v6319_v0  ;;  %1944 = vmatpush1.bf16.msra.mxu0 %v1729_v23  ;;  %v1740_v32 = vpack.c.bf16 %v1506_v19, %v1498_v36  ;;  %v1737_v29 = vpack.c.bf16 %v1503_v1, %v1495_v50  ;;  %v934_v11 = vrot.slane %v6119_v20, %v5983_v58 }
  0xb3   : > { %v942_v13 = vrot.slane %v6119_v20, %v6502_v10  ;;  %1987 = vmatpush1.bf16.msra.mxu1 %v1731_v16  ;;  %1945 = vmatprep.subr.bf16.mxu0 %v1738_v35  ;;  %v1739_v33 = vpack.c.bf16 %v1505_v18, %v1497_v49  ;;  %v1512_v40 = vmul.f32 %v938_v54, %v6041_v53 }
  0xb4   : > { %v1520_v51 = vmul.f32 %v938_v54, %v6051_v57  ;;  %1988 = vmatprep.subr.bf16.mxu1 %v1740_v32  ;;  %v1514_v55 = vmul.f32 %v946_v56, %v6438_v61  ;;  %v1522_v26 = vmul.f32 %v946_v56, %v6476_v59  ;;  %v1511_v24 = vmul.f32 %v934_v11, %v6410_v60 }
  0xb5   : > { %v1519_v14 = vmul.f32 %v934_v11, %v6454_v30  ;;  %v1513_v62 = vmul.f32 %v942_v13, %v6422_v25  ;;  %v1521_v20 = vmul.f32 %v942_v13, %v6513_v52  ;;  %v970_v22 = vrot.slane %v6121_v27, %v6298_v34  ;;  %2016 = vmatprep.mubr.bf16.mxu1 %v5668_v28 }
  0xb6   : > { %v1746_v42 = vpack.c.bf16 %v1520_v51, %v1512_v40  ;;  %1946 = vmatpush1.bf16.msra.mxu0 %v1737_v29  ;;  %v1748_v38 = vpack.c.bf16 %v1522_v26, %v1514_v55  ;;  %v978_v31 = vrot.slane %v6121_v27, %v6319_v0  ;;  %v966_v41 = vrot.slane %v6121_v27, %v5983_v58  ;;  %v8362_v51 = vld [vmem:[#allocation7_spill] sm:$0xff] }
  0xb7   : > { %v1745_v7 = vpack.c.bf16 %v1519_v14, %v1511_v24  ;;  %1989 = vmatpush1.bf16.msra.mxu1 %v1739_v33  ;;  %v1747_v48 = vpack.c.bf16 %v1521_v20, %v1513_v62  ;;  %v1528_v47 = vmul.f32 %v970_v22, %v6041_v53  ;;  %v1536_v12 = vmul.f32 %v970_v22, %v6051_v57 }
  0xb8   : > { %1947 = vmatprep.subr.bf16.mxu0 %v1746_v42  ;;  %1990 = vmatprep.subr.bf16.mxu1 %v1748_v38  ;;  %v1530_v17 = vmul.f32 %v978_v31, %v6438_v61  ;;  %v1538_v6 = vmul.f32 %v978_v31, %v6476_v59  ;;  %v1527_v2 = vmul.f32 %v966_v41, %v6410_v60 }
  0xb9   : > { %v1535_v3 = vmul.f32 %v966_v41, %v6454_v30  ;;  %v1754_v23 = vpack.c.bf16 %v1536_v12, %v1528_v47  ;;  %v974_v16 = vrot.slane %v6121_v27, %v6502_v10  ;;  %v1002_v8 = vrot.slane %v8361_v39, %v6298_v34 }
  0xba   : > { %v1010_v9 = vrot.slane %v8361_v39, %v6319_v0  ;;  %1948 = vmatpush1.bf16.msra.mxu0 %v1745_v7  ;;  %v1756_v36 = vpack.c.bf16 %v1538_v6, %v1530_v17  ;;  %v998_v50 = vrot.slane %v8361_v39, %v5983_v58  ;;  %v1006_v1 = vrot.slane %v8361_v39, %v6502_v10  ;;  %v8363_v17 = vld [vmem:[#allocation8_spill] sm:$0xff] }
  0xbb   : > { %v1753_v19 = vpack.c.bf16 %v1535_v3, %v1527_v2  ;;  %1991 = vmatpush1.bf16.msra.mxu1 %v1747_v48  ;;  %1949 = vmatprep.subr.bf16.mxu0 %v1754_v23  ;;  %v1529_v49 = vmul.f32 %v974_v16, %v6422_v25  ;;  %v1537_v27 = vmul.f32 %v974_v16, %v6513_v52 }
  0xbc   : > { %v1544_v35 = vmul.f32 %v1002_v8, %v6041_v53  ;;  %1992 = vmatprep.subr.bf16.mxu1 %v1756_v36  ;;  %v1552_v18 = vmul.f32 %v1002_v8, %v6051_v57  ;;  %v1546_v54 = vmul.f32 %v1010_v9, %v6438_v61  ;;  %v1554_v56 = vmul.f32 %v1010_v9, %v6476_v59 }
  0xbd   : > { %v1543_v28 = vmul.f32 %v998_v50, %v6410_v60  ;;  %v1755_v32 = vpack.c.bf16 %v1537_v27, %v1529_v49  ;;  %v1551_v29 = vmul.f32 %v998_v50, %v6454_v30  ;;  %v1545_v11 = vmul.f32 %v1006_v1, %v6422_v25 }
  0xbe   : > { %v1553_v13 = vmul.f32 %v1006_v1, %v6513_v52  ;;  %1950 = vmatpush1.bf16.msra.mxu0 %v1753_v19  ;;  %v1762_v33 = vpack.c.bf16 %v1552_v18, %v1544_v35  ;;  %v1764_v40 = vpack.c.bf16 %v1554_v56, %v1546_v54  ;;  %v1034_v55 = vrot.slane %v8362_v51, %v6298_v34  ;;  %v8364_v54 = vld [vmem:[#allocation9_spill] sm:$0xff] }
  0xbf   : > { %v1042_v26 = vrot.slane %v8362_v51, %v6319_v0  ;;  %1993 = vmatpush1.bf16.msra.mxu1 %v1755_v32  ;;  %v1761_v24 = vpack.c.bf16 %v1551_v29, %v1543_v28  ;;  %v1030_v42 = vrot.slane %v8362_v51, %v5983_v58  ;;  %v1038_v62 = vrot.slane %v8362_v51, %v6502_v10 }
  0xc0   : > { %v1763_v14 = vpack.c.bf16 %v1553_v13, %v1545_v11  ;;  %1951 = vmatprep.subr.bf16.mxu0 %v1762_v33  ;;  %1994 = vmatprep.subr.bf16.mxu1 %v1764_v40  ;;  %v1560_v20 = vmul.f32 %v1034_v55, %v6041_v53  ;;  %v1568_v22 = vmul.f32 %v1034_v55, %v6051_v57 }
  0xc1   : > { %v1562_v38 = vmul.f32 %v1042_v26, %v6438_v61  ;;  %v1570_v7 = vmul.f32 %v1042_v26, %v6476_v59  ;;  %v1559_v31 = vmul.f32 %v1030_v42, %v6410_v60  ;;  %v1567_v41 = vmul.f32 %v1030_v42, %v6454_v30 }
  0xc2   : > { %v1561_v48 = vmul.f32 %v1038_v62, %v6422_v25  ;;  %1952 = vmatpush1.bf16.msra.mxu0 %v1761_v24  ;;  %v1770_v47 = vpack.c.bf16 %v1568_v22, %v1560_v20  ;;  %v1569_v12 = vmul.f32 %v1038_v62, %v6513_v52  ;;  %v1066_v6 = vrot.slane %v8363_v17, %v6298_v34  ;;  %v8365_v22 = vld [vmem:[#allocation10_spill] sm:$0xff] }
  0xc3   : > { %v1074_v2 = vrot.slane %v8363_v17, %v6319_v0  ;;  %1995 = vmatpush1.bf16.msra.mxu1 %v1763_v14  ;;  %v1772_v3 = vpack.c.bf16 %v1570_v7, %v1562_v38  ;;  %v1769_v23 = vpack.c.bf16 %v1567_v41, %v1559_v31  ;;  %v1062_v16 = vrot.slane %v8363_v17, %v5983_v58 }
  0xc4   : > { %v1070_v39 = vrot.slane %v8363_v17, %v6502_v10  ;;  %1953 = vmatprep.subr.bf16.mxu0 %v1770_v47  ;;  %v1771_v8 = vpack.c.bf16 %v1569_v12, %v1561_v48  ;;  %v1576_v9 = vmul.f32 %v1066_v6, %v6041_v53  ;;  %v1584_v36 = vmul.f32 %v1066_v6, %v6051_v57 }
  0xc5   : > { %v1578_v19 = vmul.f32 %v1074_v2, %v6438_v61  ;;  %1996 = vmatprep.subr.bf16.mxu1 %v1772_v3  ;;  %v1586_v50 = vmul.f32 %v1074_v2, %v6476_v59  ;;  %v1575_v1 = vmul.f32 %v1062_v16, %v6410_v60  ;;  %v1583_v49 = vmul.f32 %v1062_v16, %v6454_v30 }
  0xc6   : > { %v1577_v27 = vmul.f32 %v1070_v39, %v6422_v25  ;;  %1954 = vmatpush1.bf16.msra.mxu0 %v1769_v23  ;;  %v1778_v35 = vpack.c.bf16 %v1584_v36, %v1576_v9  ;;  %v1585_v18 = vmul.f32 %v1070_v39, %v6513_v52  ;;  %v1098_v56 = vrot.slane %v8364_v54, %v6298_v34 }
  0xc7   : > { %v1106_v28 = vrot.slane %v8364_v54, %v6319_v0  ;;  %1997 = vmatpush1.bf16.msra.mxu1 %v1771_v8  ;;  %v1780_v32 = vpack.c.bf16 %v1586_v50, %v1578_v19  ;;  %v1777_v29 = vpack.c.bf16 %v1583_v49, %v1575_v1  ;;  %v1094_v11 = vrot.slane %v8364_v54, %v5983_v58 }
  0xc8   : > { %v1102_v13 = vrot.slane %v8364_v54, %v6502_v10  ;;  %1955 = vmatprep.subr.bf16.mxu0 %v1778_v35  ;;  %v1779_v33 = vpack.c.bf16 %v1585_v18, %v1577_v27  ;;  %v1592_v40 = vmul.f32 %v1098_v56, %v6041_v53  ;;  %v1600_v51 = vmul.f32 %v1098_v56, %v6051_v57 }
  0xc9   : > { %v1594_v55 = vmul.f32 %v1106_v28, %v6438_v61  ;;  %1998 = vmatprep.subr.bf16.mxu1 %v1780_v32  ;;  %v1602_v26 = vmul.f32 %v1106_v28, %v6476_v59  ;;  %v1591_v24 = vmul.f32 %v1094_v11, %v6410_v60  ;;  %v1599_v14 = vmul.f32 %v1094_v11, %v6454_v30 }
  0xca   : > { %v1593_v42 = vmul.f32 %v1102_v13, %v6422_v25  ;;  %1956 = vmatpush1.bf16.msra.mxu0 %v1777_v29  ;;  %v1786_v62 = vpack.c.bf16 %v1600_v51, %v1592_v40  ;;  %v1601_v20 = vmul.f32 %v1102_v13, %v6513_v52  ;;  %v1130_v38 = vrot.slane %v8365_v22, %v6298_v34 }
  0xcb   : > { %v1138_v7 = vrot.slane %v8365_v22, %v6319_v0  ;;  %1999 = vmatpush1.bf16.msra.mxu1 %v1779_v33  ;;  %v1788_v31 = vpack.c.bf16 %v1602_v26, %v1594_v55  ;;  %v1785_v41 = vpack.c.bf16 %v1599_v14, %v1591_v24  ;;  %v1126_v48 = vrot.slane %v8365_v22, %v5983_v58 }
  0xcc   : > { %v1134_v47 = vrot.slane %v8365_v22, %v6502_v10  ;;  %1957 = vmatprep.subr.bf16.mxu0 %v1786_v62  ;;  %v1787_v12 = vpack.c.bf16 %v1601_v20, %v1593_v42  ;;  %v1608_v17 = vmul.f32 %v1130_v38, %v6041_v53  ;;  %v1616_v6 = vmul.f32 %v1130_v38, %v6051_v57 }
  0xcd   : > { %v1610_v2 = vmul.f32 %v1138_v7, %v6438_v61  ;;  %2000 = vmatprep.subr.bf16.mxu1 %v1788_v31  ;;  %v1618_v3 = vmul.f32 %v1138_v7, %v6476_v59  ;;  %v1607_v23 = vmul.f32 %v1126_v48, %v6410_v60  ;;  %v1615_v16 = vmul.f32 %v1126_v48, %v6454_v30 }
  0xce   : > { %v1609_v39 = vmul.f32 %v1134_v47, %v6422_v25  ;;  %1958 = vmatpush1.bf16.msra.mxu0 %v1785_v41  ;;  %v1794_v8 = vpack.c.bf16 %v1616_v6, %v1608_v17  ;;  %v1617_v9 = vmul.f32 %v1134_v47, %v6513_v52  ;;  %v1162_v36 = vrot.slane %v6346_v46, %v6298_v34 }
  0xcf   : > { %v1170_v19 = vrot.slane %v6346_v46, %v6319_v0  ;;  %2001 = vmatpush1.bf16.msra.mxu1 %v1787_v12  ;;  %v1796_v50 = vpack.c.bf16 %v1618_v3, %v1610_v2  ;;  %v1793_v1 = vpack.c.bf16 %v1615_v16, %v1607_v23  ;;  %v1158_v49 = vrot.slane %v6346_v46, %v5983_v58 }
  0xd0   : > { %v1166_v27 = vrot.slane %v6346_v46, %v6502_v10  ;;  %1959 = vmatprep.subr.bf16.mxu0 %v1794_v8  ;;  %v1795_v35 = vpack.c.bf16 %v1617_v9, %v1609_v39  ;;  %v1624_v18 = vmul.f32 %v1162_v36, %v6041_v53  ;;  %v1632_v54 = vmul.f32 %v1162_v36, %v6051_v57 }
  0xd1   : > { %v1626_v56 = vmul.f32 %v1170_v19, %v6438_v61  ;;  %2002 = vmatprep.subr.bf16.mxu1 %v1796_v50  ;;  %v1634_v28 = vmul.f32 %v1170_v19, %v6476_v59  ;;  %v1623_v32 = vmul.f32 %v1158_v49, %v6410_v60  ;;  %v1631_v29 = vmul.f32 %v1158_v49, %v6454_v30 }
  0xd2   : > { %v1625_v11 = vmul.f32 %v1166_v27, %v6422_v25  ;;  %1960 = vmatpush1.bf16.msra.mxu0 %v1793_v1  ;;  %v1802_v13 = vpack.c.bf16 %v1632_v54, %v1624_v18  ;;  %v1633_v46 = vmul.f32 %v1166_v27, %v6513_v52  ;;  %v1194_v33 = vrot.slane %v6348_v15, %v6298_v34 }
  0xd3   : > { %v1202_v40 = vrot.slane %v6348_v15, %v6319_v0  ;;  %2003 = vmatpush1.bf16.msra.mxu1 %v1795_v35  ;;  %v1804_v51 = vpack.c.bf16 %v1634_v28, %v1626_v56  ;;  %v1801_v55 = vpack.c.bf16 %v1631_v29, %v1623_v32  ;;  %v1190_v26 = vrot.slane %v6348_v15, %v5983_v58 }
  0xd4   : > { %v1198_v24 = vrot.slane %v6348_v15, %v6502_v10  ;;  %1961 = vmatprep.subr.bf16.mxu0 %v1802_v13  ;;  %v1803_v14 = vpack.c.bf16 %v1633_v46, %v1625_v11  ;;  %v1640_v42 = vmul.f32 %v1194_v33, %v6041_v53  ;;  %v1648_v62 = vmul.f32 %v1194_v33, %v6051_v57 }
  0xd5   : > { %v1642_v20 = vmul.f32 %v1202_v40, %v6438_v61  ;;  %2004 = vmatprep.subr.bf16.mxu1 %v1804_v51  ;;  %v1650_v22 = vmul.f32 %v1202_v40, %v6476_v59  ;;  %v1639_v38 = vmul.f32 %v1190_v26, %v6410_v60  ;;  %v1647_v7 = vmul.f32 %v1190_v26, %v6454_v30 }
  0xd6   : > { %v1641_v31 = vmul.f32 %v1198_v24, %v6422_v25  ;;  %1962 = vmatpush1.bf16.msra.mxu0 %v1801_v55  ;;  %v1810_v41 = vpack.c.bf16 %v1648_v62, %v1640_v42  ;;  %v1649_v15 = vmul.f32 %v1198_v24, %v6513_v52  ;;  %v1226_v48 = vrot.slane %v6350_v21, %v6298_v34 }
  0xd7   : > { %v1234_v47 = vrot.slane %v6350_v21, %v6319_v0  ;;  %2005 = vmatpush1.bf16.msra.mxu1 %v1803_v14  ;;  %v1812_v12 = vpack.c.bf16 %v1650_v22, %v1642_v20  ;;  %v1809_v17 = vpack.c.bf16 %v1647_v7, %v1639_v38  ;;  %v1222_v6 = vrot.slane %v6350_v21, %v5983_v58 }
  0xd8   : > { %v1230_v2 = vrot.slane %v6350_v21, %v6502_v10  ;;  %1963 = vmatprep.subr.bf16.mxu0 %v1810_v41  ;;  %v1811_v3 = vpack.c.bf16 %v1649_v15, %v1641_v31  ;;  %v1656_v23 = vmul.f32 %v1226_v48, %v6041_v53  ;;  %v1664_v16 = vmul.f32 %v1226_v48, %v6051_v57 }
  0xd9   : > { %v1658_v39 = vmul.f32 %v1234_v47, %v6438_v61  ;;  %2006 = vmatprep.subr.bf16.mxu1 %v1812_v12  ;;  %v1666_v8 = vmul.f32 %v1234_v47, %v6476_v59  ;;  %v1655_v9 = vmul.f32 %v1222_v6, %v6410_v60  ;;  %v1663_v36 = vmul.f32 %v1222_v6, %v6454_v30 }
  0xda   : > { %v1657_v19 = vmul.f32 %v1230_v2, %v6422_v25  ;;  %1964 = vmatpush1.bf16.msra.mxu0 %v1809_v17  ;;  %v1818_v50 = vpack.c.bf16 %v1664_v16, %v1656_v23  ;;  %v1665_v21 = vmul.f32 %v1230_v2, %v6513_v52  ;;  %v1258_v1 = vrot.slane %v6352_v44, %v6298_v34 }
  0xdb   : > { %v1266_v49 = vrot.slane %v6352_v44, %v6319_v0  ;;  %2007 = vmatpush1.bf16.msra.mxu1 %v1811_v3  ;;  %v1820_v27 = vpack.c.bf16 %v1666_v8, %v1658_v39  ;;  %v1817_v35 = vpack.c.bf16 %v1663_v36, %v1655_v9  ;;  %v1254_v18 = vrot.slane %v6352_v44, %v5983_v58 }
  0xdc   : > { %v1262_v54 = vrot.slane %v6352_v44, %v6502_v10  ;;  %1965 = vmatprep.subr.bf16.mxu0 %v1818_v50  ;;  %v1819_v56 = vpack.c.bf16 %v1665_v21, %v1657_v19  ;;  %v1672_v28 = vmul.f32 %v1258_v1, %v6041_v53  ;;  %v1680_v32 = vmul.f32 %v1258_v1, %v6051_v57  ;;  %v6797_v19 = vld [vmem:[%s8312_s5 + $0x18] sm:$0xff]  ;;  %v6811_v21 = vld [vmem:[%s8310_s3] ss:$8 sps:$4 sm:$0xff]  }
  0xdd   : > { %v1674_v29 = vmul.f32 %v1266_v49, %v6438_v61  ;;  %2008 = vmatprep.subr.bf16.mxu1 %v1820_v27  ;;  %v1682_v11 = vmul.f32 %v1266_v49, %v6476_v59  ;;  %v1671_v13 = vmul.f32 %v1254_v18, %v6410_v60  ;;  %v1679_v46 = vmul.f32 %v1254_v18, %v6454_v30  ;;  %v6816_v1 = vld [vmem:[%s8310_s3 + $0x10] ss:$8 sps:$4 sm:$0xff]  }
  0xde   : > { %v1673_v33 = vmul.f32 %v1262_v54, %v6422_v25  ;;  %1966 = vmatpush1.bf16.msra.mxu0 %v1817_v35  ;;  %v1826_v40 = vpack.c.bf16 %v1680_v32, %v1672_v28  ;;  %v1681_v44 = vmul.f32 %v1262_v54, %v6513_v52  ;;  %v1290_v51 = vrot.slane %v6354_v37, %v6298_v34 }
  0xdf   : > { %v1298_v55 = vrot.slane %v6354_v37, %v6319_v0  ;;  %2009 = vmatpush1.bf16.msra.mxu1 %v1819_v56  ;;  %v1828_v26 = vpack.c.bf16 %v1682_v11, %v1674_v29  ;;  %v1825_v24 = vpack.c.bf16 %v1679_v46, %v1671_v13  ;;  %v1286_v14 = vrot.slane %v6354_v37, %v5983_v58 }
  0xe0   : > { %v1294_v42 = vrot.slane %v6354_v37, %v6502_v10  ;;  %1967 = vmatprep.subr.bf16.mxu0 %v1826_v40  ;;  %v1827_v62 = vpack.c.bf16 %v1681_v44, %v1673_v33  ;;  %v1688_v20 = vmul.f32 %v1290_v51, %v6041_v53  ;;  %v1696_v22 = vmul.f32 %v1290_v51, %v6051_v57  ;;  %v5658_v40 = vld [vmem:[%s8309_s2] sm:$0xff]   ;;  %v5659_v44 = vld [vmem:[%s8309_s2 + $0x8] sm:$0xff]   ;;  %v5660_v51 = vld [vmem:[%s8309_s2 + $0x10] sm:$0xff]  }
  0xe1   : > { %v1690_v38 = vmul.f32 %v1298_v55, %v6438_v61  ;;  %2010 = vmatprep.subr.bf16.mxu1 %v1828_v26  ;;  %v1698_v7 = vmul.f32 %v1298_v55, %v6476_v59  ;;  %v1687_v31 = vmul.f32 %v1286_v14, %v6410_v60  ;;  %v1695_v41 = vmul.f32 %v1286_v14, %v6454_v30  ;;  %v5661_v55 = vld [vmem:[%s8309_s2 + $0x18] sm:$0xff]   ;;  %v5662_v26 = vld [vmem:[%s8309_s2 + $0x20] sm:$0xff]  }
  0xe2   : > { %v1689_v15 = vmul.f32 %v1294_v42, %v6422_v25  ;;  %1968 = vmatpush1.bf16.msra.mxu0 %v1825_v24  ;;  %v1834_v48 = vpack.c.bf16 %v1696_v22, %v1688_v20  ;;  %v1697_v37 = vmul.f32 %v1294_v42, %v6513_v52  ;;  %v1322_v47 = vrot.slane %v6356_v45, %v6298_v34  ;;  %v5663_v24 = vld [vmem:[%s8309_s2 + $0x28] sm:$0xff]  }
  0xe3   : > { %v1330_v12 = vrot.slane %v6356_v45, %v6319_v0  ;;  %2011 = vmatpush1.bf16.msra.mxu1 %v1827_v62  ;;  %v1836_v17 = vpack.c.bf16 %v1698_v7, %v1690_v38  ;;  %v1833_v6 = vpack.c.bf16 %v1695_v41, %v1687_v31  ;;  %v1318_v2 = vrot.slane %v6356_v45, %v5983_v58 }
  0xe4   : > { %v1326_v3 = vrot.slane %v6356_v45, %v6502_v10  ;;  %1969 = vmatprep.subr.bf16.mxu0 %v1834_v48  ;;  %v1835_v23 = vpack.c.bf16 %v1697_v37, %v1689_v15  ;;  %v1704_v16 = vmul.f32 %v1322_v47, %v6041_v53  ;;  %v1712_v39 = vmul.f32 %v1322_v47, %v6051_v57 }
  0xe5   : > { %v1706_v34 = vmul.f32 %v1330_v12, %v6438_v61  ;;  %2012 = vmatprep.subr.bf16.mxu1 %v1836_v17  ;;  %v1714_v0 = vmul.f32 %v1330_v12, %v6476_v59  ;;  %v1703_v8 = vmul.f32 %v1318_v2, %v6410_v60  ;;  %v1711_v9 = vmul.f32 %v1318_v2, %v6454_v30  ;;  %v2468_v61 = vld [vmem:[%s8312_s5] sm:$0xff]  ;;  %v2469_v30 = vld [vmem:[%s8312_s5 + $0x8] sm:$0xff] }
  0xe6   : > { %v1705_v58 = vmul.f32 %v1326_v3, %v6422_v25  ;;  %1970 = vmatpush1.bf16.msra.mxu0 %v1833_v6  ;;  %v1842_v36 = vpack.c.bf16 %v1712_v39, %v1704_v16  ;;  %v1713_v45 = vmul.f32 %v1326_v3, %v6513_v52  ;;  %v8326_v60 = vmov 0   ;;  %v6791_v52 = vld [vmem:[%s8312_s5 + $0x10] sm:$0xff]  ;;  %8367 = vst [vmem:[#allocation7_spill] sm:$0xff] %v6797_v19 }
  0xe7   : > { %2013 = vmatpush1.bf16.msra.mxu1 %v1835_v23  ;;  %v1844_v10 = vpack.c.bf16 %v1714_v0, %v1706_v34  ;;  %v1841_v53 = vpack.c.bf16 %v1711_v9, %v1703_v8  ;;  %5628 = vset.pattern.permute.xlu0 %v8326_v60  ;;  %v5785_v25 = vmov 3   ;;  %v5786_v59 = vmov 1   ;;  %8366 = vst [vmem:[#allocation6_spill] sm:$0xff] %v6791_v52  ;;  %v5669_v0 = vld [vmem:[%s5928_s9 + $0x20] sm:$0x1f] }
  0xe8   : > { %1971 = vmatprep.subr.bf16.mxu0 %v1842_v36  ;;  %v1843_v57 = vpack.c.bf16 %v1713_v45, %v1705_v58  ;;  %5629 = vset.pattern.permute.xlu1 %v5785_v25  ;;  %v5788_v50 = vmov 6   ;;  %v5790_v49 = vmov 9   ;;  %v6910_v8 = vrot.slane %v5669_v0, %v5997_v4 }
  0xe9   : > { %2014 = vmatprep.subr.bf16.mxu1 %v1844_v10  ;;  %2557 = vperm.xlu1 %5629, %v2468_v61   ;;  %v6913_v9 = vrot.slane %v5669_v0, %v5992_v63  ;;  %v6916_v58 = vrot.slane %v5669_v0, %v6000_v5  ;;  %v5670_v10 = vld [vmem:[%s5928_s9 + $0x30] sm:$0x1f] }
  0xea   : > { %1972 = vmatpush1.bf16.msra.mxu0 %v1841_v53  ;;  %2474 = vperm.xlu0 %5628, %v2468_v61   ;;  %v6924_v53 = vrot.slane %v5670_v10, %v5997_v4 }
  0xeb   : > { %2015 = vmatpush1.bf16.msra.mxu1 %v1843_v57  ;;  %v6927_v57 = vrot.slane %v5670_v10, %v5992_v63 }
  0xed   : > { %1974 = vmatmul.mubr.bf16.vlgmr.msra.gmra.mrb[4].mxu0 %v6530_v43  ;;  %2561 = vperm.xlu1 %5629, %v2469_v30  }
  0xee   : > { %2017 = vmatmul.mubr.bf16.vlgmr.msra.gmra.mrb[4].mxu1 %v6530_v43  ;;  %2128 = vmatprep.mubr.bf16.mxu0 %v8326_v60  ;;  %v5787_v43 = vmov 2  }
  0xef   : > { %2221 = vmatprep.mubr.bf16.mxu1 %v8326_v60  ;;  %2479 = vperm.xlu0 %5628, %v2469_v30  }
  0xf1   : > { %5630 = vset.pattern.permute.xlu1 %v5786_v59 }
  0xf2   : > { %2609 = vperm.xlu1 %5630, %v2469_v30  }
  0xf3   : > { %2489 = vperm.xlu0 %5628, %v6797_v19  }
  0xf6   : > { %5631 = vset.pattern.permute.xlu1 %v8326_v60 }
  0xf7   : > { %2484 = vperm.xlu1 %5631, %v6791_v52   ;;  %5633 = vset.pattern.permute.xlu0 %v5785_v25 }
  0xf8   : > { %2565 = vperm.xlu0 %5633, %v6791_v52  }
  0xfb   : > { %5632 = vset.pattern.permute.xlu1 %v5787_v43 }
  0xfc   : > { %2717 = vperm.xlu1 %5632, %v2468_v61   ;;  %5634 = vset.pattern.permute.xlu0 %v5786_v59 }
  0xfd   : > { %2605 = vperm.xlu0 %5634, %v2468_v61  }
 0x100   : > { %2721 = vperm.xlu1 %5632, %v2469_v30  }
 0x101   : > { %2617 = vperm.xlu0 %5634, %v6797_v19  }
 0x104   : > { %5635 = vset.pattern.permute.xlu1 %v5785_v25 }
 0x105   : > { %2569 = vperm.xlu1 %5635, %v6797_v19   ;;  %5638 = vset.pattern.permute.xlu0 %v5788_v50 }
 0x106   : > { %2913 = vperm.xlu0 %5638, %v2468_v61  }
 0x109   : > { %5636 = vset.pattern.permute.xlu1 %v5786_v59 }
 0x10a   : > { %2613 = vperm.xlu1 %5636, %v6791_v52   ;;  %2925 = vperm.xlu0 %5638, %v6797_v19  }
 0x10e   : > { %5637 = vset.pattern.permute.xlu1 %v5787_v43  ;;  %3223 = vrot.lane.b32.xlu0 %v6816_v1, %s5789_s19 }
 0x10f   : > { %2725 = vperm.xlu1 %5637, %v6791_v52   ;;  %5641 = vset.pattern.permute.xlu0 %v5790_v49 }
 0x112   : > { %3210 = vperm.xlu0 %5641, %v2469_v30  }
 0x113   : > { %2729 = vperm.xlu1 %5637, %v6797_v19  }
 0x117   : > { %5639 = vset.pattern.permute.xlu1 %v5788_v50 }
 0x118   : > { %2917 = vperm.xlu1 %5639, %v2469_v30   ;;  %v6934_v30 = vrot.slane %v5670_v10, %v6000_v5 }
 0x11c   : > { %2921 = vperm.xlu1 %5639, %v6791_v52  }
 0x120   : > { %3221 = vrot.lane.b32.xlu1 %v6811_v21, %s5789_s19  ;;  %s5800_s19 = smov [#allocation2]  }
 0x121   : > { %5640 = vset.pattern.permute.xlu1 %v5790_v49  ;;  %s5691_s29 = sshll.u32 %s5800_s19, 4  ;;  %s5692_s29 = int_to_ptr.vmem [resolvable:$false] %s5691_s29 }
 0x122   : > { %p5694_p4 = scmp.lt.s32.totalorder %s8256_s14, %s5692_s29 }
 0x124   : > { %3206 = vperm.xlu1 %5640, %v2468_v61  }
 0x128   : > { %3214 = vperm.xlu1 %5640, %v6791_v52  }
 0x12c   : > { %3218 = vperm.xlu1 %5640, %v6797_v19  }
 0x168   : > { %v6872_v47 = vpop.permute.xlu1 %2557 }
 0x169   : > { %v6880_v17 = vpop.permute.xlu0 %2474 }
 0x16a   : > { %v2528_v45 = vmul.f32 %v6910_v8, %v6880_v17  ;;  %v2530_v50 = vmul.f32 %v6924_v53, %v6880_v17 }
 0x16c   : > { %v6875_v12 = vpop.permute.xlu1 %2561  ;;  %v2576_v59 = vadd.f32 %v6872_v47, %v2528_v45 }
 0x16e   : > { %v6888_v2 = vpop.permute.xlu0 %2479 }
 0x171   : > { %v6882_v6 = vpop.permute.xlu1 %2609 }
 0x172   : > { %v6894_v23 = vpop.permute.xlu0 %2489 }
 0x176   : > { %v6890_v3 = vpop.permute.xlu1 %2484 }
 0x177   : > { %v6900_v39 = vpop.permute.xlu0 %2565 }
 0x17b   : > { %v6897_v16 = vpop.permute.xlu1 %2717 }
 0x17c   : > { %v6918_v36 = vpop.permute.xlu0 %2605  ;;  %v2768_v43 = vmul.f32 %v6916_v58, %v6897_v16 }
 0x17d   : > { %v2656_v61 = vmul.f32 %v6913_v9, %v6918_v36  ;;  %v2658_v49 = vmul.f32 %v6927_v57, %v6918_v36 }
 0x17f   : > { %v6903_v34 = vpop.permute.xlu1 %2721 }
 0x180   : > { %v1889_v27 = vpop.f32.mrb[0].mxu0  ;;  %v2778_v0 = vmul.f32 %v6934_v30, %v6903_v34 }
 0x181   : > { %v1932_v35 = vpop.f32.mrb[0].mxu1  ;;  %v1891_v18 = vpop.f32.mrb[1].mxu0 }
 0x182   : > { %v1934_v54 = vpop.f32.mrb[1].mxu1  ;;  %v1893_v56 = vpop.f32.mrb[2].mxu0 }
 0x183   : > { %v2039_v28 = vpack.c.bf16 %v1893_v56, %v1889_v27  ;;  %v1936_v32 = vpop.f32.mrb[2].mxu1  ;;  %v1895_v29 = vpop.f32.mrb[3].mxu0  ;;  %v2770_v27 = vmul.f32 %v6934_v30, %v6897_v16 }
 0x184   : > { %v2041_v11 = vpack.c.bf16 %v1936_v32, %v1932_v35  ;;  %v2040_v13 = vpack.c.bf16 %v1895_v29, %v1891_v18  ;;  %v1938_v46 = vpop.f32.mrb[3].mxu1  ;;  %v6929_v25 = vpop.permute.xlu1 %2569  ;;  %v5671_v35 = vld [vmem:[%s5928_s9 + $0x28] sm:$0x1f]  ;;  %v2578_v32 = vadd.f32 %v6872_v47, %v2530_v50  ;;  %v5672_v29 = vld [vmem:[%s5928_s9 + $0x38] sm:$0x1f] }
 0x185   : > { %v2042_v33 = vpack.c.bf16 %v1938_v46, %v1934_v54  ;;  %v6947_v18 = vrot.slane %v5671_v35, %v5997_v4  ;;  %v6950_v54 = vrot.slane %v5671_v35, %v5992_v63  ;;  %v6953_v56 = vrot.slane %v5671_v35, %v6000_v5 }
 0x186   : > { %2096 = vmatprep.subr.bf16.mxu0 %v2040_v13  ;;  %v6961_v13 = vrot.slane %v5672_v29, %v5992_v63 }
 0x187   : > { %2189 = vmatprep.subr.bf16.mxu1 %v2042_v33  ;;  %2097 = vmatpush1.bf16.msra.mxu0 %v2039_v28  ;;  %v2688_v28 = vadd.f32 %v2656_v61, %v2576_v59  ;;  %v2529_v46 = vmul.f32 %v6947_v18, %v6880_v17  ;;  %v2657_v33 = vmul.f32 %v6950_v54, %v6918_v36 }
 0x188   : > { %2190 = vmatpush1.bf16.msra.mxu1 %v2041_v11  ;;  %v6958_v11 = vrot.slane %v5672_v29, %v5997_v4  ;;  %v2537_v61 = vmul.f32 %v6947_v18, %v6888_v2  ;;  %v2665_v59 = vmul.f32 %v6950_v54, %v6882_v6 }
 0x18a   : > { %5261 = vmatmul.mubr.msk.bf16.vlgmr.msra.gmra.mrb[8].mxu0 %vm2077_vm0, %v5658_v40 }
 0x18b   : > { %5267 = vmatmul.mubr.msk.bf16.vlgmr.msra.gmra.mrb[8].mxu1 %vm2077_vm0, %v5658_v40  ;;  %2138 = vmatprep.mubr.bf16.mxu0 %v8326_v60 }
 0x18c   : > { %2231 = vmatprep.mubr.bf16.mxu1 %v8326_v60 }
 0x192   : > { %5262 = vmatmul.mubr.msk.bf16.gmra.mrb[12].mxu0 %vm2077_vm0, %v5659_v44 }
 0x193   : > { %5268 = vmatmul.mubr.msk.bf16.gmra.mrb[12].mxu1 %vm2077_vm0, %v5659_v44  ;;  %2148 = vmatprep.mubr.bf16.mxu0 %v8326_v60 }
 0x194   : > { %2241 = vmatprep.mubr.bf16.mxu1 %v8326_v60 }
 0x19a   : > { %5263 = vmatmul.mubr.msk.bf16.gmra.mrb[16].mxu0 %vm2077_vm0, %v5660_v51 }
 0x19b   : > { %5269 = vmatmul.mubr.msk.bf16.gmra.mrb[16].mxu1 %vm2077_vm0, %v5660_v51  ;;  %2158 = vmatprep.mubr.bf16.mxu0 %v8326_v60 }
 0x19c   : > { %2251 = vmatprep.mubr.bf16.mxu1 %v8326_v60 }
 0x1a2   : > { %5264 = vmatmul.mubr.msk.bf16.gmra.mrb[20].mxu0 %vm2077_vm0, %v5661_v55 }
 0x1a3   : > { %5270 = vmatmul.mubr.msk.bf16.gmra.mrb[20].mxu1 %vm2077_vm0, %v5661_v55  ;;  %2168 = vmatprep.mubr.bf16.mxu0 %v8326_v60 }
 0x1a4   : > { %2261 = vmatprep.mubr.bf16.mxu1 %v8326_v60 }
 0x1aa   : > { %5265 = vmatmul.mubr.msk.bf16.gmra.mrb[24].mxu0 %vm2077_vm0, %v5662_v26 }
 0x1ab   : > { %5271 = vmatmul.mubr.msk.bf16.gmra.mrb[24].mxu1 %vm2077_vm0, %v5662_v26  ;;  %2178 = vmatprep.mubr.bf16.mxu0 %v8326_v60 }
 0x1ac   : > { %2271 = vmatprep.mubr.bf16.mxu1 %v8326_v60 }
 0x1b2   : > { %5266 = vmatmul.mubr.msk.bf16.gmra.mrb[28].mxu0 %vm2077_vm0, %v5663_v24 }
 0x1b3   : > { %5272 = vmatmul.mubr.msk.bf16.gmra.mrb[28].mxu1 %vm2077_vm0, %v5663_v24  ;;  %2314 = vmatprep.mubr.bf16.mxu0 %v8326_v60 }
 0x1b4   : > { %2407 = vmatprep.mubr.bf16.mxu1 %v8326_v60 }
 0x1c0   : > { %v1975_v14 = vpop.f32.mrb[4].mxu0 }
 0x1c1   : > { %v2018_v42 = vpop.f32.mrb[4].mxu1  ;;  %v1977_v62 = vpop.f32.mrb[5].mxu0 }
 0x1c2   : > { %v2020_v20 = vpop.f32.mrb[5].mxu1  ;;  %v1979_v22 = vpop.f32.mrb[6].mxu0 }
 0x1c3   : > { %v2043_v38 = vpack.c.bf16 %v1979_v22, %v1975_v14  ;;  %v2022_v7 = vpop.f32.mrb[6].mxu1  ;;  %v1981_v31 = vpop.f32.mrb[7].mxu0  ;;  %v2664_v22 = vmul.f32 %v6913_v9, %v6882_v6 }
 0x1c4   : > { %v2045_v41 = vpack.c.bf16 %v2022_v7, %v2018_v42  ;;  %v2044_v15 = vpack.c.bf16 %v1981_v31, %v1977_v62  ;;  %v2024_v48 = vpop.f32.mrb[7].mxu1  ;;  %v6978_v14 = vpop.permute.xlu1 %2613  ;;  %v2577_v42 = vadd.f32 %v6872_v47, %v2529_v46  ;;  %v2776_v31 = vmul.f32 %v6916_v58, %v6903_v34 }
 0x1c5   : > { %v2046_v37 = vpack.c.bf16 %v2024_v48, %v2020_v20  ;;  %v2536_v20 = vmul.f32 %v6910_v8, %v6888_v2 }
 0x1c6   : > { %2282 = vmatprep.subr.bf16.mxu0 %v2044_v15  ;;  %v2689_v15 = vadd.f32 %v2657_v33, %v2577_v42 }
 0x1c7   : > { %2375 = vmatprep.subr.bf16.mxu1 %v2046_v37  ;;  %2283 = vmatpush1.bf16.msra.mxu0 %v2043_v38  ;;  %v2584_v48 = vadd.f32 %v6875_v12, %v2536_v20  ;;  %v2666_v37 = vmul.f32 %v6927_v57, %v6882_v6 }
 0x1c8   : > { %2376 = vmatpush1.bf16.msra.mxu1 %v2045_v41  ;;  %v2538_v41 = vmul.f32 %v6924_v53, %v6888_v2  ;;  %v7015_v46 = vpop.permute.xlu1 %2725 }
 0x1c9   : > { %v2696_v50 = vadd.f32 %v2664_v22, %v2584_v48  ;;  %v2784_v20 = vmul.f32 %v6916_v58, %v7015_v46  ;;  %v2786_v48 = vmul.f32 %v6934_v30, %v7015_v46 }
 0x1ca   : > { %5273 = vmatmul.mubr.msk.bf16.vlgmr.msra.gmra.mrb[32].mxu0 %vm2077_vm0, %v5658_v40  ;;  %v2586_v10 = vadd.f32 %v6875_v12, %v2538_v41  ;;  %v2674_v41 = vmul.f32 %v6927_v57, %v6978_v14 }
 0x1cb   : > { %5279 = vmatmul.mubr.msk.bf16.vlgmr.msra.gmra.mrb[32].mxu1 %vm2077_vm0, %v5658_v40  ;;  %2324 = vmatprep.mubr.bf16.mxu0 %v8326_v60  ;;  %v2769_v40 = vmul.f32 %v6953_v56, %v6897_v16  ;;  %v7017_v33 = vadd.f32 %v2776_v31, %v2696_v50  ;;  %v2546_v31 = vmul.f32 %v6924_v53, %v6890_v3  ;;  %v7048_v50 = vpop.permute.xlu0 %2617 }
 0x1cc   : > { %2417 = vmatprep.mubr.bf16.mxu1 %v8326_v60 }
 0x1d2   : > { %5274 = vmatmul.mubr.msk.bf16.gmra.mrb[36].mxu0 %vm2077_vm0, %v5659_v44 }
 0x1d3   : > { %5280 = vmatmul.mubr.msk.bf16.gmra.mrb[36].mxu1 %vm2077_vm0, %v5659_v44  ;;  %2334 = vmatprep.mubr.bf16.mxu0 %v8326_v60  ;;  %v6970_v44 = vrot.slane %v5672_v29, %v6000_v5  ;;  %v2667_v29 = vmul.f32 %v6961_v13, %v6882_v6 }
 0x1d4   : > { %2427 = vmatprep.mubr.bf16.mxu1 %v8326_v60 }
 0x1d5   : > { %v2771_v62 = vmul.f32 %v6970_v44, %v6897_v16 }
 0x1da   : > { %5275 = vmatmul.mubr.msk.bf16.gmra.mrb[40].mxu0 %vm2077_vm0, %v5660_v51 }
 0x1db   : > { %5281 = vmatmul.mubr.msk.bf16.gmra.mrb[40].mxu1 %vm2077_vm0, %v5660_v51  ;;  %2344 = vmatprep.mubr.bf16.mxu0 %v8326_v60  ;;  %v6972_v51 = vadd.f32 %v2768_v43, %v2688_v28  ;;  %v7004_v43 = vadd.f32 %v2769_v40, %v2689_v15  ;;  %v2698_v28 = vadd.f32 %v2666_v37, %v2586_v10 }
 0x1dc   : > { %2437 = vmatprep.mubr.bf16.mxu1 %v8326_v60  ;;  %v2545_v37 = vmul.f32 %v6947_v18, %v6890_v3 }
 0x1e2   : > { %5276 = vmatmul.mubr.msk.bf16.gmra.mrb[44].mxu0 %vm2077_vm0, %v5661_v55 }
 0x1e3   : > { %5282 = vmatmul.mubr.msk.bf16.gmra.mrb[44].mxu1 %vm2077_vm0, %v5661_v55  ;;  %2354 = vmatprep.mubr.bf16.mxu0 %v8326_v60  ;;  %v2690_v55 = vadd.f32 %v2658_v49, %v2578_v32  ;;  %v2777_v49 = vmul.f32 %v6953_v56, %v6903_v34  ;;  %v2585_v32 = vadd.f32 %v6875_v12, %v2537_v61 }
 0x1e4   : > { %2447 = vmatprep.mubr.bf16.mxu1 %v8326_v60  ;;  %v2594_v61 = vadd.f32 %v6900_v39, %v2546_v31  ;;  %v2554_v31 = vmul.f32 %v6924_v53, %v6894_v23  ;;  %v2681_v53 = vmul.f32 %v6950_v54, %v7048_v50 }
 0x1e5   : > { %v6987_v38 = vadd.f32 %v2770_v27, %v2690_v55  ;;  %v2539_v27 = vmul.f32 %v6958_v11, %v6888_v2  ;;  %v2779_v55 = vmul.f32 %v6970_v44, %v6903_v34  ;;  %v2697_v42 = vadd.f32 %v2665_v59, %v2585_v32 }
 0x1e6   : > { %v2785_v59 = vmul.f32 %v6953_v56, %v7015_v46  ;;  %v2787_v32 = vmul.f32 %v6970_v44, %v7015_v46 }
 0x1e7   : > { %v2587_v40 = vadd.f32 %v6875_v12, %v2539_v27  ;;  %v7035_v15 = vadd.f32 %v2777_v49, %v2697_v42  ;;  %v2593_v49 = vadd.f32 %v6900_v39, %v2545_v37  ;;  %v2547_v27 = vmul.f32 %v6958_v11, %v6890_v3 }
 0x1e8   : > { %v2680_v42 = vmul.f32 %v6913_v9, %v7048_v50 }
 0x1e9   : > { %v2699_v22 = vadd.f32 %v2667_v29, %v2587_v40  ;;  %v7057_v29 = vpop.permute.xlu1 %2729 }
 0x1ea   : > { %5277 = vmatmul.mubr.msk.bf16.gmra.mrb[48].mxu0 %vm2077_vm0, %v5662_v26 }
 0x1eb   : > { %5283 = vmatmul.mubr.msk.bf16.gmra.mrb[48].mxu1 %vm2077_vm0, %v5662_v26  ;;  %2364 = vmatprep.mubr.bf16.mxu0 %v8326_v60  ;;  %v2531_v26 = vmul.f32 %v6958_v11, %v6880_v17 }
 0x1ec   : > { %2457 = vmatprep.mubr.bf16.mxu1 %v8326_v60 }
 0x1ed   : > { %v2579_v7 = vadd.f32 %v6872_v47, %v2531_v26  ;;  %v2544_v26 = vmul.f32 %v6910_v8, %v6890_v3 }
 0x1f2   : > { %5278 = vmatmul.mubr.msk.bf16.gmra.mrb[52].mxu0 %vm2077_vm0, %v5663_v24 }
 0x1f3   : > { %5284 = vmatmul.mubr.msk.bf16.gmra.mrb[52].mxu1 %vm2077_vm0, %v5663_v24  ;;  %2977 = vmatprep.mubr.bf16.mxu0 %v8326_v60  ;;  %v2659_v24 = vmul.f32 %v6961_v13, %v6918_v36 }
 0x1f4   : > { %3030 = vmatprep.mubr.bf16.mxu1 %v8326_v60 }
 0x1f5   : > { %v2691_v45 = vadd.f32 %v2659_v24, %v2579_v7  ;;  %v7024_v24 = vadd.f32 %v2778_v0, %v2698_v28  ;;  %v2592_v7 = vadd.f32 %v6900_v39, %v2544_v26  ;;  %v2673_v0 = vmul.f32 %v6950_v54, %v6978_v14 }
 0x1f6   : > { %v2675_v28 = vmul.f32 %v6961_v13, %v6978_v14  ;;  %v2552_v26 = vmul.f32 %v6910_v8, %v6894_v23  ;;  %v2794_v8 = vmul.f32 %v6934_v30, %v7057_v29 }
 0x1f7   : > { %v7010_v35 = vadd.f32 %v2771_v62, %v2691_v45  ;;  %v2672_v62 = vmul.f32 %v6913_v9, %v6978_v14  ;;  %v7043_v45 = vadd.f32 %v2779_v55, %v2699_v22  ;;  %v2706_v55 = vadd.f32 %v2674_v41, %v2594_v61 }
 0x1f8   : > { %v2595_v22 = vadd.f32 %v6900_v39, %v2547_v27  ;;  %v2682_v41 = vmul.f32 %v6927_v57, %v7048_v50  ;;  %v2555_v57 = vmul.f32 %v6958_v11, %v6894_v23 }
 0x1f9   : > { %v2704_v10 = vadd.f32 %v2672_v62, %v2592_v7  ;;  %v2705_v62 = vadd.f32 %v2673_v0, %v2593_v49  ;;  %v2792_v7 = vmul.f32 %v6916_v58, %v7057_v29  ;;  %v7070_v37 = vadd.f32 %v2786_v48, %v2706_v55 }
 0x1fa   : > { %v2707_v0 = vadd.f32 %v2675_v28, %v2595_v22  ;;  %v2553_v58 = vmul.f32 %v6947_v18, %v6894_v23  ;;  %v2793_v48 = vmul.f32 %v6953_v56, %v7057_v29  ;;  %v2683_v18 = vmul.f32 %v6961_v13, %v7048_v50  ;;  %v5674_v13 = vld [vmem:[%s5928_s9 + $0x8] sm:$0x1f] }
 0x1fb   : > { %v7059_v40 = vadd.f32 %v2784_v20, %v2704_v10  ;;  %v2600_v20 = vadd.f32 %v6929_v25, %v2552_v26  ;;  %v7077_v9 = vadd.f32 %v2785_v59, %v2705_v62  ;;  %v2602_v10 = vadd.f32 %v6929_v25, %v2554_v31 }
 0x1fc   : > { %v7088_v30 = vadd.f32 %v2787_v32, %v2707_v0  ;;  %v2601_v49 = vadd.f32 %v6929_v25, %v2553_v58  ;;  %v2603_v54 = vadd.f32 %v6929_v25, %v2555_v57  ;;  %v2795_v56 = vmul.f32 %v6970_v44, %v7057_v29  ;;  %v5676_v44 = vld [vmem:[%s5928_s9 + $0x18] sm:$0x1f] }
 0x1fd   : > { %v2712_v61 = vadd.f32 %v2680_v42, %v2600_v20  ;;  %v2714_v59 = vadd.f32 %v2682_v41, %v2602_v10  ;;  %v5673_v42 = vld [vmem:[%s5928_s9] sm:$0x1f]  ;;  %v7110_v22 = vrot.slane %v5674_v13, %v5997_v4  ;;  %v7118_v20 = vrot.slane %v5676_v44, %v5997_v4 }
 0x1fe   : > { %v2713_v11 = vadd.f32 %v2681_v53, %v2601_v49  ;;  %v2715_v32 = vadd.f32 %v2683_v18, %v2603_v54  ;;  %v7106_v62 = vrot.slane %v5673_v42, %v5997_v4  ;;  %v7126_v0 = vrot.slane %v5673_v42, %v6000_v5 }
 0x1ff   : > { %v7093_v27 = vadd.f32 %v2792_v7, %v2712_v61  ;;  %v7098_v28 = vadd.f32 %v2794_v8, %v2714_v59  ;;  %v5675_v7 = vld [vmem:[%s5928_s9 + $0x10] sm:$0x1f]  ;;  %v7123_v8 = vrot.slane %v5673_v42, %v5992_v63  ;;  %v2525_v10 = vmul.f32 %v7110_v22, %v6880_v17  ;;  %s5796_s9 = smov 64  }
 0x200   : > { %v7100_v55 = vadd.f32 %v2793_v48, %v2713_v11  ;;  %v7102_v26 = vadd.f32 %v2795_v56, %v2715_v32  ;;  %v7114_v31 = vrot.slane %v5675_v7, %v5997_v4  ;;  %v2524_v41 = vmul.f32 %v7106_v62, %v6880_v17 }
 0x201   : > { %8368 = vst [vmem:[#allocation8_spill] sm:$0xff] %v7093_v27  ;;  %8369 = vst [vmem:[#allocation9_spill] sm:$0xff] %v7098_v28  ;;  %v7133_v61 = vrot.slane %v5674_v13, %v5992_v63  ;;  %v2527_v4 = vmul.f32 %v7118_v20, %v6880_v17  ;;  %v2652_v48 = vmul.f32 %v7123_v8, %v6918_v36 }
 0x202   : > { %8370 = vst [vmem:[#allocation10_spill] sm:$0xff] %v7100_v55  ;;  %8371 = vst [vmem:[#allocation11_spill] sm:$0xff] %v7102_v26  ;;  %v2526_v58 = vmul.f32 %v7114_v31, %v6880_v17  ;;  %v2572_v53 = vadd.f32 %v6872_v47, %v2524_v41  ;;  %v7141_v57 = vrot.slane %v5675_v7, %v5992_v63 }
 0x203   : > { %v7144_v59 = vrot.slane %v5676_v44, %v5992_v63  ;;  %v2532_v49 = vmul.f32 %v7106_v62, %v6888_v2  ;;  %v2764_v18 = vmul.f32 %v7126_v0, %v6897_v16  ;;  %v7151_v54 = vrot.slane %v5675_v7, %v6000_v5 }
 0x204   : > { %v2573_v17 = vadd.f32 %v6872_v47, %v2525_v10  ;;  %v2534_v56 = vmul.f32 %v7114_v31, %v6888_v2  ;;  %v2574_v11 = vadd.f32 %v6872_v47, %v2526_v58  ;;  %v2653_v63 = vmul.f32 %v7133_v61, %v6918_v36 }
 0x205   : > { %v7160_v32 = vrot.slane %v5674_v13, %v6000_v5  ;;  %v2575_v42 = vadd.f32 %v6872_v47, %v2527_v4  ;;  %v2684_v41 = vadd.f32 %v2652_v48, %v2572_v53  ;;  %v2654_v7 = vmul.f32 %v7141_v57, %v6918_v36 }
 0x206   : > { %v2655_v10 = vmul.f32 %v7144_v59, %v6918_v36  ;;  %v7168_v60 = vrot.slane %v5676_v44, %v6000_v5  ;;  %v2580_v58 = vadd.f32 %v6875_v12, %v2532_v49  ;;  %v2660_v19 = vmul.f32 %v7123_v8, %v6882_v6 }
 0x207   : > { %v2582_v13 = vadd.f32 %v6875_v12, %v2534_v56  ;;  %v2662_v47 = vmul.f32 %v7141_v57, %v6882_v6  ;;  %v2533_v4 = vmul.f32 %v7110_v22, %v6888_v2  ;;  %v2535_v53 = vmul.f32 %v7118_v20, %v6888_v2 }
 0x208   : > { %v2766_v5 = vmul.f32 %v7151_v54, %v6897_v16  ;;  %v2685_v36 = vadd.f32 %v2653_v63, %v2573_v17  ;;  %v2765_v44 = vmul.f32 %v7160_v32, %v6897_v16  ;;  %v2540_v48 = vmul.f32 %v7106_v62, %v6890_v3 }
 0x209   : > { %v2796_v49 = vadd.f32 %v2764_v18, %v2684_v41  ;;  %v2686_v56 = vadd.f32 %v2654_v7, %v2574_v11  ;;  %v2687_v52 = vadd.f32 %v2655_v10, %v2575_v42  ;;  %v2767_v26 = vmul.f32 %v7168_v60, %v6897_v16 }
 0x20a   : > { %v2692_v55 = vadd.f32 %v2660_v19, %v2580_v58  ;;  %v2772_v2 = vmul.f32 %v7126_v0, %v6903_v34  ;;  %v2774_v28 = vmul.f32 %v7151_v54, %v6903_v34  ;;  %v2661_v17 = vmul.f32 %v7133_v61, %v6882_v6 }
 0x20b   : > { %v2694_v63 = vadd.f32 %v2662_v47, %v2582_v13  ;;  %v2581_v27 = vadd.f32 %v6875_v12, %v2533_v4  ;;  %v2583_v18 = vadd.f32 %v6875_v12, %v2535_v53  ;;  %v2663_v11 = vmul.f32 %v7144_v59, %v6882_v6 }
 0x20c   : > { %v2797_v42 = vadd.f32 %v2765_v44, %v2685_v36  ;;  %v2588_v19 = vadd.f32 %v6900_v39, %v2540_v48  ;;  %v2668_v16 = vmul.f32 %v7123_v8, %v6978_v14  ;;  %v2542_v41 = vmul.f32 %v7114_v31, %v6890_v3 }
 0x20d   : > { %v2798_v7 = vadd.f32 %v2766_v5, %v2686_v56  ;;  %v2799_v10 = vadd.f32 %v2767_v26, %v2687_v52  ;;  %v2773_v58 = vmul.f32 %v7160_v32, %v6903_v34  ;;  %v2541_v12 = vmul.f32 %v7110_v22, %v6890_v3 }
 0x20e   : > { %v2804_v13 = vadd.f32 %v2772_v2, %v2692_v55  ;;  %v2775_v6 = vmul.f32 %v7168_v60, %v6903_v34  ;;  %v2543_v47 = vmul.f32 %v7118_v20, %v6890_v3  ;;  %v2548_v4 = vmul.f32 %v7106_v62, %v6894_v23 }
 0x20f   : > { %v2806_v53 = vadd.f32 %v2774_v28, %v2694_v63  ;;  %v2693_v36 = vadd.f32 %v2661_v17, %v2581_v27  ;;  %v2695_v5 = vadd.f32 %v2663_v11, %v2583_v18  ;;  %v2780_v52 = vmul.f32 %v7126_v0, %v7015_v46 }
 0x210   : > { %v2700_v26 = vadd.f32 %v2668_v16, %v2588_v19  ;;  %v2590_v44 = vadd.f32 %v6900_v39, %v2542_v41  ;;  %v2670_v55 = vmul.f32 %v7141_v57, %v6978_v14  ;;  %v2550_v34 = vmul.f32 %v7114_v31, %v6894_v23 }
 0x211   : > { %v2782_v3 = vmul.f32 %v7151_v54, %v7015_v46  ;;  %v2589_v62 = vadd.f32 %v6900_v39, %v2541_v12  ;;  %v2669_v27 = vmul.f32 %v7133_v61, %v6978_v14  ;;  %v2549_v28 = vmul.f32 %v7110_v22, %v6894_v23 }
 0x212   : > { %v2591_v48 = vadd.f32 %v6900_v39, %v2543_v47  ;;  %v2671_v56 = vmul.f32 %v7144_v59, %v6978_v14  ;;  %v2596_v2 = vadd.f32 %v6929_v25, %v2548_v4  ;;  %v2676_v31 = vmul.f32 %v7123_v8, %v7048_v50 }
 0x213   : > { %v2805_v17 = vadd.f32 %v2773_v58, %v2693_v36  ;;  %v2807_v63 = vadd.f32 %v2775_v6, %v2695_v5  ;;  %v2781_v18 = vmul.f32 %v7160_v32, %v7015_v46  ;;  %v2551_v11 = vmul.f32 %v7118_v20, %v6894_v23 }
 0x214   : > { %v2812_v19 = vadd.f32 %v2780_v52, %v2700_v26  ;;  %v2702_v22 = vadd.f32 %v2670_v55, %v2590_v44  ;;  %v2598_v39 = vadd.f32 %v6929_v25, %v2550_v34  ;;  %v2678_v14 = vmul.f32 %v7141_v57, %v7048_v50 }
 0x215   : > { %v2701_v16 = vadd.f32 %v2669_v27, %v2589_v62  ;;  %v2783_v41 = vmul.f32 %v7168_v60, %v7015_v46  ;;  %v2597_v8 = vadd.f32 %v6929_v25, %v2549_v28  ;;  %v2677_v58 = vmul.f32 %v7133_v61, %v7048_v50 }
 0x216   : > { %v2703_v6 = vadd.f32 %v2671_v56, %v2591_v48  ;;  %v2708_v47 = vadd.f32 %v2676_v31, %v2596_v2  ;;  %v2788_v23 = vmul.f32 %v7126_v0, %v7057_v29  ;;  %v2790_v20 = vmul.f32 %v7151_v54, %v7057_v29 }
 0x217   : > { %v2789_v46 = vmul.f32 %v7160_v32, %v7057_v29  ;;  %v2599_v5 = vadd.f32 %v6929_v25, %v2551_v11  ;;  %v2679_v61 = vmul.f32 %v7144_v59, %v7048_v50  ;;  %v2710_v55 = vadd.f32 %v2678_v14, %v2598_v39 }
 0x218   : > { %v2791_v54 = vmul.f32 %v7168_v60, %v7057_v29  ;;  %v2709_v27 = vadd.f32 %v2677_v58, %v2597_v8  ;;  %v2814_v2 = vadd.f32 %v2782_v3, %v2702_v22  ;;  %v2813_v31 = vadd.f32 %v2781_v18, %v2701_v16 }
 0x219   : > { %v2815_v39 = vadd.f32 %v2783_v41, %v2703_v6  ;;  %v2822_v58 = vadd.f32 %v2790_v20, %v2710_v55 }
 0x25d   : > { %v2130_v12 = vpop.f32.mrb[8].mxu0 }
 0x25e   : > { %v7249_v4 = vadd.f32 %v2796_v49, %v2130_v12  ;;  %v2223_v57 = vpop.f32.mrb[8].mxu1  ;;  %v2132_v36 = vpop.f32.mrb[9].mxu0  ;;  %v2821_v12 = vadd.f32 %v2789_v46, %v2709_v27 }
 0x25f   : > { %v7256_v52 = vadd.f32 %v2798_v7, %v2223_v57  ;;  %v7258_v26 = vadd.f32 %v2797_v42, %v2132_v36  ;;  %v2225_v0 = vpop.f32.mrb[9].mxu1  ;;  %v2134_v44 = vpop.f32.mrb[10].mxu0 }
 0x260   : > { %v2864_v49 = vmax.f32 %v7249_v4, 0.0  ;;  %v7263_v34 = vadd.f32 %v2799_v10, %v2225_v0  ;;  %v7265_v32 = vadd.f32 %v2804_v13, %v2134_v44  ;;  %v2227_v25 = vpop.f32.mrb[10].mxu1  ;;  %v2136_v62 = vpop.f32.mrb[11].mxu0  ;;  %v2711_v13 = vadd.f32 %v2679_v61, %v2599_v5 }
 0x261   : > { %v2866_v50 = vmax.f32 %v7256_v52, 0.0  ;;  %v2865_v59 = vmax.f32 %v7258_v26, 0.0  ;;  %v7269_v42 = vadd.f32 %v2806_v53, %v2227_v25  ;;  %v7271_v7 = vadd.f32 %v2805_v17, %v2136_v62  ;;  %v2229_v28 = vpop.f32.mrb[11].mxu1 }
 0x262   : > { %v2867_v60 = vmax.f32 %v7263_v34, 0.0  ;;  %v2872_v29 = vmax.f32 %v7265_v32, 0.0  ;;  %v7275_v10 = vadd.f32 %v2807_v63, %v2229_v28  ;;  %v2820_v17 = vadd.f32 %v2788_v23, %v2708_v47 }
 0x263   : > { %v2874_v48 = vmax.f32 %v7269_v42, 0.0  ;;  %v2873_v56 = vmax.f32 %v7271_v7, 0.0  ;;  %v2823_v61 = vadd.f32 %v2791_v54, %v2711_v13 }
 0x264   : > { %v2896_v11 = vpack.c.bf16 %v2872_v29, %v2864_v49  ;;  %v2875_v53 = vmax.f32 %v7275_v10, 0.0 }
 0x265   : > { %v2898_v14 = vpack.c.bf16 %v2874_v48, %v2866_v50  ;;  %v2140_v8 = vpop.f32.mrb[12].mxu0  ;;  %v2897_v57 = vpack.c.bf16 %v2873_v56, %v2865_v59  ;;  %v8372_v48 = vmov 0  }
 0x266   : > { %v7280_v36 = vadd.f32 %v2812_v19, %v2140_v8  ;;  %v2233_v63 = vpop.f32.mrb[12].mxu1  ;;  %v2142_v5 = vpop.f32.mrb[13].mxu0  ;;  %v2899_v0 = vpack.c.bf16 %v2875_v53, %v2867_v60 }
 0x267   : > { %v7282_v44 = vadd.f32 %v2814_v2, %v2233_v63  ;;  %v7284_v3 = vadd.f32 %v2813_v31, %v2142_v5  ;;  %v2235_v18 = vpop.f32.mrb[13].mxu1  ;;  %v2144_v22 = vpop.f32.mrb[14].mxu0  ;;  %2945 = vmatprep.subr.bf16.mxu0 %v2897_v57 }
 0x268   : > { %v2880_v16 = vmax.f32 %v7280_v36, 0.0  ;;  %v7287_v41 = vadd.f32 %v2815_v39, %v2235_v18  ;;  %v7289_v6 = vadd.f32 %v2820_v17, %v2144_v22  ;;  %v2237_v47 = vpop.f32.mrb[14].mxu1  ;;  %v2146_v19 = vpop.f32.mrb[15].mxu0  ;;  %2998 = vmatprep.subr.bf16.mxu1 %v2899_v0  ;;  %2946 = vmatpush1.bf16.msra.mxu0 %v2896_v11 }
 0x269   : > { %v2882_v23 = vmax.f32 %v7282_v44, 0.0  ;;  %v2881_v20 = vmax.f32 %v7284_v3, 0.0  ;;  %v7293_v46 = vadd.f32 %v2822_v58, %v2237_v47  ;;  %v7295_v55 = vadd.f32 %v2821_v12, %v2146_v19  ;;  %v2239_v54 = vpop.f32.mrb[15].mxu1  ;;  %2999 = vmatpush1.bf16.msra.mxu1 %v2898_v14 }
 0x26a   : > { %v2883_v49 = vmax.f32 %v7287_v41, 0.0  ;;  %v2888_v25 = vmax.f32 %v7289_v6, 0.0  ;;  %v7299_v62 = vadd.f32 %v2823_v61, %v2239_v54 }
 0x26b   : > { %v2890_v27 = vmax.f32 %v7293_v46, 0.0  ;;  %v2889_v50 = vmax.f32 %v7295_v55, 0.0 }
 0x26c   : > { %v2904_v59 = vpack.c.bf16 %v2888_v25, %v2880_v16  ;;  %v2891_v28 = vmax.f32 %v7299_v62, 0.0 }
 0x26d   : > { %v2906_v60 = vpack.c.bf16 %v2890_v27, %v2882_v23  ;;  %v2905_v29 = vpack.c.bf16 %v2889_v50, %v2881_v20 }
 0x26e   : > { %v2907_v13 = vpack.c.bf16 %v2891_v28, %v2883_v49  ;;  %v8373_v28 = vld [vmem:[#allocation8_spill] sm:$0xff] }
 0x26f   : > { %2947 = vmatprep.subr.bf16.mxu0 %v2905_v29 }
 0x270   : > { %3000 = vmatprep.subr.bf16.mxu1 %v2907_v13  ;;  %2948 = vmatpush1.bf16.msra.mxu0 %v2904_v59  ;;  %v8374_v13 = vld [vmem:[#allocation9_spill] sm:$0xff] }
 0x271   : > { %3001 = vmatpush1.bf16.msra.mxu1 %v2906_v60 }
 0x273   : > { %5287 = vmatmul.mubr.msk.bf16.vlgmr.msra.gmra.mrb[56].mxu0 %vm2938_vm1, %v6811_v21 }
 0x274   : > { %5289 = vmatmul.mubr.msk.bf16.vlgmr.msra.gmra.mrb[56].mxu1 %vm2938_vm1, %v6811_v21  ;;  %2987 = vmatprep.mubr.bf16.mxu0 %v8372_v48 }
 0x275   : > { %3040 = vmatprep.mubr.bf16.mxu1 %v8372_v48 }
 0x27b   : > { %5288 = vmatmul.mubr.msk.bf16.gmra.mrb[60].mxu0 %vm2938_vm1, %v6816_v1 }
 0x27c   : > { %5290 = vmatmul.mubr.msk.bf16.gmra.mrb[60].mxu1 %vm2938_vm1, %v6816_v1  ;;  %3083 = vmatprep.mubr.bf16.mxu0 %v8372_v48 }
 0x27d   : > { %3136 = vmatprep.mubr.bf16.mxu1 %v8372_v48 }
 0x29d   : > { %v2316_v56 = vpop.f32.mrb[32].mxu0 }
 0x29e   : > { %v7317_v2 = vadd.f32 %v6972_v51, %v2316_v56  ;;  %v2409_v31 = vpop.f32.mrb[32].mxu1  ;;  %v2318_v11 = vpop.f32.mrb[33].mxu0 }
 0x29f   : > { %v7320_v53 = vadd.f32 %v6987_v38, %v2409_v31  ;;  %v7323_v39 = vadd.f32 %v7004_v43, %v2318_v11  ;;  %v2411_v17 = vpop.f32.mrb[33].mxu1  ;;  %v2320_v14 = vpop.f32.mrb[34].mxu0 }
 0x2a0   : > { %v7326_v8 = vadd.f32 %v7010_v35, %v2411_v17  ;;  %v7329_v58 = vadd.f32 %v7017_v33, %v2320_v14  ;;  %v2413_v12 = vpop.f32.mrb[34].mxu1  ;;  %v2322_v57 = vpop.f32.mrb[35].mxu0  ;;  %v2868_v43 = vmax.f32 %v7317_v2, 0.0  ;;  %v8376_v17 = vld [vmem:[#allocation11_spill] sm:$0xff] }
 0x2a1   : > { %v7332_v51 = vadd.f32 %v7024_v24, %v2413_v12  ;;  %v7335_v63 = vadd.f32 %v7035_v15, %v2322_v57  ;;  %v2415_v38 = vpop.f32.mrb[35].mxu1  ;;  %v2870_v35 = vmax.f32 %v7320_v53, 0.0  ;;  %v2869_v33 = vmax.f32 %v7323_v39, 0.0 }
 0x2a2   : > { %v2876_v5 = vmax.f32 %v7329_v58, 0.0  ;;  %v7340_v61 = vadd.f32 %v7043_v45, %v2415_v38  ;;  %v2871_v18 = vmax.f32 %v7326_v8, 0.0 }
 0x2a3   : > { %v2878_v0 = vmax.f32 %v7332_v51, 0.0  ;;  %v2877_v24 = vmax.f32 %v7335_v63, 0.0 }
 0x2a4   : > { %v2900_v15 = vpack.c.bf16 %v2876_v5, %v2868_v43  ;;  %v2879_v22 = vmax.f32 %v7340_v61, 0.0 }
 0x2a5   : > { %v2902_v16 = vpack.c.bf16 %v2878_v0, %v2870_v35  ;;  %v2326_v47 = vpop.f32.mrb[36].mxu0  ;;  %v2901_v19 = vpack.c.bf16 %v2877_v24, %v2869_v33 }
 0x2a6   : > { %v7349_v23 = vadd.f32 %v7059_v40, %v2326_v47  ;;  %v2419_v45 = vpop.f32.mrb[36].mxu1  ;;  %v2328_v20 = vpop.f32.mrb[37].mxu0  ;;  %v2903_v54 = vpack.c.bf16 %v2879_v22, %v2871_v18  ;;  %v7395_v22 = vld [vmem:[%s8312_s5 + $0x8] sm:$0xff]  ;;  %v8378_v47 = vld [vmem:[#allocation6_spill] sm:$0xff] }
 0x2a7   : > { %v7352_v49 = vadd.f32 %v7070_v37, %v2419_v45  ;;  %v7355_v25 = vadd.f32 %v7077_v9, %v2328_v20  ;;  %v2421_v27 = vpop.f32.mrb[37].mxu1  ;;  %v2330_v50 = vpop.f32.mrb[38].mxu0  ;;  %3051 = vmatprep.subr.bf16.mxu0 %v2901_v19  ;;  %v8375_v37 = vld [vmem:[#allocation10_spill] sm:$0xff]  ;;  %8377 = vst [vmem:[#allocation8_spill] sm:$0xff] %v7395_v22  ;;  %v8379_v19 = vld [vmem:[#allocation7_spill] sm:$0xff]  ;;  %v5793_v45 = vmov 7  }
 0x2a8   : > { %v7358_v59 = vadd.f32 %v7088_v30, %v2421_v27  ;;  %v7361_v60 = vadd.f32 %v8373_v28, %v2330_v50  ;;  %v2423_v40 = vpop.f32.mrb[38].mxu1  ;;  %3104 = vmatprep.subr.bf16.mxu1 %v2903_v54  ;;  %v2332_v29 = vpop.f32.mrb[39].mxu0  ;;  %3052 = vmatpush1.bf16.msra.mxu0 %v2900_v15  ;;  %v2884_v11 = vmax.f32 %v7349_v23, 0.0  ;;  %v5791_v15 = vmov 4   ;;  %v7415_v20 = vld [vmem:[%s8312_s5 + $0x10] sm:$0xff] }
 0x2a9   : > { %v7364_v56 = vadd.f32 %v8374_v13, %v2423_v40  ;;  %v7367_v31 = vadd.f32 %v8375_v37, %v2332_v29  ;;  %v2425_v9 = vpop.f32.mrb[39].mxu1  ;;  %3105 = vmatpush1.bf16.msra.mxu1 %v2902_v16  ;;  %v2886_v12 = vmax.f32 %v7352_v49, 0.0  ;;  %v2885_v57 = vmax.f32 %v7355_v25, 0.0  ;;  %5643 = vset.pattern.permute.xlu1 %v5791_v15  ;;  %v7401_v16 = vld [vmem:[%s8312_s5] sm:$0xff]  ;;  %8380 = vst [vmem:[#allocation9_spill] sm:$0xff] %v7415_v20  ;;  %v7430_v27 = vpop.permute.xlu0 %2913 }
 0x2aa   : > { %v2892_v30 = vmax.f32 %v7361_v60, 0.0  ;;  %v7372_v14 = vadd.f32 %v8376_v17, %v2425_v9  ;;  %v2887_v5 = vmax.f32 %v7358_v59, 0.0  ;;  %5642 = vset.pattern.permute.xlu0 %v5791_v15  ;;  %3512 = vperm.xlu1 %5643, %v7395_v22   ;;  %v5794_v54 = vmov 10  }
 0x2ab   : > { %v2894_v38 = vmax.f32 %v7364_v56, 0.0  ;;  %v2893_v43 = vmax.f32 %v7367_v31, 0.0  ;;  %3508 = vperm.xlu0 %5642, %v7401_v16  }
 0x2ac   : > { %v2908_v35 = vpack.c.bf16 %v2892_v30, %v2884_v11  ;;  %v2895_v33 = vmax.f32 %v7372_v14, 0.0 }
 0x2ad   : > { %v2910_v0 = vpack.c.bf16 %v2894_v38, %v2886_v12  ;;  %v2909_v24 = vpack.c.bf16 %v2893_v43, %v2885_v57 }
 0x2ae   : > { %v2911_v18 = vpack.c.bf16 %v2895_v33, %v2887_v5  ;;  %3516 = vperm.xlu1 %5643, %v8378_v47  }
 0x2af   : > { %3053 = vmatprep.subr.bf16.mxu0 %v2909_v24  ;;  %3520 = vperm.xlu0 %5642, %v8379_v19  }
 0x2b0   : > { %3106 = vmatprep.subr.bf16.mxu1 %v2911_v18  ;;  %3054 = vmatpush1.bf16.msra.mxu0 %v2908_v35 }
 0x2b1   : > { %3107 = vmatpush1.bf16.msra.mxu1 %v2910_v0 }
 0x2b2   : > { %3623 = vrot.lane.b32.xlu1 %v6811_v21, %s5792_s13 }
 0x2b3   : > { %5291 = vmatmul.mubr.msk.bf16.vlgmr.msra.gmra.mrb[64].mxu0 %vm2938_vm1, %v6811_v21  ;;  %3625 = vrot.lane.b32.xlu0 %v6816_v1, %s5792_s13 }
 0x2b4   : > { %5293 = vmatmul.mubr.msk.bf16.vlgmr.msra.gmra.mrb[64].mxu1 %vm2938_vm1, %v6811_v21  ;;  %3093 = vmatprep.mubr.bf16.mxu0 %v8372_v48  ;;  %v7422_v21 = vld [vmem:[%s8312_s5 + $0x18] sm:$0xff] }
 0x2b5   : > { %3146 = vmatprep.mubr.bf16.mxu1 %v8372_v48  ;;  %5644 = vset.pattern.permute.xlu1 %v5793_v45  ;;  %8381 = vst [vmem:[#allocation10_spill] sm:$0xff] %v7422_v21 }
 0x2b6   : > { %5645 = vset.pattern.permute.xlu0 %v5793_v45  ;;  %3608 = vperm.xlu1 %5644, %v7401_v16  }
 0x2b7   : > { %3612 = vperm.xlu0 %5645, %v7395_v22  }
 0x2ba   : > { %3616 = vperm.xlu1 %5644, %v7415_v20  }
 0x2bb   : > { %5292 = vmatmul.mubr.msk.bf16.gmra.mrb[68].mxu0 %vm2938_vm1, %v6816_v1  ;;  %5646 = vset.pattern.permute.xlu0 %v5794_v54 }
 0x2bc   : > { %5294 = vmatmul.mubr.msk.bf16.gmra.mrb[68].mxu1 %vm2938_vm1, %v6816_v1  ;;  %3263 = vmatprep.mubr.bf16.mxu0 %v8372_v48  ;;  %v7428_v1 = vpop.permute.xlu1 %2917 }
 0x2bd   : > { %3316 = vmatprep.mubr.bf16.mxu1 %v8372_v48  ;;  %3894 = vperm.xlu0 %5646, %v7401_v16  }
 0x2be   : > { %3620 = vperm.xlu1 %5644, %v7422_v21  }
 0x2c0   : > { %v7440_v45 = vpop.permute.xlu1 %2921 }
 0x2c1   : > { %3906 = vperm.xlu0 %5646, %v7422_v21  }
 0x2c2   : > { %5647 = vset.pattern.permute.xlu1 %v5794_v54 }
 0x2c3   : > { %3898 = vperm.xlu1 %5647, %v7395_v22  }
 0x2c7   : > { %3902 = vperm.xlu1 %5647, %v7415_v20  }
 0x346   : > { %v2979_v50 = vpop.f32.mrb[56].mxu0 }
 0x347   : > { %v2980_v28 = vadd.f32 %v2979_v50, %v7430_v27  ;;  %v3032_v40 = vpop.f32.mrb[56].mxu1  ;;  %v2981_v29 = vpop.f32.mrb[57].mxu0 }
 0x348   : > { %v3033_v13 = vadd.f32 %v3032_v40, %v7430_v27  ;;  %v2982_v37 = vadd.f32 %v2981_v29, %v7430_v27  ;;  %v3034_v9 = vpop.f32.mrb[57].mxu1  ;;  %v2983_v11 = vpop.f32.mrb[58].mxu0 }
 0x349   : > { %v3157_v30 = vmax.f32 %v2980_v28, 0.0  ;;  %v3035_v17 = vadd.f32 %v3034_v9, %v7430_v27  ;;  %v2984_v12 = vadd.f32 %v2983_v11, %v7428_v1  ;;  %v3036_v57 = vpop.f32.mrb[58].mxu1  ;;  %v2985_v38 = vpop.f32.mrb[59].mxu0 }
 0x34a   : > { %v3159_v43 = vmax.f32 %v3033_v13, 0.0  ;;  %v3158_v5 = vmax.f32 %v2982_v37, 0.0  ;;  %v3037_v35 = vadd.f32 %v3036_v57, %v7428_v1  ;;  %v2986_v33 = vadd.f32 %v2985_v38, %v7428_v1  ;;  %v3038_v0 = vpop.f32.mrb[59].mxu1  ;;  %v7442_v28 = vpop.permute.xlu0 %2925 }
 0x34b   : > { %v3160_v24 = vmax.f32 %v3035_v17, 0.0  ;;  %v3165_v18 = vmax.f32 %v2984_v12, 0.0  ;;  %v3039_v15 = vadd.f32 %v3038_v0, %v7428_v1 }
 0x34c   : > { %v3167_v47 = vmax.f32 %v3037_v35, 0.0  ;;  %v3166_v19 = vmax.f32 %v2986_v33, 0.0 }
 0x34d   : > { %v3189_v54 = vpack.c.bf16 %v3165_v18, %v3157_v30  ;;  %v3168_v50 = vmax.f32 %v3039_v15, 0.0 }
 0x34e   : > { %v3191_v40 = vpack.c.bf16 %v3167_v47, %v3159_v43  ;;  %v3190_v29 = vpack.c.bf16 %v3166_v19, %v3158_v5  ;;  %v2989_v13 = vpop.f32.mrb[60].mxu0 }
 0x34f   : > { %v3192_v37 = vpack.c.bf16 %v3168_v50, %v3160_v24  ;;  %v2990_v9 = vadd.f32 %v2989_v13, %v7440_v45  ;;  %v3042_v11 = vpop.f32.mrb[60].mxu1  ;;  %v2991_v57 = vpop.f32.mrb[61].mxu0 }
 0x350   : > { %v3043_v17 = vadd.f32 %v3042_v11, %v7440_v45  ;;  %v2992_v12 = vadd.f32 %v2991_v57, %v7440_v45  ;;  %v3044_v38 = vpop.f32.mrb[61].mxu1  ;;  %v2993_v35 = vpop.f32.mrb[62].mxu0  ;;  %3231 = vmatprep.subr.bf16.mxu0 %v3190_v29 }
 0x351   : > { %v3173_v33 = vmax.f32 %v2990_v9, 0.0  ;;  %v3045_v30 = vadd.f32 %v3044_v38, %v7440_v45  ;;  %v2994_v0 = vadd.f32 %v2993_v35, %v7442_v28  ;;  %v3046_v43 = vpop.f32.mrb[62].mxu1  ;;  %v2995_v5 = vpop.f32.mrb[63].mxu0  ;;  %3284 = vmatprep.subr.bf16.mxu1 %v3192_v37  ;;  %3232 = vmatpush1.bf16.msra.mxu0 %v3189_v54 }
 0x352   : > { %v3175_v24 = vmax.f32 %v3043_v17, 0.0  ;;  %v3174_v18 = vmax.f32 %v2992_v12, 0.0  ;;  %v3047_v15 = vadd.f32 %v3046_v43, %v7442_v28  ;;  %v2996_v47 = vadd.f32 %v2995_v5, %v7442_v28  ;;  %v3048_v19 = vpop.f32.mrb[63].mxu1  ;;  %3285 = vmatpush1.bf16.msra.mxu1 %v3191_v40  ;;  %v7452_v54 = vpop.permute.xlu1 %3221 }
 0x353   : > { %v3176_v50 = vmax.f32 %v3045_v30, 0.0  ;;  %v3181_v13 = vmax.f32 %v2994_v0, 0.0  ;;  %v3049_v29 = vadd.f32 %v3048_v19, %v7442_v28  ;;  %v7460_v40 = vpop.permute.xlu0 %3223 }
 0x354   : > { %v3183_v9 = vmax.f32 %v3047_v15, 0.0  ;;  %v3182_v11 = vmax.f32 %v2996_v47, 0.0 }
 0x355   : > { %v3197_v57 = vpack.c.bf16 %v3181_v13, %v3173_v33  ;;  %v3184_v38 = vmax.f32 %v3049_v29, 0.0 }
 0x356   : > { %v3199_v35 = vpack.c.bf16 %v3183_v9, %v3175_v24  ;;  %v3198_v21 = vpack.c.bf16 %v3182_v11, %v3174_v18 }
 0x357   : > { %v3200_v37 = vpack.c.bf16 %v3184_v38, %v3176_v50 }
 0x358   : > { %3233 = vmatprep.subr.bf16.mxu0 %v3198_v21 }
 0x359   : > { %3286 = vmatprep.subr.bf16.mxu1 %v3200_v37  ;;  %3234 = vmatpush1.bf16.msra.mxu0 %v3197_v57 }
 0x35a   : > { %3287 = vmatpush1.bf16.msra.mxu1 %v3199_v35 }
 0x35c   : > { %5295 = vmatmul.mubr.msk.bf16.vlgmr.msra.gmra.mrb[16].mxu0 %vm2938_vm1, %v7452_v54 }
 0x35d   : > { %5297 = vmatmul.mubr.msk.bf16.vlgmr.msra.gmra.mrb[16].mxu1 %vm2938_vm1, %v7452_v54  ;;  %3273 = vmatprep.mubr.bf16.mxu0 %v8372_v48 }
 0x35e   : > { %3326 = vmatprep.mubr.bf16.mxu1 %v8372_v48 }
 0x364   : > { %5296 = vmatmul.mubr.msk.bf16.gmra.mrb[20].mxu0 %vm2938_vm1, %v7460_v40 }
 0x365   : > { %5298 = vmatmul.mubr.msk.bf16.gmra.mrb[20].mxu1 %vm2938_vm1, %v7460_v40  ;;  %3369 = vmatprep.mubr.bf16.mxu0 %v8372_v48 }
 0x366   : > { %3422 = vmatprep.mubr.bf16.mxu1 %v8372_v48 }
 0x386   : > { %v3085_v21 = vpop.f32.mrb[64].mxu0 }
 0x387   : > { %v3086_v17 = vadd.f32 %v3085_v21, %v7430_v27  ;;  %v3138_v12 = vpop.f32.mrb[64].mxu1  ;;  %v3087_v33 = vpop.f32.mrb[65].mxu0 }
 0x388   : > { %v3139_v30 = vadd.f32 %v3138_v12, %v7430_v27  ;;  %v3088_v0 = vadd.f32 %v3087_v33, %v7430_v27  ;;  %v3140_v43 = vpop.f32.mrb[65].mxu1  ;;  %v3089_v5 = vpop.f32.mrb[66].mxu0 }
 0x389   : > { %v3141_v24 = vadd.f32 %v3140_v43, %v7430_v27  ;;  %v3090_v18 = vadd.f32 %v3089_v5, %v7428_v1  ;;  %v3142_v15 = vpop.f32.mrb[66].mxu1  ;;  %v3091_v47 = vpop.f32.mrb[67].mxu0  ;;  %v3161_v29 = vmax.f32 %v3086_v17, 0.0 }
 0x38a   : > { %v3143_v19 = vadd.f32 %v3142_v15, %v7428_v1  ;;  %v3092_v50 = vadd.f32 %v3091_v47, %v7428_v1  ;;  %v3144_v13 = vpop.f32.mrb[67].mxu1  ;;  %v3163_v57 = vmax.f32 %v3139_v30, 0.0  ;;  %v3162_v38 = vmax.f32 %v3088_v0, 0.0 }
 0x38b   : > { %v3169_v9 = vmax.f32 %v3090_v18, 0.0  ;;  %v3145_v11 = vadd.f32 %v3144_v13, %v7428_v1  ;;  %v3164_v21 = vmax.f32 %v3141_v24, 0.0 }
 0x38c   : > { %v3171_v35 = vmax.f32 %v3143_v19, 0.0  ;;  %v3170_v37 = vmax.f32 %v3092_v50, 0.0 }
 0x38d   : > { %v3193_v12 = vpack.c.bf16 %v3169_v9, %v3161_v29  ;;  %v3172_v27 = vmax.f32 %v3145_v11, 0.0 }
 0x38e   : > { %v3195_v33 = vpack.c.bf16 %v3171_v35, %v3163_v57  ;;  %v3194_v43 = vpack.c.bf16 %v3170_v37, %v3162_v38  ;;  %v3095_v5 = vpop.f32.mrb[68].mxu0 }
 0x38f   : > { %v3196_v20 = vpack.c.bf16 %v3172_v27, %v3164_v21  ;;  %v3096_v15 = vadd.f32 %v3095_v5, %v7440_v45  ;;  %v3148_v22 = vpop.f32.mrb[68].mxu1  ;;  %v3097_v47 = vpop.f32.mrb[69].mxu0 }
 0x390   : > { %v3149_v17 = vadd.f32 %v3148_v22, %v7440_v45  ;;  %v3098_v18 = vadd.f32 %v3097_v47, %v7440_v45  ;;  %v3150_v1 = vpop.f32.mrb[69].mxu1  ;;  %v3099_v30 = vpop.f32.mrb[70].mxu0  ;;  %3337 = vmatprep.subr.bf16.mxu0 %v3194_v43 }
 0x391   : > { %v3151_v0 = vadd.f32 %v3150_v1, %v7440_v45  ;;  %v3100_v24 = vadd.f32 %v3099_v30, %v7442_v28  ;;  %v3152_v19 = vpop.f32.mrb[70].mxu1  ;;  %v3101_v50 = vpop.f32.mrb[71].mxu0  ;;  %3390 = vmatprep.subr.bf16.mxu1 %v3196_v20  ;;  %3338 = vmatpush1.bf16.msra.mxu0 %v3193_v12  ;;  %v3177_v22 = vmax.f32 %v3096_v15, 0.0 }
 0x392   : > { %v3153_v13 = vadd.f32 %v3152_v19, %v7442_v28  ;;  %v3102_v29 = vadd.f32 %v3101_v50, %v7442_v28  ;;  %v3154_v9 = vpop.f32.mrb[71].mxu1  ;;  %3391 = vmatpush1.bf16.msra.mxu1 %v3195_v33  ;;  %v3179_v38 = vmax.f32 %v3149_v17, 0.0  ;;  %v3178_v35 = vmax.f32 %v3098_v18, 0.0 }
 0x393   : > { %v3185_v11 = vmax.f32 %v3100_v24, 0.0  ;;  %v3155_v57 = vadd.f32 %v3154_v9, %v7442_v28  ;;  %v3180_v21 = vmax.f32 %v3151_v0, 0.0  ;;  %v7496_v28 = vpop.permute.xlu1 %3206 }
 0x394   : > { %v3187_v37 = vmax.f32 %v3153_v13, 0.0  ;;  %v3186_v45 = vmax.f32 %v3102_v29, 0.0  ;;  %v5348_v17 = vadd.f32 %v7496_v28, %v7249_v4  ;;  %v5350_v30 = vadd.f32 %v7496_v28, %v7258_v26 }
 0x395   : > { %v3201_v27 = vpack.c.bf16 %v3185_v11, %v3177_v22  ;;  %v3188_v43 = vmax.f32 %v3155_v57, 0.0  ;;  %v5382_v0 = vadd.f32 %v7496_v28, %v7263_v34 }
 0x396   : > { %v3203_v5 = vpack.c.bf16 %v3187_v37, %v3179_v38  ;;  %v3202_v20 = vpack.c.bf16 %v3186_v45, %v3178_v35 }
 0x397   : > { %v3204_v12 = vpack.c.bf16 %v3188_v43, %v3180_v21  ;;  %v7498_v33 = vpop.permute.xlu1 %3214 }
 0x398   : > { %3339 = vmatprep.subr.bf16.mxu0 %v3202_v20  ;;  %v5356_v26 = vadd.f32 %v7498_v33, %v7280_v36  ;;  %v5390_v36 = vadd.f32 %v7498_v33, %v7287_v41 }
 0x399   : > { %3392 = vmatprep.subr.bf16.mxu1 %v3204_v12  ;;  %3340 = vmatpush1.bf16.msra.mxu0 %v3201_v27 }
 0x39a   : > { %3393 = vmatpush1.bf16.msra.mxu1 %v3203_v5 }
 0x39b   : > { %v7500_v15 = vpop.permute.xlu1 %3218 }
 0x39c   : > { %5299 = vmatmul.mubr.msk.bf16.vlgmr.msra.gmra.mrb[40].mxu0 %vm2938_vm1, %v7452_v54  ;;  %v5360_v20 = vadd.f32 %v7500_v15, %v7289_v6  ;;  %v5394_v6 = vadd.f32 %v7500_v15, %v7299_v62 }
 0x39d   : > { %5301 = vmatmul.mubr.msk.bf16.vlgmr.msra.gmra.mrb[40].mxu1 %vm2938_vm1, %v7452_v54  ;;  %3379 = vmatprep.mubr.bf16.mxu0 %v8372_v48  ;;  %v7502_v54 = vpop.permute.xlu0 %3210 }
 0x39e   : > { %3432 = vmatprep.mubr.bf16.mxu1 %v8372_v48  ;;  %v5352_v24 = vadd.f32 %v7502_v54, %v7265_v32  ;;  %v5384_v19 = vadd.f32 %v7502_v54, %v7269_v42  ;;  %v5386_v29 = vadd.f32 %v7502_v54, %v7275_v10  ;;  %v5388_v32 = vadd.f32 %v7498_v33, %v7282_v44 }
 0x39f   : > { %v7504_v47 = vpop.permute.xlu1 %3512  ;;  %v5358_v42 = vadd.f32 %v7498_v33, %v7284_v3 }
 0x3a1   : > { %v7510_v18 = vpop.permute.xlu0 %3508 }
 0x3a4   : > { %5300 = vmatmul.mubr.msk.bf16.gmra.mrb[44].mxu0 %vm2938_vm1, %v7460_v40 }
 0x3a5   : > { %5302 = vmatmul.mubr.msk.bf16.gmra.mrb[44].mxu1 %vm2938_vm1, %v7460_v40  ;;  %3665 = vmatprep.mubr.bf16.mxu0 %v8372_v48  ;;  %v5380_v40 = vadd.f32 %v7496_v28, %v7256_v52  ;;  %v5354_v52 = vadd.f32 %v7502_v54, %v7271_v7 }
 0x3a6   : > { %3718 = vmatprep.mubr.bf16.mxu1 %v8372_v48 }
 0x42f   : > { %v3265_v1 = vpop.f32.mrb[16].mxu0 }
 0x430   : > { %v5349_v50 = vadd.f32 %v5348_v17, %v3265_v1  ;;  %v3318_v4 = vpop.f32.mrb[16].mxu1  ;;  %v3267_v13 = vpop.f32.mrb[17].mxu0  ;;  %v5392_v17 = vadd.f32 %v7500_v15, %v7293_v46 }
 0x431   : > { %v5381_v9 = vadd.f32 %v5380_v40, %v3318_v4  ;;  %v5351_v34 = vadd.f32 %v5350_v30, %v3267_v13  ;;  %v3320_v22 = vpop.f32.mrb[17].mxu1  ;;  %v3269_v11 = vpop.f32.mrb[18].mxu0  ;;  %v5362_v40 = vadd.f32 %v7500_v15, %v7295_v55 }
 0x432   : > { %v7531_v57 = vadd.f32 %v5349_v50, %v7510_v18  ;;  %v5383_v7 = vadd.f32 %v5382_v0, %v3320_v22  ;;  %v5353_v38 = vadd.f32 %v5352_v24, %v3269_v11  ;;  %v3322_v35 = vpop.f32.mrb[18].mxu1  ;;  %v3271_v10 = vpop.f32.mrb[19].mxu0 }
 0x433   : > { %v7536_v37 = vadd.f32 %v5381_v9, %v7510_v18  ;;  %v7539_v45 = vadd.f32 %v5351_v34, %v7510_v18  ;;  %v5385_v44 = vadd.f32 %v5384_v19, %v3322_v35  ;;  %v5355_v21 = vadd.f32 %v5354_v52, %v3271_v10  ;;  %v3324_v27 = vpop.f32.mrb[19].mxu1  ;;  %v7566_v24 = vpop.permute.xlu1 %3516 }
 0x434   : > { %v7542_v3 = vadd.f32 %v5383_v7, %v7510_v18  ;;  %v7545_v43 = vadd.f32 %v5353_v38, %v7504_v47  ;;  %v5387_v5 = vadd.f32 %v5386_v29, %v3324_v27  ;;  %v3559_v1 = vmax.f32 %v7531_v57, 0.0 }
 0x435   : > { %v7550_v41 = vadd.f32 %v5385_v44, %v7504_v47  ;;  %v7553_v12 = vadd.f32 %v5355_v21, %v7504_v47  ;;  %v3561_v19 = vmax.f32 %v7536_v37, 0.0  ;;  %v3560_v50 = vmax.f32 %v7539_v45, 0.0 }
 0x436   : > { %v3567_v30 = vmax.f32 %v7545_v43, 0.0  ;;  %v7562_v0 = vadd.f32 %v5387_v5, %v7504_v47  ;;  %v3562_v13 = vmax.f32 %v7542_v3, 0.0 }
 0x437   : > { %8382 = vst [vmem:[#allocation11_spill] sm:$0xff] %v7550_v41  ;;  %8383 = vst [vmem:[#allocation6_spill] sm:$0xff] %v7553_v12  ;;  %v3569_v46 = vmax.f32 %v7550_v41, 0.0  ;;  %v3568_v55 = vmax.f32 %v7553_v12, 0.0  ;;  %v3275_v4 = vpop.f32.mrb[20].mxu0 }
 0x438   : > { %v3591_v52 = vpack.c.bf16 %v3567_v30, %v3559_v1  ;;  %v3570_v29 = vmax.f32 %v7562_v0, 0.0  ;;  %v5357_v9 = vadd.f32 %v5356_v26, %v3275_v4  ;;  %v3328_v34 = vpop.f32.mrb[20].mxu1  ;;  %v3277_v22 = vpop.f32.mrb[21].mxu0 }
 0x439   : > { %v3593_v62 = vpack.c.bf16 %v3569_v46, %v3561_v19  ;;  %v5389_v11 = vadd.f32 %v5388_v32, %v3328_v34  ;;  %v5359_v7 = vadd.f32 %v5358_v42, %v3277_v22  ;;  %v3330_v38 = vpop.f32.mrb[21].mxu1  ;;  %v3279_v35 = vpop.f32.mrb[22].mxu0  ;;  %v3592_v10 = vpack.c.bf16 %v3568_v55, %v3560_v50 }
 0x43a   : > { %v7575_v44 = vadd.f32 %v5357_v9, %v7566_v24  ;;  %v5391_v21 = vadd.f32 %v5390_v36, %v3330_v38  ;;  %v5361_v27 = vadd.f32 %v5360_v20, %v3279_v35  ;;  %v3332_v5 = vpop.f32.mrb[22].mxu1  ;;  %v3281_v12 = vpop.f32.mrb[23].mxu0  ;;  %v3594_v41 = vpack.c.bf16 %v3570_v29, %v3562_v13 }
 0x43b   : > { %v7577_v1 = vpop.permute.xlu0 %3520  ;;  %v7580_v26 = vadd.f32 %v5389_v11, %v7566_v24  ;;  %v7583_v30 = vadd.f32 %v5359_v7, %v7566_v24  ;;  %v5393_v32 = vadd.f32 %v5392_v17, %v3332_v5  ;;  %v5363_v42 = vadd.f32 %v5362_v40, %v3281_v12  ;;  %v3334_v19 = vpop.f32.mrb[23].mxu1  ;;  %3633 = vmatprep.subr.bf16.mxu0 %v3592_v10 }
 0x43c   : > { %v7586_v50 = vadd.f32 %v5391_v21, %v7566_v24  ;;  %v7589_v36 = vadd.f32 %v5361_v27, %v7577_v1  ;;  %v5395_v20 = vadd.f32 %v5394_v6, %v3334_v19  ;;  %3686 = vmatprep.subr.bf16.mxu1 %v3594_v41  ;;  %3634 = vmatpush1.bf16.msra.mxu0 %v3591_v52  ;;  %v3575_v12 = vmax.f32 %v7575_v44, 0.0  ;;  %v7608_v11 = vpop.permute.xlu1 %3623 }
 0x43d   : > { %v7592_v46 = vadd.f32 %v5393_v32, %v7577_v1  ;;  %v7595_v55 = vadd.f32 %v5363_v42, %v7577_v1  ;;  %3687 = vmatpush1.bf16.msra.mxu1 %v3593_v62  ;;  %v3577_v4 = vmax.f32 %v7580_v26, 0.0  ;;  %v3576_v6 = vmax.f32 %v7583_v30, 0.0 }
 0x43e   : > { %v3583_v17 = vmax.f32 %v7589_v36, 0.0  ;;  %v7600_v40 = vadd.f32 %v5395_v20, %v7577_v1  ;;  %v3578_v52 = vmax.f32 %v7586_v50, 0.0  ;;  %v5412_v38 = vadd.f32 %v7496_v28, %v7317_v2 }
 0x43f   : > { %v3585_v41 = vmax.f32 %v7592_v46, 0.0  ;;  %v3584_v13 = vmax.f32 %v7595_v55, 0.0  ;;  %v7616_v7 = vpop.permute.xlu0 %3625  ;;  %v5444_v35 = vadd.f32 %v7496_v28, %v7320_v53  ;;  %v5414_v21 = vadd.f32 %v7496_v28, %v7323_v39 }
 0x440   : > { %v3599_v29 = vpack.c.bf16 %v3583_v17, %v3575_v12  ;;  %v3586_v9 = vmax.f32 %v7600_v40, 0.0  ;;  %v5446_v27 = vadd.f32 %v7496_v28, %v7326_v8  ;;  %v5416_v5 = vadd.f32 %v7502_v54, %v7329_v58 }
 0x441   : > { %v3601_v34 = vpack.c.bf16 %v3585_v41, %v3577_v4  ;;  %v3600_v22 = vpack.c.bf16 %v3584_v13, %v3576_v6  ;;  %v5448_v32 = vadd.f32 %v7502_v54, %v7332_v51  ;;  %v5418_v2 = vadd.f32 %v7502_v54, %v7335_v63 }
 0x442   : > { %v3602_v62 = vpack.c.bf16 %v3586_v9, %v3578_v52  ;;  %v5450_v53 = vadd.f32 %v7502_v54, %v7340_v61  ;;  %v5420_v39 = vadd.f32 %v7498_v33, %v7349_v23  ;;  %v5452_v58 = vadd.f32 %v7498_v33, %v7352_v49 }
 0x443   : > { %3635 = vmatprep.subr.bf16.mxu0 %v3600_v22  ;;  %v5422_v51 = vadd.f32 %v7498_v33, %v7355_v25  ;;  %v5454_v23 = vadd.f32 %v7498_v33, %v7358_v59  ;;  %v5424_v22 = vadd.f32 %v7500_v15, %v7361_v60  ;;  %v5458_v60 = vadd.f32 %v7500_v15, %v7372_v14 }
 0x444   : > { %3688 = vmatprep.subr.bf16.mxu1 %v3602_v62  ;;  %3636 = vmatpush1.bf16.msra.mxu0 %v3599_v29  ;;  %v5456_v62 = vadd.f32 %v7500_v15, %v7364_v56 }
 0x445   : > { %3689 = vmatpush1.bf16.msra.mxu1 %v3601_v34 }
 0x447   : > { %5303 = vmatmul.mubr.msk.bf16.vlgmr.msra.gmra.mrb[72].mxu0 %vm2938_vm1, %v7608_v11 }
 0x448   : > { %5305 = vmatmul.mubr.msk.bf16.vlgmr.msra.gmra.mrb[72].mxu1 %vm2938_vm1, %v7608_v11  ;;  %3675 = vmatprep.mubr.bf16.mxu0 %v8372_v48 }
 0x449   : > { %3728 = vmatprep.mubr.bf16.mxu1 %v8372_v48 }
 0x44f   : > { %5304 = vmatmul.mubr.msk.bf16.gmra.mrb[76].mxu0 %vm2938_vm1, %v7616_v7 }
 0x450   : > { %5306 = vmatmul.mubr.msk.bf16.gmra.mrb[76].mxu1 %vm2938_vm1, %v7616_v7  ;;  %3771 = vmatprep.mubr.bf16.mxu0 %v8372_v48 }
 0x451   : > { %3824 = vmatprep.mubr.bf16.mxu1 %v8372_v48 }
 0x46f   : > { %v3371_v10 = vpop.f32.mrb[40].mxu0 }
 0x470   : > { %v5413_v42 = vadd.f32 %v5412_v38, %v3371_v10  ;;  %v3424_v19 = vpop.f32.mrb[40].mxu1  ;;  %v3373_v20 = vpop.f32.mrb[41].mxu0 }
 0x471   : > { %v5445_v12 = vadd.f32 %v5444_v35, %v3424_v19  ;;  %v5415_v8 = vadd.f32 %v5414_v21, %v3373_v20  ;;  %v3426_v28 = vpop.f32.mrb[41].mxu1  ;;  %v3375_v17 = vpop.f32.mrb[42].mxu0 }
 0x472   : > { %v7647_v4 = vadd.f32 %v5413_v42, %v7510_v18  ;;  %v5447_v63 = vadd.f32 %v5446_v27, %v3426_v28  ;;  %v5417_v6 = vadd.f32 %v5416_v5, %v3375_v17  ;;  %v3428_v41 = vpop.f32.mrb[42].mxu1  ;;  %v3377_v61 = vpop.f32.mrb[43].mxu0 }
 0x473   : > { %v7652_v54 = vadd.f32 %v5445_v12, %v7510_v18  ;;  %v7655_v13 = vadd.f32 %v5415_v8, %v7510_v18  ;;  %v5449_v49 = vadd.f32 %v5448_v32, %v3428_v41  ;;  %v5419_v52 = vadd.f32 %v5418_v2, %v3377_v61  ;;  %v3430_v29 = vpop.f32.mrb[43].mxu1 }
 0x474   : > { %v7658_v25 = vadd.f32 %v5447_v63, %v7510_v18  ;;  %v7661_v9 = vadd.f32 %v5417_v6, %v7504_v47  ;;  %v5451_v34 = vadd.f32 %v5450_v53, %v3430_v29  ;;  %v5426_v18 = vadd.f32 %v7500_v15, %v7367_v31 }
 0x475   : > { %v7666_v59 = vadd.f32 %v5449_v49, %v7504_v47  ;;  %v7669_v33 = vadd.f32 %v5419_v52, %v7504_v47  ;;  %v3563_v38 = vmax.f32 %v7647_v4, 0.0  ;;  %v3565_v21 = vmax.f32 %v7652_v54, 0.0 }
 0x476   : > { %v3571_v35 = vmax.f32 %v7661_v9, 0.0  ;;  %v7678_v10 = vadd.f32 %v5451_v34, %v7504_v47  ;;  %v3564_v27 = vmax.f32 %v7655_v13, 0.0  ;;  %v3566_v31 = vmax.f32 %v7658_v25, 0.0 }
 0x477   : > { %v3573_v5 = vmax.f32 %v7666_v59, 0.0  ;;  %v3572_v56 = vmax.f32 %v7669_v33, 0.0  ;;  %v3381_v32 = vpop.f32.mrb[44].mxu0 }
 0x478   : > { %v3595_v42 = vpack.c.bf16 %v3571_v35, %v3563_v38  ;;  %v3574_v19 = vmax.f32 %v7678_v10, 0.0  ;;  %v5421_v20 = vadd.f32 %v5420_v39, %v3381_v32  ;;  %v3434_v47 = vpop.f32.mrb[44].mxu1  ;;  %v3383_v2 = vpop.f32.mrb[45].mxu0 }
 0x479   : > { %v3597_v53 = vpack.c.bf16 %v3573_v5, %v3565_v21  ;;  %v5453_v12 = vadd.f32 %v5452_v58, %v3434_v47  ;;  %v5423_v14 = vadd.f32 %v5422_v51, %v3383_v2  ;;  %v3436_v15 = vpop.f32.mrb[45].mxu1  ;;  %v3385_v8 = vpop.f32.mrb[46].mxu0  ;;  %v3596_v28 = vpack.c.bf16 %v3572_v56, %v3564_v27  ;;  %v8385_v47 = vld [vmem:[#allocation9_spill] sm:$0xff]  ;;  %v5681_v2 = vld [vmem:[%s8310_s3] ss:$8 sps:$4 sm:$0xff]  }
 0x47a   : > { %v7689_v17 = vadd.f32 %v5421_v20, %v7566_v24  ;;  %v5455_v63 = vadd.f32 %v5454_v23, %v3436_v15  ;;  %v5425_v6 = vadd.f32 %v5424_v22, %v3385_v8  ;;  %v3438_v41 = vpop.f32.mrb[46].mxu1  ;;  %v3387_v61 = vpop.f32.mrb[47].mxu0  ;;  %v3598_v49 = vpack.c.bf16 %v3574_v19, %v3566_v31 }
 0x47b   : > { %v7692_v52 = vadd.f32 %v5453_v12, %v7566_v24  ;;  %v7695_v39 = vadd.f32 %v5423_v14, %v7566_v24  ;;  %v5457_v29 = vadd.f32 %v5456_v62, %v3438_v41  ;;  %v5427_v58 = vadd.f32 %v5426_v18, %v3387_v61  ;;  %v3440_v51 = vpop.f32.mrb[47].mxu1  ;;  %3739 = vmatprep.subr.bf16.mxu0 %v3596_v28  ;;  %v7742_v12 = vpop.permute.xlu1 %3608 }
 0x47c   : > { %v7698_v34 = vadd.f32 %v5455_v63, %v7566_v24  ;;  %v7701_v38 = vadd.f32 %v5425_v6, %v7577_v1  ;;  %v5459_v23 = vadd.f32 %v5458_v60, %v3440_v51  ;;  %3792 = vmatprep.subr.bf16.mxu1 %v3598_v49  ;;  %3740 = vmatpush1.bf16.msra.mxu0 %v3595_v42  ;;  %v3579_v62 = vmax.f32 %v7689_v17, 0.0 }
 0x47d   : > { %v7704_v22 = vadd.f32 %v5457_v29, %v7577_v1  ;;  %v7707_v35 = vadd.f32 %v5427_v58, %v7577_v1  ;;  %3793 = vmatpush1.bf16.msra.mxu1 %v3597_v53  ;;  %v3581_v21 = vmax.f32 %v7692_v52, 0.0  ;;  %v3580_v60 = vmax.f32 %v7695_v39, 0.0  ;;  %v5682_v53 = vld [vmem:[%s8310_s3 + $0x10] ss:$8 sps:$4 sm:$0xff]  }
 0x47e   : > { %v3587_v18 = vmax.f32 %v7701_v38, 0.0  ;;  %v7712_v24 = vadd.f32 %v5459_v23, %v7577_v1  ;;  %v3582_v56 = vmax.f32 %v7698_v34, 0.0  ;;  %v5795_v1 = vmov 5  }
 0x47f   : > { %v3589_v27 = vmax.f32 %v7704_v22, 0.0  ;;  %v3588_v5 = vmax.f32 %v7707_v35, 0.0  ;;  %5648 = vset.pattern.permute.xlu1 %v5795_v1  ;;  %5649 = vset.pattern.permute.xlu0 %v5795_v1  ;;  %v7746_v14 = vpop.permute.xlu1 %3616 }
 0x480   : > { %v3603_v32 = vpack.c.bf16 %v3587_v18, %v3579_v62  ;;  %v3590_v31 = vmax.f32 %v7712_v24, 0.0  ;;  %4202 = vperm.xlu1 %5648, %v7401_v16   ;;  %v7744_v16 = vpop.permute.xlu0 %3612 }
 0x481   : > { %v3605_v42 = vpack.c.bf16 %v3589_v27, %v3581_v21  ;;  %v3604_v19 = vpack.c.bf16 %v3588_v5, %v3580_v60 }
 0x482   : > { %v3606_v20 = vpack.c.bf16 %v3590_v31, %v3582_v56 }
 0x483   : > { %3741 = vmatprep.subr.bf16.mxu0 %v3604_v19 }
 0x484   : > { %3794 = vmatprep.subr.bf16.mxu1 %v3606_v20  ;;  %3742 = vmatpush1.bf16.msra.mxu0 %v3603_v32 }
 0x485   : > { %3795 = vmatpush1.bf16.msra.mxu1 %v3605_v42  ;;  %4210 = vperm.xlu1 %5648, %v8385_v47  }
 0x487   : > { %5307 = vmatmul.mubr.msk.bf16.vlgmr.msra.gmra.mrb[80].mxu0 %vm2938_vm1, %v7608_v11 }
 0x488   : > { %5309 = vmatmul.mubr.msk.bf16.vlgmr.msra.gmra.mrb[80].mxu1 %vm2938_vm1, %v7608_v11  ;;  %3781 = vmatprep.mubr.bf16.mxu0 %v8372_v48  ;;  %v8384_v11 = vld [vmem:[#allocation8_spill] sm:$0xff] }
 0x489   : > { %3834 = vmatprep.mubr.bf16.mxu1 %v8372_v48  ;;  %4206 = vperm.xlu0 %5649, %v8384_v11   ;;  %v7756_v11 = vpop.permute.xlu1 %3620 }
 0x48d   : > { %4313 = vrot.lane.b32.xlu0 %v5681_v2, %s5796_s9 }
 0x48f   : > { %5308 = vmatmul.mubr.msk.bf16.gmra.mrb[84].mxu0 %vm2938_vm1, %v7616_v7 }
 0x490   : > { %5310 = vmatmul.mubr.msk.bf16.gmra.mrb[84].mxu1 %vm2938_vm1, %v7616_v7  ;;  %3957 = vmatprep.mubr.bf16.mxu0 %v8372_v48  ;;  %v8386_v7 = vld [vmem:[#allocation10_spill] sm:$0xff] }
 0x491   : > { %4010 = vmatprep.mubr.bf16.mxu1 %v8372_v48  ;;  %4214 = vperm.xlu1 %5648, %v8386_v7  }
 0x495   : > { %4315 = vrot.lane.b32.xlu1 %v5682_v53, %s5796_s9  ;;  %s5343_s9 = sshll.u32 %s5769_s25, 4 }
 0x496   : > { %s5147_s24 = sadd.s32 %s5343_s9, %s5908_s16  ;;  %s5135_s16 = scalar_lea.sflag [#allocation3], %s282_s20 }
 0x497   : > { %s5344_s30 = sshll.u32 %s5147_s24, 4  ;;  %s5693_s9 = scalar_lea.vmem %s5692_s29, 256 }
 0x498   : > { %s8254_s25 = scalar_lea.hbm %s8313_s6, %s5344_s30  ;;  %p5695_p5 = scmp.lt.s32.totalorder %s5693_s9, %s5687_s18 }
 0x49a   : > { %p5696_p6 = por %p5695_p5, %p5694_p4 }
 0x49c   : > { %p5697_p7 = pnand %p5696_p6, %p5690_p2 }
 0x51a   : > { %v3667_v15 = vpop.f32.mrb[72].mxu0 }
 0x51b   : > { %v3668_v8 = vadd.f32 %v3667_v15, %v7742_v12  ;;  %v3720_v28 = vpop.f32.mrb[72].mxu1  ;;  %v3669_v63 = vpop.f32.mrb[73].mxu0 }
 0x51c   : > { %v3721_v6 = vadd.f32 %v3720_v28, %v7742_v12  ;;  %v3670_v41 = vadd.f32 %v3669_v63, %v7742_v12  ;;  %v3722_v61 = vpop.f32.mrb[73].mxu1  ;;  %v3671_v49 = vpop.f32.mrb[74].mxu0 }
 0x51d   : > { %v3845_v29 = vmax.f32 %v3668_v8, 0.0  ;;  %v3723_v58 = vadd.f32 %v3722_v61, %v7742_v12  ;;  %v3672_v51 = vadd.f32 %v3671_v49, %v7744_v16  ;;  %v3724_v23 = vpop.f32.mrb[74].mxu1  ;;  %v3673_v62 = vpop.f32.mrb[75].mxu0 }
 0x51e   : > { %v3847_v18 = vmax.f32 %v3721_v6, 0.0  ;;  %v3846_v21 = vmax.f32 %v3670_v41, 0.0  ;;  %v3725_v60 = vadd.f32 %v3724_v23, %v7744_v16  ;;  %v3674_v27 = vadd.f32 %v3673_v62, %v7744_v16  ;;  %v3726_v5 = vpop.f32.mrb[75].mxu1 }
 0x51f   : > { %v3848_v56 = vmax.f32 %v3723_v58, 0.0  ;;  %v3853_v32 = vmax.f32 %v3672_v51, 0.0  ;;  %v3727_v31 = vadd.f32 %v3726_v5, %v7744_v16 }
 0x520   : > { %v3855_v42 = vmax.f32 %v3725_v60, 0.0  ;;  %v3854_v19 = vmax.f32 %v3674_v27, 0.0 }
 0x521   : > { %v3877_v20 = vpack.c.bf16 %v3853_v32, %v3845_v29  ;;  %v3856_v1 = vmax.f32 %v3727_v31, 0.0 }
 0x522   : > { %v3879_v47 = vpack.c.bf16 %v3855_v42, %v3847_v18  ;;  %v3878_v2 = vpack.c.bf16 %v3854_v19, %v3846_v21  ;;  %v3677_v7 = vpop.f32.mrb[76].mxu0 }
 0x523   : > { %v3880_v53 = vpack.c.bf16 %v3856_v1, %v3848_v56  ;;  %v3678_v15 = vadd.f32 %v3677_v7, %v7746_v14  ;;  %v3730_v8 = vpop.f32.mrb[76].mxu1  ;;  %v3679_v28 = vpop.f32.mrb[77].mxu0 }
 0x524   : > { %v3731_v63 = vadd.f32 %v3730_v8, %v7746_v14  ;;  %v3680_v6 = vadd.f32 %v3679_v28, %v7746_v14  ;;  %v3732_v41 = vpop.f32.mrb[77].mxu1  ;;  %v3681_v61 = vpop.f32.mrb[78].mxu0  ;;  %3925 = vmatprep.subr.bf16.mxu0 %v3878_v2 }
 0x525   : > { %v3861_v49 = vmax.f32 %v3678_v15, 0.0  ;;  %v3733_v29 = vadd.f32 %v3732_v41, %v7746_v14  ;;  %v3682_v58 = vadd.f32 %v3681_v61, %v7756_v11  ;;  %v3734_v51 = vpop.f32.mrb[78].mxu1  ;;  %v3683_v23 = vpop.f32.mrb[79].mxu0  ;;  %3978 = vmatprep.subr.bf16.mxu1 %v3880_v53  ;;  %3926 = vmatpush1.bf16.msra.mxu0 %v3877_v20  ;;  %v7769_v20 = vld [vmem:[%s8310_s3 + $0x4] ss:$8 sps:$4 sm:$0xff]  }
 0x526   : > { %v3863_v62 = vmax.f32 %v3731_v63, 0.0  ;;  %v3862_v18 = vmax.f32 %v3680_v6, 0.0  ;;  %v3735_v21 = vadd.f32 %v3734_v51, %v7756_v11  ;;  %v3684_v60 = vadd.f32 %v3683_v23, %v7756_v11  ;;  %v3736_v27 = vpop.f32.mrb[79].mxu1  ;;  %3979 = vmatpush1.bf16.msra.mxu1 %v3879_v47  ;;  %v7780_v47 = vld [vmem:[%s8310_s3 + $0x14] ss:$8 sps:$4 sm:$0xff]  }
 0x527   : > { %v3864_v5 = vmax.f32 %v3733_v29, 0.0  ;;  %v3869_v56 = vmax.f32 %v3682_v58, 0.0  ;;  %v3737_v32 = vadd.f32 %v3736_v27, %v7756_v11 }
 0x528   : > { %v3871_v31 = vmax.f32 %v3735_v21, 0.0  ;;  %v3870_v42 = vmax.f32 %v3684_v60, 0.0 }
 0x529   : > { %v3885_v19 = vpack.c.bf16 %v3869_v56, %v3861_v49  ;;  %v3872_v1 = vmax.f32 %v3737_v32, 0.0 }
 0x52a   : > { %v3887_v2 = vpack.c.bf16 %v3871_v31, %v3863_v62  ;;  %v3886_v7 = vpack.c.bf16 %v3870_v42, %v3862_v18 }
 0x52b   : > { %v3888_v53 = vpack.c.bf16 %v3872_v1, %v3864_v5 }
 0x52c   : > { %3927 = vmatprep.subr.bf16.mxu0 %v3886_v7 }
 0x52d   : > { %3980 = vmatprep.subr.bf16.mxu1 %v3888_v53  ;;  %3928 = vmatpush1.bf16.msra.mxu0 %v3885_v19 }
 0x52e   : > { %3981 = vmatpush1.bf16.msra.mxu1 %v3887_v2 }
 0x530   : > { %5313 = vmatmul.mubr.msk.bf16.vlgmr.msra.gmra.mrb[24].mxu0 %vm2938_vm1, %v7769_v20 }
 0x531   : > { %5315 = vmatmul.mubr.msk.bf16.vlgmr.msra.gmra.mrb[24].mxu1 %vm2938_vm1, %v7769_v20  ;;  %3967 = vmatprep.mubr.bf16.mxu0 %v8372_v48 }
 0x532   : > { %4020 = vmatprep.mubr.bf16.mxu1 %v8372_v48 }
 0x538   : > { %5314 = vmatmul.mubr.msk.bf16.gmra.mrb[28].mxu0 %vm2938_vm1, %v7780_v47 }
 0x539   : > { %5316 = vmatmul.mubr.msk.bf16.gmra.mrb[28].mxu1 %vm2938_vm1, %v7780_v47  ;;  %4063 = vmatprep.mubr.bf16.mxu0 %v8372_v48 }
 0x53a   : > { %4116 = vmatprep.mubr.bf16.mxu1 %v8372_v48 }
 0x55a   : > { %v3773_v15 = vpop.f32.mrb[80].mxu0 }
 0x55b   : > { %v3774_v8 = vadd.f32 %v3773_v15, %v7742_v12  ;;  %v3826_v28 = vpop.f32.mrb[80].mxu1  ;;  %v3775_v63 = vpop.f32.mrb[81].mxu0 }
 0x55c   : > { %v3827_v6 = vadd.f32 %v3826_v28, %v7742_v12  ;;  %v3776_v41 = vadd.f32 %v3775_v63, %v7742_v12  ;;  %v3828_v61 = vpop.f32.mrb[81].mxu1  ;;  %v3777_v49 = vpop.f32.mrb[82].mxu0 }
 0x55d   : > { %v3829_v29 = vadd.f32 %v3828_v61, %v7742_v12  ;;  %v3778_v58 = vadd.f32 %v3777_v49, %v7744_v16  ;;  %v3830_v51 = vpop.f32.mrb[82].mxu1  ;;  %v3779_v23 = vpop.f32.mrb[83].mxu0  ;;  %v3849_v60 = vmax.f32 %v3774_v8, 0.0 }
 0x55e   : > { %v3831_v62 = vadd.f32 %v3830_v51, %v7744_v16  ;;  %v3780_v18 = vadd.f32 %v3779_v23, %v7744_v16  ;;  %v3832_v21 = vpop.f32.mrb[83].mxu1  ;;  %v3851_v56 = vmax.f32 %v3827_v6, 0.0  ;;  %v3850_v32 = vmax.f32 %v3776_v41, 0.0 }
 0x55f   : > { %v3857_v27 = vmax.f32 %v3778_v58, 0.0  ;;  %v3833_v5 = vadd.f32 %v3832_v21, %v7744_v16  ;;  %v3852_v19 = vmax.f32 %v3829_v29, 0.0 }
 0x560   : > { %v3859_v31 = vmax.f32 %v3831_v62, 0.0  ;;  %v3858_v42 = vmax.f32 %v3780_v18, 0.0 }
 0x561   : > { %v3881_v1 = vpack.c.bf16 %v3857_v27, %v3849_v60  ;;  %v3860_v12 = vmax.f32 %v3833_v5, 0.0 }
 0x562   : > { %v3883_v2 = vpack.c.bf16 %v3859_v31, %v3851_v56  ;;  %v3882_v7 = vpack.c.bf16 %v3858_v42, %v3850_v32  ;;  %v3783_v53 = vpop.f32.mrb[84].mxu0 }
 0x563   : > { %v3884_v15 = vpack.c.bf16 %v3860_v12, %v3852_v19  ;;  %v3784_v28 = vadd.f32 %v3783_v53, %v7746_v14  ;;  %v3836_v63 = vpop.f32.mrb[84].mxu1  ;;  %v3785_v61 = vpop.f32.mrb[85].mxu0  ;;  %v7825_v53 = vld [vmem:[%s8312_s5] sm:$0xff] }
 0x564   : > { %v3837_v8 = vadd.f32 %v3836_v63, %v7746_v14  ;;  %v3786_v49 = vadd.f32 %v3785_v61, %v7746_v14  ;;  %v3838_v16 = vpop.f32.mrb[85].mxu1  ;;  %v3787_v6 = vpop.f32.mrb[86].mxu0  ;;  %4031 = vmatprep.subr.bf16.mxu0 %v3882_v7 }
 0x565   : > { %v3839_v41 = vadd.f32 %v3838_v16, %v7746_v14  ;;  %v3788_v29 = vadd.f32 %v3787_v6, %v7756_v11  ;;  %v3840_v58 = vpop.f32.mrb[86].mxu1  ;;  %v3789_v51 = vpop.f32.mrb[87].mxu0  ;;  %4084 = vmatprep.subr.bf16.mxu1 %v3884_v15  ;;  %4032 = vmatpush1.bf16.msra.mxu0 %v3881_v1  ;;  %v3865_v21 = vmax.f32 %v3784_v28, 0.0  ;;  %v7831_v15 = vld [vmem:[%s8312_s5 + $0x10] sm:$0xff]  ;;  %v7837_v28 = vld [vmem:[%s8312_s5 + $0x18] sm:$0xff] }
 0x566   : > { %v3841_v23 = vadd.f32 %v3840_v58, %v7756_v11  ;;  %v3790_v62 = vadd.f32 %v3789_v51, %v7756_v11  ;;  %v3842_v18 = vpop.f32.mrb[87].mxu1  ;;  %4085 = vmatpush1.bf16.msra.mxu1 %v3883_v2  ;;  %v3867_v5 = vmax.f32 %v3837_v8, 0.0  ;;  %v3866_v56 = vmax.f32 %v3786_v49, 0.0  ;;  %v7819_v2 = vld [vmem:[%s8312_s5 + $0x8] sm:$0xff]  ;;  %v7844_v63 = vpop.permute.xlu1 %3898 }
 0x567   : > { %v3873_v60 = vmax.f32 %v3788_v29, 0.0  ;;  %v3843_v27 = vadd.f32 %v3842_v18, %v7756_v11  ;;  %v3868_v31 = vmax.f32 %v3839_v41, 0.0  ;;  %v5797_v11 = vmov 8   ;;  %v7846_v61 = vpop.permute.xlu0 %3894 }
 0x568   : > { %v3875_v32 = vmax.f32 %v3841_v23, 0.0  ;;  %v3874_v14 = vmax.f32 %v3790_v62, 0.0  ;;  %5651 = vset.pattern.permute.xlu1 %v5797_v11  ;;  %5650 = vset.pattern.permute.xlu0 %v5797_v11  ;;  %v5364_v6 = vadd.f32 %v7846_v61, %v7531_v57  ;;  %v5398_v58 = vadd.f32 %v7846_v61, %v7542_v3 }
 0x569   : > { %v3889_v42 = vpack.c.bf16 %v3873_v60, %v3865_v21  ;;  %v3876_v19 = vmax.f32 %v3843_v27, 0.0  ;;  %4302 = vperm.xlu1 %5651, %v7819_v2   ;;  %4298 = vperm.xlu0 %5650, %v7825_v53   ;;  %v5368_v51 = vadd.f32 %v7844_v63, %v7545_v43  ;;  %v8387_v21 = vld [vmem:[#allocation11_spill] sm:$0xff]  ;;  %v8388_v27 = vld [vmem:[#allocation6_spill] sm:$0xff] }
 0x56a   : > { %v3891_v12 = vpack.c.bf16 %v3875_v32, %v3867_v5  ;;  %v3890_v7 = vpack.c.bf16 %v3874_v14, %v3866_v56  ;;  %v7848_v8 = vpop.permute.xlu1 %3902  ;;  %v5400_v60 = vadd.f32 %v7844_v63, %v8387_v21 }
 0x56b   : > { %v3892_v1 = vpack.c.bf16 %v3876_v19, %v3868_v31  ;;  %v7850_v49 = vpop.permute.xlu0 %3906  ;;  %v5372_v43 = vadd.f32 %v7848_v8, %v7575_v44  ;;  %v5404_v14 = vadd.f32 %v7848_v8, %v7580_v26 }
 0x56c   : > { %4033 = vmatprep.subr.bf16.mxu0 %v3890_v7  ;;  %v5374_v7 = vadd.f32 %v7848_v8, %v7583_v30 }
 0x56d   : > { %4086 = vmatprep.subr.bf16.mxu1 %v3892_v1  ;;  %4034 = vmatpush1.bf16.msra.mxu0 %v3889_v42 }
 0x56e   : > { %4087 = vmatpush1.bf16.msra.mxu1 %v3891_v12  ;;  %4306 = vperm.xlu1 %5651, %v7831_v15   ;;  %v7852_v16 = vpop.permute.xlu1 %4202 }
 0x56f   : > { %4310 = vperm.xlu0 %5650, %v7837_v28   ;;  %v7856_v41 = vpop.permute.xlu0 %4206 }
 0x570   : > { %5317 = vmatmul.mubr.msk.bf16.vlgmr.msra.gmra.mrb[48].mxu0 %vm2938_vm1, %v7769_v20 }
 0x571   : > { %5319 = vmatmul.mubr.msk.bf16.vlgmr.msra.gmra.mrb[48].mxu1 %vm2938_vm1, %v7769_v20  ;;  %4073 = vmatprep.mubr.bf16.mxu0 %v8372_v48 }
 0x572   : > { %4126 = vmatprep.mubr.bf16.mxu1 %v8372_v48  ;;  %4599 = vrot.lane.b32.xlu1 %v7769_v20, %s5792_s13  ;;  %v5396_v20 = vadd.f32 %v7846_v61, %v7536_v37  ;;  %v7866_v23 = vpop.permute.xlu1 %4210  ;;  %v5370_v37 = vadd.f32 %v7844_v63, %v8388_v27 }
 0x573   : > { %4601 = vrot.lane.b32.xlu0 %v7780_v47, %s5792_s13 }
 0x576   : > { %v7915_v27 = vpop.permute.xlu1 %4214 }
 0x578   : > { %5318 = vmatmul.mubr.msk.bf16.gmra.mrb[52].mxu0 %vm2938_vm1, %v7780_v47 }
 0x579   : > { %5320 = vmatmul.mubr.msk.bf16.gmra.mrb[52].mxu1 %vm2938_vm1, %v7780_v47  ;;  %4355 = vmatprep.mubr.bf16.mxu0 %v8372_v48  ;;  %v5366_v47 = vadd.f32 %v7846_v61, %v7539_v45  ;;  %v5402_v45 = vadd.f32 %v7844_v63, %v7562_v0  ;;  %v5406_v0 = vadd.f32 %v7848_v8, %v7586_v50 }
 0x57a   : > { %4408 = vmatprep.mubr.bf16.mxu1 %v8372_v48  ;;  %v5376_v50 = vadd.f32 %v7850_v49, %v7589_v36 }
 0x603   : > { %v3959_v29 = vpop.f32.mrb[24].mxu0 }
 0x604   : > { %v5365_v62 = vadd.f32 %v5364_v6, %v3959_v29  ;;  %v4012_v18 = vpop.f32.mrb[24].mxu1  ;;  %v3961_v57 = vpop.f32.mrb[25].mxu0 }
 0x605   : > { %v5397_v5 = vadd.f32 %v5396_v20, %v4012_v18  ;;  %v5367_v56 = vadd.f32 %v5366_v47, %v3961_v57  ;;  %v4014_v3 = vpop.f32.mrb[25].mxu1  ;;  %v3963_v32 = vpop.f32.mrb[26].mxu0  ;;  %v5378_v18 = vadd.f32 %v7850_v49, %v7595_v55  ;;  %v5410_v57 = vadd.f32 %v7850_v49, %v7600_v40 }
 0x606   : > { %v5399_v31 = vadd.f32 %v5398_v58, %v4014_v3  ;;  %v5369_v42 = vadd.f32 %v5368_v51, %v3963_v32  ;;  %v4016_v19 = vpop.f32.mrb[26].mxu1  ;;  %v3965_v12 = vpop.f32.mrb[27].mxu0  ;;  %v7886_v44 = vadd.f32 %v5365_v62, %v7852_v16  ;;  %v5408_v58 = vadd.f32 %v7850_v49, %v7592_v46 }
 0x607   : > { %v5401_v1 = vadd.f32 %v5400_v60, %v4016_v19  ;;  %v5371_v11 = vadd.f32 %v5370_v37, %v3965_v12  ;;  %v4018_v6 = vpop.f32.mrb[27].mxu1  ;;  %v7883_v29 = vadd.f32 %v5367_v56, %v7852_v16  ;;  %v7895_v30 = vadd.f32 %v5397_v5, %v7852_v16 }
 0x608   : > { %v5403_v26 = vadd.f32 %v5402_v45, %v4018_v6  ;;  %v7889_v20 = vadd.f32 %v5399_v31, %v7852_v16  ;;  %v7892_v47 = vadd.f32 %v5369_v42, %v7856_v41  ;;  %v4249_v45 = vmax.f32 %v7886_v44, 0.0 }
 0x609   : > { %8389 = vst [vmem:[#allocation7_spill] sm:$0xff] %v7883_v29  ;;  %8392 = vst [vmem:[#allocation10_spill] sm:$0xff] %v7895_v30  ;;  %v7902_v51 = vadd.f32 %v5371_v11, %v7856_v41  ;;  %v7905_v62 = vadd.f32 %v5401_v1, %v7856_v41  ;;  %v4250_v46 = vmax.f32 %v7883_v29, 0.0  ;;  %v4251_v31 = vmax.f32 %v7895_v30, 0.0 }
 0x60a   : > { %8390 = vst [vmem:[#allocation8_spill] sm:$0xff] %v7889_v20  ;;  %8391 = vst [vmem:[#allocation9_spill] sm:$0xff] %v7892_v47  ;;  %v7912_v21 = vadd.f32 %v5403_v26, %v7856_v41  ;;  %v4257_v36 = vmax.f32 %v7892_v47, 0.0  ;;  %v4252_v40 = vmax.f32 %v7889_v20, 0.0 }
 0x60b   : > { %8393 = vst [vmem:[#allocation11_spill] sm:$0xff] %v7902_v51  ;;  %8394 = vst [vmem:[#allocation6_spill] sm:$0xff] %v7905_v62  ;;  %v3969_v60 = vpop.f32.mrb[28].mxu0  ;;  %v4258_v37 = vmax.f32 %v7902_v51, 0.0  ;;  %v4259_v5 = vmax.f32 %v7905_v62, 0.0 }
 0x60c   : > { %8395 = vst [vmem:[#allocation12_spill] sm:$0xff] %v7912_v21  ;;  %v5373_v55 = vadd.f32 %v5372_v43, %v3969_v60  ;;  %v4022_v56 = vpop.f32.mrb[28].mxu1  ;;  %v3971_v3 = vpop.f32.mrb[29].mxu0  ;;  %v4260_v32 = vmax.f32 %v7912_v21, 0.0  ;;  %v4281_v6 = vpack.c.bf16 %v4257_v36, %v4249_v45 }
 0x60d   : > { %v5405_v42 = vadd.f32 %v5404_v14, %v4022_v56  ;;  %v5375_v19 = vadd.f32 %v5374_v7, %v3971_v3  ;;  %v4024_v12 = vpop.f32.mrb[29].mxu1  ;;  %v3973_v1 = vpop.f32.mrb[30].mxu0  ;;  %v4282_v11 = vpack.c.bf16 %v4258_v37, %v4250_v46  ;;  %v4283_v43 = vpack.c.bf16 %v4259_v5, %v4251_v31 }
 0x60e   : > { %v5407_v26 = vadd.f32 %v5406_v0, %v4024_v12  ;;  %v5377_v51 = vadd.f32 %v5376_v50, %v3973_v1  ;;  %v4026_v47 = vpop.f32.mrb[30].mxu1  ;;  %v3975_v29 = vpop.f32.mrb[31].mxu0  ;;  %v4284_v62 = vpack.c.bf16 %v4260_v32, %v4252_v40  ;;  %v7925_v60 = vadd.f32 %v5373_v55, %v7866_v23 }
 0x60f   : > { %v7928_v20 = vadd.f32 %v5375_v19, %v7866_v23  ;;  %v5409_v21 = vadd.f32 %v5408_v58, %v4026_v47  ;;  %v5379_v30 = vadd.f32 %v5378_v18, %v3975_v29  ;;  %v4028_v14 = vpop.f32.mrb[31].mxu1  ;;  %4323 = vmatprep.subr.bf16.mxu0 %v4282_v11  ;;  %v7937_v50 = vadd.f32 %v5405_v42, %v7866_v23  ;;  %v7956_v3 = vpop.permute.xlu0 %4313 }
 0x610   : > { %v7931_v7 = vadd.f32 %v5407_v26, %v7866_v23  ;;  %v5411_v36 = vadd.f32 %v5410_v57, %v4028_v14  ;;  %4376 = vmatprep.subr.bf16.mxu1 %v4284_v62  ;;  %4324 = vmatpush1.bf16.msra.mxu0 %v4281_v6  ;;  %v7934_v0 = vadd.f32 %v5377_v51, %v7915_v27  ;;  %v4265_v57 = vmax.f32 %v7925_v60, 0.0  ;;  %v7964_v40 = vpop.permute.xlu1 %4315 }
 0x611   : > { %4377 = vmatpush1.bf16.msra.mxu1 %v4283_v43  ;;  %v7940_v46 = vadd.f32 %v5379_v30, %v7915_v27  ;;  %v7943_v29 = vadd.f32 %v5409_v21, %v7915_v27  ;;  %v4266_v62 = vmax.f32 %v7928_v20, 0.0  ;;  %v4267_v21 = vmax.f32 %v7937_v50, 0.0 }
 0x612   : > { %v7946_v47 = vadd.f32 %v5411_v36, %v7915_v27  ;;  %v4273_v58 = vmax.f32 %v7934_v0, 0.0  ;;  %v4268_v37 = vmax.f32 %v7931_v7, 0.0  ;;  %v5428_v32 = vadd.f32 %v7846_v61, %v7647_v4 }
 0x613   : > { %v4274_v51 = vmax.f32 %v7940_v46, 0.0  ;;  %v4275_v18 = vmax.f32 %v7943_v29, 0.0  ;;  %v5460_v42 = vadd.f32 %v7846_v61, %v7652_v54  ;;  %v5430_v19 = vadd.f32 %v7846_v61, %v7655_v13 }
 0x614   : > { %v4276_v30 = vmax.f32 %v7946_v47, 0.0  ;;  %v4289_v55 = vpack.c.bf16 %v4273_v58, %v4265_v57  ;;  %v5462_v12 = vadd.f32 %v7846_v61, %v7658_v25  ;;  %v5432_v1 = vadd.f32 %v7844_v63, %v7661_v9 }
 0x615   : > { %v4290_v45 = vpack.c.bf16 %v4274_v51, %v4266_v62  ;;  %v4291_v56 = vpack.c.bf16 %v4275_v18, %v4267_v21  ;;  %v5464_v43 = vadd.f32 %v7844_v63, %v7666_v59  ;;  %v5434_v4 = vadd.f32 %v7844_v63, %v7669_v33 }
 0x616   : > { %v4292_v5 = vpack.c.bf16 %v4276_v30, %v4268_v37  ;;  %v5466_v54 = vadd.f32 %v7844_v63, %v7678_v10  ;;  %v5436_v25 = vadd.f32 %v7848_v8, %v7689_v17  ;;  %v5468_v9 = vadd.f32 %v7848_v8, %v7692_v52 }
 0x617   : > { %4325 = vmatprep.subr.bf16.mxu0 %v4290_v45  ;;  %v5438_v33 = vadd.f32 %v7848_v8, %v7695_v39  ;;  %v5470_v10 = vadd.f32 %v7848_v8, %v7698_v34  ;;  %v5440_v45 = vadd.f32 %v7850_v49, %v7701_v38 }
 0x618   : > { %4378 = vmatprep.subr.bf16.mxu1 %v4292_v5  ;;  %4326 = vmatpush1.bf16.msra.mxu0 %v4289_v55  ;;  %v5472_v5 = vadd.f32 %v7850_v49, %v7704_v22 }
 0x619   : > { %4379 = vmatpush1.bf16.msra.mxu1 %v4291_v56  ;;  %v5442_v56 = vadd.f32 %v7850_v49, %v7707_v35 }
 0x61b   : > { %5321 = vmatmul.mubr.msk.bf16.vlgmr.msra.gmra.mrb[88].mxu0 %vm2938_vm1, %v7956_v3 }
 0x61c   : > { %5323 = vmatmul.mubr.msk.bf16.vlgmr.msra.gmra.mrb[88].mxu1 %vm2938_vm1, %v7956_v3  ;;  %4365 = vmatprep.mubr.bf16.mxu0 %v8372_v48 }
 0x61d   : > { %4418 = vmatprep.mubr.bf16.mxu1 %v8372_v48 }
 0x623   : > { %5322 = vmatmul.mubr.msk.bf16.gmra.mrb[92].mxu0 %vm2938_vm1, %v7964_v40 }
 0x624   : > { %5324 = vmatmul.mubr.msk.bf16.gmra.mrb[92].mxu1 %vm2938_vm1, %v7964_v40  ;;  %4461 = vmatprep.mubr.bf16.mxu0 %v8372_v48 }
 0x625   : > { %4514 = vmatprep.mubr.bf16.mxu1 %v8372_v48 }
 0x643   : > { %v4065_v31 = vpop.f32.mrb[48].mxu0 }
 0x644   : > { %v5429_v11 = vadd.f32 %v5428_v32, %v4065_v31  ;;  %v4118_v6 = vpop.f32.mrb[48].mxu1  ;;  %v4067_v26 = vpop.f32.mrb[49].mxu0  ;;  %v5474_v32 = vadd.f32 %v7850_v49, %v7712_v24 }
 0x645   : > { %v5461_v14 = vadd.f32 %v5460_v42, %v4118_v6  ;;  %v5431_v13 = vadd.f32 %v5430_v19, %v4067_v26  ;;  %v4120_v36 = vpop.f32.mrb[49].mxu1  ;;  %v4069_v58 = vpop.f32.mrb[50].mxu0 }
 0x646   : > { %v5463_v61 = vadd.f32 %v5462_v12, %v4120_v36  ;;  %v5433_v62 = vadd.f32 %v5432_v1, %v4069_v58  ;;  %v4122_v51 = vpop.f32.mrb[50].mxu1  ;;  %v4071_v59 = vpop.f32.mrb[51].mxu0  ;;  %v7997_v63 = vadd.f32 %v5429_v11, %v7852_v16 }
 0x647   : > { %v8000_v18 = vadd.f32 %v5431_v13, %v7852_v16  ;;  %v5465_v17 = vadd.f32 %v5464_v43, %v4122_v51  ;;  %v5435_v57 = vadd.f32 %v5434_v4, %v4071_v59  ;;  %v4124_v37 = vpop.f32.mrb[51].mxu1  ;;  %v8003_v52 = vadd.f32 %v5461_v14, %v7852_v16 }
 0x648   : > { %v8006_v30 = vadd.f32 %v5463_v61, %v7852_v16  ;;  %v8009_v39 = vadd.f32 %v5433_v62, %v7856_v41  ;;  %v5467_v21 = vadd.f32 %v5466_v54, %v4124_v37  ;;  %v4253_v31 = vmax.f32 %v7997_v63, 0.0 }
 0x649   : > { %v8012_v34 = vadd.f32 %v5465_v17, %v7856_v41  ;;  %v8015_v8 = vadd.f32 %v5435_v57, %v7856_v41  ;;  %v4254_v42 = vmax.f32 %v8000_v18, 0.0  ;;  %v4255_v12 = vmax.f32 %v8003_v52, 0.0 }
 0x64a   : > { %v4261_v55 = vmax.f32 %v8009_v39, 0.0  ;;  %v8023_v16 = vadd.f32 %v5467_v21, %v7856_v41  ;;  %v4256_v41 = vmax.f32 %v8006_v30, 0.0 }
 0x64b   : > { %v4263_v38 = vmax.f32 %v8012_v34, 0.0  ;;  %v4262_v19 = vmax.f32 %v8015_v8, 0.0  ;;  %v4075_v22 = vpop.f32.mrb[52].mxu0 }
 0x64c   : > { %v4264_v1 = vmax.f32 %v8023_v16, 0.0  ;;  %v5437_v11 = vadd.f32 %v5436_v25, %v4075_v22  ;;  %v4128_v35 = vpop.f32.mrb[52].mxu1  ;;  %v4077_v6 = vpop.f32.mrb[53].mxu0  ;;  %v4285_v26 = vpack.c.bf16 %v4261_v55, %v4253_v31 }
 0x64d   : > { %v5469_v24 = vadd.f32 %v5468_v9, %v4128_v35  ;;  %v5439_v49 = vadd.f32 %v5438_v33, %v4077_v6  ;;  %v4130_v43 = vpop.f32.mrb[53].mxu1  ;;  %v4079_v4 = vpop.f32.mrb[54].mxu0  ;;  %v4286_v54 = vpack.c.bf16 %v4262_v19, %v4254_v42  ;;  %v4287_v14 = vpack.c.bf16 %v4263_v38, %v4255_v12 }
 0x64e   : > { %v5471_v13 = vadd.f32 %v5470_v10, %v4130_v43  ;;  %v5441_v36 = vadd.f32 %v5440_v45, %v4079_v4  ;;  %v4132_v58 = vpop.f32.mrb[54].mxu1  ;;  %v4081_v61 = vpop.f32.mrb[55].mxu0  ;;  %v4288_v62 = vpack.c.bf16 %v4264_v1, %v4256_v41  ;;  %v8037_v51 = vadd.f32 %v5437_v11, %v7866_v23 }
 0x64f   : > { %v8040_v59 = vadd.f32 %v5439_v49, %v7866_v23  ;;  %v5473_v25 = vadd.f32 %v5472_v5, %v4132_v58  ;;  %v5443_v17 = vadd.f32 %v5442_v56, %v4081_v61  ;;  %v4134_v57 = vpop.f32.mrb[55].mxu1  ;;  %4429 = vmatprep.subr.bf16.mxu0 %v4286_v54  ;;  %v8049_v37 = vadd.f32 %v5469_v24, %v7866_v23  ;;  %v8086_v35 = vpop.permute.xlu1 %4302 }
 0x650   : > { %v8043_v9 = vadd.f32 %v5471_v13, %v7866_v23  ;;  %v8046_v33 = vadd.f32 %v5441_v36, %v7915_v27  ;;  %v5475_v10 = vadd.f32 %v5474_v32, %v4134_v57  ;;  %4482 = vmatprep.subr.bf16.mxu1 %v4288_v62  ;;  %4430 = vmatpush1.bf16.msra.mxu0 %v4285_v26  ;;  %v4269_v23 = vmax.f32 %v8037_v51, 0.0 }
 0x651   : > { %v8052_v21 = vadd.f32 %v5473_v25, %v7915_v27  ;;  %v8055_v45 = vadd.f32 %v5443_v17, %v7915_v27  ;;  %4483 = vmatpush1.bf16.msra.mxu1 %v4287_v14  ;;  %v4270_v56 = vmax.f32 %v8040_v59, 0.0  ;;  %v4271_v19 = vmax.f32 %v8049_v37, 0.0 }
 0x652   : > { %v4277_v5 = vmax.f32 %v8046_v33, 0.0  ;;  %v8059_v55 = vadd.f32 %v5475_v10, %v7915_v27  ;;  %v4272_v42 = vmax.f32 %v8043_v9, 0.0  ;;  %v5798_v27 = vmov 11  }
 0x653   : > { %v4279_v32 = vmax.f32 %v8052_v21, 0.0  ;;  %v4278_v31 = vmax.f32 %v8055_v45, 0.0  ;;  %5652 = vset.pattern.permute.xlu1 %v5798_v27  ;;  %5653 = vset.pattern.permute.xlu0 %v5798_v27  ;;  %v8096_v10 = vpop.permute.xlu1 %4306 }
 0x654   : > { %v4280_v38 = vmax.f32 %v8059_v55, 0.0  ;;  %v4293_v12 = vpack.c.bf16 %v4277_v5, %v4269_v23  ;;  %4584 = vperm.xlu1 %5652, %v7825_v53   ;;  %4588 = vperm.xlu0 %5653, %v7819_v2  }
 0x655   : > { %v4294_v22 = vpack.c.bf16 %v4278_v31, %v4270_v56  ;;  %v4295_v1 = vpack.c.bf16 %v4279_v32, %v4271_v19 }
 0x656   : > { %v4296_v41 = vpack.c.bf16 %v4280_v38, %v4272_v42 }
 0x657   : > { %4431 = vmatprep.subr.bf16.mxu0 %v4294_v22 }
 0x658   : > { %4484 = vmatprep.subr.bf16.mxu1 %v4296_v41  ;;  %4432 = vmatpush1.bf16.msra.mxu0 %v4293_v12 }
 0x659   : > { %4485 = vmatpush1.bf16.msra.mxu1 %v4295_v1  ;;  %4592 = vperm.xlu1 %5652, %v7831_v15  }
 0x65b   : > { %5325 = vmatmul.mubr.msk.bf16.vlgmr.msra.gmra.mrb[96].mxu0 %vm2938_vm1, %v7956_v3 }
 0x65c   : > { %5327 = vmatmul.mubr.msk.bf16.vlgmr.msra.gmra.mrb[96].mxu1 %vm2938_vm1, %v7956_v3  ;;  %4471 = vmatprep.mubr.bf16.mxu0 %v8372_v48  ;;  %v8084_v3 = vpop.permute.xlu0 %4298 }
 0x65d   : > { %4524 = vmatprep.mubr.bf16.mxu1 %v8372_v48  ;;  %4596 = vperm.xlu1 %5652, %v7837_v28  }
 0x660   : > { %v8098_v42 = vpop.permute.xlu0 %4310 }
 0x663   : > { %5326 = vmatmul.mubr.msk.bf16.gmra.mrb[100].mxu0 %vm2938_vm1, %v7964_v40 }
 0x664   : > { %5328 = vmatmul.mubr.msk.bf16.gmra.mrb[100].mxu1 %vm2938_vm1, %v7964_v40  ;;  %4641 = vmatprep.mubr.bf16.mxu0 %v8372_v48 }
 0x665   : > { %4694 = vmatprep.mubr.bf16.mxu1 %v8372_v48 }
 0x6ee   : > { %v4357_v11 = vpop.f32.mrb[88].mxu0 }
 0x6ef   : > { %v4410_v40 = vpop.f32.mrb[88].mxu1  ;;  %v4359_v6 = vpop.f32.mrb[89].mxu0  ;;  %v4358_v26 = vadd.f32 %v4357_v11, %v8084_v3 }
 0x6f0   : > { %v4412_v24 = vpop.f32.mrb[89].mxu1  ;;  %v4361_v49 = vpop.f32.mrb[90].mxu0  ;;  %v4360_v43 = vadd.f32 %v4359_v6, %v8084_v3  ;;  %v4411_v53 = vadd.f32 %v4410_v40, %v8084_v3 }
 0x6f1   : > { %v4414_v2 = vpop.f32.mrb[90].mxu1  ;;  %v4363_v4 = vpop.f32.mrb[91].mxu0  ;;  %v4413_v15 = vadd.f32 %v4412_v24, %v8084_v3  ;;  %v4362_v28 = vadd.f32 %v4361_v49, %v8086_v35  ;;  %v4535_v54 = vmax.f32 %v4358_v26, 0.0 }
 0x6f2   : > { %v4364_v14 = vadd.f32 %v4363_v4, %v8086_v35  ;;  %v4536_v13 = vmax.f32 %v4360_v43, 0.0  ;;  %v4416_v36 = vpop.f32.mrb[91].mxu1  ;;  %v4415_v58 = vadd.f32 %v4414_v2, %v8086_v35  ;;  %v4537_v61 = vmax.f32 %v4411_v53, 0.0 }
 0x6f3   : > { %v4417_v62 = vadd.f32 %v4416_v36, %v8086_v35  ;;  %v4538_v25 = vmax.f32 %v4413_v15, 0.0  ;;  %v4543_v17 = vmax.f32 %v4362_v28, 0.0 }
 0x6f4   : > { %v4544_v57 = vmax.f32 %v4364_v14, 0.0  ;;  %v4545_v5 = vmax.f32 %v4415_v58, 0.0 }
 0x6f5   : > { %v4546_v56 = vmax.f32 %v4417_v62, 0.0  ;;  %v4567_v32 = vpack.c.bf16 %v4543_v17, %v4535_v54 }
 0x6f6   : > { %v4568_v31 = vpack.c.bf16 %v4544_v57, %v4536_v13  ;;  %v4367_v23 = vpop.f32.mrb[92].mxu0  ;;  %v4569_v38 = vpack.c.bf16 %v4545_v5, %v4537_v61  ;;  %v8108_v5 = vpop.permute.xlu1 %4599 }
 0x6f7   : > { %v4570_v19 = vpack.c.bf16 %v4546_v56, %v4538_v25  ;;  %v4420_v22 = vpop.f32.mrb[92].mxu1  ;;  %v4369_v12 = vpop.f32.mrb[93].mxu0  ;;  %v4368_v41 = vadd.f32 %v4367_v23, %v8096_v10 }
 0x6f8   : > { %v4422_v1 = vpop.f32.mrb[93].mxu1  ;;  %v4371_v27 = vpop.f32.mrb[94].mxu0  ;;  %v4370_v11 = vadd.f32 %v4369_v12, %v8096_v10  ;;  %4609 = vmatprep.subr.bf16.mxu0 %v4568_v31  ;;  %v4421_v40 = vadd.f32 %v4420_v22, %v8096_v10 }
 0x6f9   : > { %v4424_v6 = vpop.f32.mrb[94].mxu1  ;;  %v4373_v26 = vpop.f32.mrb[95].mxu0  ;;  %v4423_v24 = vadd.f32 %v4422_v1, %v8096_v10  ;;  %4662 = vmatprep.subr.bf16.mxu1 %v4570_v19  ;;  %4610 = vmatpush1.bf16.msra.mxu0 %v4567_v32  ;;  %v4372_v49 = vadd.f32 %v4371_v27, %v8098_v42  ;;  %v4551_v43 = vmax.f32 %v4368_v41, 0.0 }
 0x6fa   : > { %v4374_v53 = vadd.f32 %v4373_v26, %v8098_v42  ;;  %v4552_v2 = vmax.f32 %v4370_v11, 0.0  ;;  %v4426_v4 = vpop.f32.mrb[95].mxu1  ;;  %4663 = vmatpush1.bf16.msra.mxu1 %v4569_v38  ;;  %v4425_v15 = vadd.f32 %v4424_v6, %v8098_v42  ;;  %v4553_v28 = vmax.f32 %v4421_v40, 0.0  ;;  %v8116_v56 = vpop.permute.xlu0 %4601 }
 0x6fb   : > { %v4427_v54 = vadd.f32 %v4426_v4, %v8098_v42  ;;  %v4554_v14 = vmax.f32 %v4423_v24, 0.0  ;;  %v4559_v13 = vmax.f32 %v4372_v49, 0.0 }
 0x6fc   : > { %v4560_v36 = vmax.f32 %v4374_v53, 0.0  ;;  %v4561_v58 = vmax.f32 %v4425_v15, 0.0 }
 0x6fd   : > { %v4562_v61 = vmax.f32 %v4427_v54, 0.0  ;;  %v4575_v62 = vpack.c.bf16 %v4559_v13, %v4551_v43 }
 0x6fe   : > { %v4576_v25 = vpack.c.bf16 %v4560_v36, %v4552_v2  ;;  %v4577_v17 = vpack.c.bf16 %v4561_v58, %v4553_v28 }
 0x6ff   : > { %v4578_v57 = vpack.c.bf16 %v4562_v61, %v4554_v14 }
 0x700   : > { %4611 = vmatprep.subr.bf16.mxu0 %v4576_v25 }
 0x701   : > { %4664 = vmatprep.subr.bf16.mxu1 %v4578_v57  ;;  %4612 = vmatpush1.bf16.msra.mxu0 %v4575_v62 }
 0x702   : > { %4665 = vmatpush1.bf16.msra.mxu1 %v4577_v17 }
 0x704   : > { %5329 = vmatmul.mubr.msk.bf16.vlgmr.msra.gmra.mrb[104].mxu0 %vm2938_vm1, %v8108_v5 }
 0x705   : > { %5331 = vmatmul.mubr.msk.bf16.vlgmr.msra.gmra.mrb[104].mxu1 %vm2938_vm1, %v8108_v5  ;;  %4651 = vmatprep.mubr.bf16.mxu0 %v8372_v48 }
 0x706   : > { %4704 = vmatprep.mubr.bf16.mxu1 %v8372_v48 }
 0x70c   : > { %5330 = vmatmul.mubr.msk.bf16.gmra.mrb[108].mxu0 %vm2938_vm1, %v8116_v56 }
 0x70d   : > { %5332 = vmatmul.mubr.msk.bf16.gmra.mrb[108].mxu1 %vm2938_vm1, %v8116_v56  ;;  %4747 = vmatprep.mubr.bf16.mxu0 %v8372_v48 }
 0x70e   : > { %4800 = vmatprep.mubr.bf16.mxu1 %v8372_v48 }
 0x72e   : > { %v4463_v32 = vpop.f32.mrb[96].mxu0 }
 0x72f   : > { %v4464_v31 = vadd.f32 %v4463_v32, %v8084_v3  ;;  %v4516_v23 = vpop.f32.mrb[96].mxu1  ;;  %v4465_v38 = vpop.f32.mrb[97].mxu0 }
 0x730   : > { %v4517_v19 = vadd.f32 %v4516_v23, %v8084_v3  ;;  %v4466_v22 = vadd.f32 %v4465_v38, %v8084_v3  ;;  %v4518_v12 = vpop.f32.mrb[97].mxu1  ;;  %v4467_v41 = vpop.f32.mrb[98].mxu0 }
 0x731   : > { %v4519_v1 = vadd.f32 %v4518_v12, %v8084_v3  ;;  %v4468_v27 = vadd.f32 %v4467_v41, %v8086_v35  ;;  %v4520_v11 = vpop.f32.mrb[98].mxu1  ;;  %v4469_v40 = vpop.f32.mrb[99].mxu0  ;;  %v4539_v49 = vmax.f32 %v4464_v31, 0.0 }
 0x732   : > { %v4521_v6 = vadd.f32 %v4520_v11, %v8086_v35  ;;  %v4470_v26 = vadd.f32 %v4469_v40, %v8086_v35  ;;  %v4522_v24 = vpop.f32.mrb[99].mxu1  ;;  %v4541_v2 = vmax.f32 %v4517_v19, 0.0  ;;  %v4540_v4 = vmax.f32 %v4466_v22, 0.0 }
 0x733   : > { %v4547_v43 = vmax.f32 %v4468_v27, 0.0  ;;  %v4523_v53 = vadd.f32 %v4522_v24, %v8086_v35  ;;  %v4542_v54 = vmax.f32 %v4519_v1, 0.0 }
 0x734   : > { %v4549_v15 = vmax.f32 %v4521_v6, 0.0  ;;  %v4548_v28 = vmax.f32 %v4470_v26, 0.0 }
 0x735   : > { %v4571_v14 = vpack.c.bf16 %v4547_v43, %v4539_v49  ;;  %v4550_v3 = vmax.f32 %v4523_v53, 0.0 }
 0x736   : > { %v4573_v13 = vpack.c.bf16 %v4549_v15, %v4541_v2  ;;  %v4572_v36 = vpack.c.bf16 %v4548_v28, %v4540_v4  ;;  %v4473_v58 = vpop.f32.mrb[100].mxu0  ;;  %v5799_v28 = vmov 12  }
 0x737   : > { %v4574_v61 = vpack.c.bf16 %v4550_v3, %v4542_v54  ;;  %v4474_v62 = vadd.f32 %v4473_v58, %v8096_v10  ;;  %v4526_v25 = vpop.f32.mrb[100].mxu1  ;;  %v4475_v17 = vpop.f32.mrb[101].mxu0  ;;  %5654 = vset.pattern.permute.xlu0 %v5799_v28 }
 0x738   : > { %v4527_v57 = vadd.f32 %v4526_v25, %v8096_v10  ;;  %v4476_v32 = vadd.f32 %v4475_v17, %v8096_v10  ;;  %v4528_v35 = vpop.f32.mrb[101].mxu1  ;;  %v4477_v31 = vpop.f32.mrb[102].mxu0  ;;  %4715 = vmatprep.subr.bf16.mxu0 %v4572_v36 }
 0x739   : > { %v4529_v23 = vadd.f32 %v4528_v35, %v8096_v10  ;;  %v4478_v38 = vadd.f32 %v4477_v31, %v8098_v42  ;;  %v4530_v19 = vpop.f32.mrb[102].mxu1  ;;  %v4479_v22 = vpop.f32.mrb[103].mxu0  ;;  %4768 = vmatprep.subr.bf16.mxu1 %v4574_v61  ;;  %4716 = vmatpush1.bf16.msra.mxu0 %v4571_v14  ;;  %v4555_v27 = vmax.f32 %v4474_v62, 0.0 }
 0x73a   : > { %v4531_v12 = vadd.f32 %v4530_v19, %v8098_v42  ;;  %v4480_v41 = vadd.f32 %v4479_v22, %v8098_v42  ;;  %v4532_v1 = vpop.f32.mrb[103].mxu1  ;;  %4769 = vmatpush1.bf16.msra.mxu1 %v4573_v13  ;;  %v4557_v6 = vmax.f32 %v4527_v57, 0.0  ;;  %v4556_v26 = vmax.f32 %v4476_v32, 0.0  ;;  %v8157_v54 = vpop.permute.xlu0 %4588  ;;  %v8397_v19 = vld [vmem:[#allocation7_spill] sm:$0xff] }
 0x73b   : > { %v4563_v11 = vmax.f32 %v4478_v38, 0.0  ;;  %v4533_v40 = vadd.f32 %v4532_v1, %v8098_v42  ;;  %v4558_v49 = vmax.f32 %v4529_v23, 0.0  ;;  %v4853_v42 = vld [vmem:[%s8312_s5] sm:$0x1]  ;;  %v8396_v23 = vld [vmem:[#allocation10_spill] sm:$0xff] }
 0x73c   : > { %v4565_v24 = vmax.f32 %v4531_v12, 0.0  ;;  %v4564_v10 = vmax.f32 %v4480_v41, 0.0  ;;  %4905 = vperm.xlu0 %5654, %v4853_v42  }
 0x73d   : > { %v4579_v43 = vpack.c.bf16 %v4563_v11, %v4555_v27  ;;  %v4566_v53 = vmax.f32 %v4533_v40, 0.0  ;;  %v8398_v27 = vld [vmem:[#allocation8_spill] sm:$0xff]  ;;  %v8399_v40 = vld [vmem:[#allocation9_spill] sm:$0xff] }
 0x73e   : > { %v4581_v2 = vpack.c.bf16 %v4565_v24, %v4557_v6  ;;  %v4580_v4 = vpack.c.bf16 %v4564_v10, %v4556_v26  ;;  %v8400_v26 = vld [vmem:[#allocation6_spill] sm:$0xff]  ;;  %v8401_v10 = vld [vmem:[#allocation11_spill] sm:$0xff] }
 0x73f   : > { %v4582_v15 = vpack.c.bf16 %v4566_v53, %v4558_v49 }
 0x740   : > { %4717 = vmatprep.subr.bf16.mxu0 %v4580_v4 }
 0x741   : > { %4770 = vmatprep.subr.bf16.mxu1 %v4582_v15  ;;  %4718 = vmatpush1.bf16.msra.mxu0 %v4579_v43 }
 0x742   : > { %4771 = vmatpush1.bf16.msra.mxu1 %v4581_v2  ;;  %v8402_v2 = vld [vmem:[#allocation12_spill] sm:$0xff] }
 0x744   : > { %5333 = vmatmul.mubr.msk.bf16.vlgmr.msra.gmra.mrb[112].mxu0 %vm2938_vm1, %v8108_v5 }
 0x745   : > { %5335 = vmatmul.mubr.msk.bf16.vlgmr.msra.gmra.mrb[112].mxu1 %vm2938_vm1, %v8108_v5  ;;  %4757 = vmatprep.mubr.bf16.mxu0 %v8372_v48  ;;  %v8155_v5 = vpop.permute.xlu1 %4584 }
 0x746   : > { %4810 = vmatprep.mubr.bf16.mxu1 %v8372_v48 }
 0x749   : > { %v8159_v3 = vpop.permute.xlu1 %4592 }
 0x74c   : > { %5334 = vmatmul.mubr.msk.bf16.gmra.mrb[116].mxu0 %vm2938_vm1, %v8116_v56 }
 0x74d   : > { %5336 = vmatmul.mubr.msk.bf16.gmra.mrb[116].mxu1 %vm2938_vm1, %v8116_v56  ;;  %4943 = vmatprep.mubr.bf16.mxu0 %v8372_v48 }
 0x74e   : > { %4984 = vmatprep.mubr.bf16.mxu1 %v8372_v48 }
 0x7d7   : > { %v4643_v14 = vpop.f32.mrb[104].mxu0 }
 0x7d8   : > { %v4644_v56 = vadd.f32 %v4643_v14, %v8155_v5  ;;  %v4696_v13 = vpop.f32.mrb[104].mxu1  ;;  %v4645_v36 = vpop.f32.mrb[105].mxu0 }
 0x7d9   : > { %v4697_v58 = vadd.f32 %v4696_v13, %v8155_v5  ;;  %v4646_v61 = vadd.f32 %v4645_v36, %v8155_v5  ;;  %v4698_v62 = vpop.f32.mrb[105].mxu1  ;;  %v4647_v25 = vpop.f32.mrb[106].mxu0 }
 0x7da   : > { %v4821_v17 = vadd.f32 %v4644_v56, %v7886_v44  ;;  %v4699_v57 = vadd.f32 %v4698_v62, %v8155_v5  ;;  %v4648_v32 = vadd.f32 %v4647_v25, %v8157_v54  ;;  %v4700_v35 = vpop.f32.mrb[106].mxu1  ;;  %v4649_v31 = vpop.f32.mrb[107].mxu0 }
 0x7db   : > { %v4823_v38 = vadd.f32 %v4697_v58, %v8396_v23  ;;  %v4822_v22 = vadd.f32 %v4646_v61, %v8397_v19  ;;  %v4701_v12 = vadd.f32 %v4700_v35, %v8157_v54  ;;  %v4650_v41 = vadd.f32 %v4649_v31, %v8157_v54  ;;  %v4702_v1 = vpop.f32.mrb[107].mxu1  ;;  %v8177_v13 = vpop.permute.xlu1 %4596 }
 0x7dc   : > { %v4824_v11 = vadd.f32 %v4699_v57, %v8398_v27  ;;  %v4829_v6 = vadd.f32 %v4648_v32, %v8399_v40  ;;  %v4703_v44 = vadd.f32 %v4702_v1, %v8157_v54  ;;  %v4855_v43 = vmax.f32 %v4821_v17, 0.0 }
 0x7dd   : > { %v4831_v24 = vadd.f32 %v4701_v12, %v8400_v26  ;;  %v4830_v49 = vadd.f32 %v4650_v41, %v8401_v10  ;;  %v4857_v15 = vmax.f32 %v4823_v38, 0.0  ;;  %v4856_v42 = vmax.f32 %v4822_v22, 0.0 }
 0x7de   : > { %v4863_v53 = vmax.f32 %v4829_v6, 0.0  ;;  %v4832_v4 = vadd.f32 %v4703_v44, %v8402_v2  ;;  %v4858_v36 = vmax.f32 %v4824_v11, 0.0 }
 0x7df   : > { %v4865_v28 = vmax.f32 %v4831_v24, 0.0  ;;  %v4864_v14 = vmax.f32 %v4830_v49, 0.0  ;;  %v4653_v56 = vpop.f32.mrb[108].mxu0 }
 0x7e0   : > { %v4887_v58 = vpack.c.bf16 %v4863_v53, %v4855_v43  ;;  %v4866_v61 = vmax.f32 %v4832_v4, 0.0  ;;  %v4654_v62 = vadd.f32 %v4653_v56, %v8159_v3  ;;  %v4706_v25 = vpop.f32.mrb[108].mxu1  ;;  %v4655_v57 = vpop.f32.mrb[109].mxu0 }
 0x7e1   : > { %v4889_v32 = vpack.c.bf16 %v4865_v28, %v4857_v15  ;;  %v4707_v17 = vadd.f32 %v4706_v25, %v8159_v3  ;;  %v4656_v35 = vadd.f32 %v4655_v57, %v8159_v3  ;;  %v4708_v31 = vpop.f32.mrb[109].mxu1  ;;  %v4657_v23 = vpop.f32.mrb[110].mxu0  ;;  %v4888_v38 = vpack.c.bf16 %v4864_v14, %v4856_v42 }
 0x7e2   : > { %v4837_v19 = vadd.f32 %v4654_v62, %v7925_v60  ;;  %v4709_v22 = vadd.f32 %v4708_v31, %v8159_v3  ;;  %v4658_v12 = vadd.f32 %v4657_v23, %v8177_v13  ;;  %v4710_v41 = vpop.f32.mrb[110].mxu1  ;;  %v4659_v1 = vpop.f32.mrb[111].mxu0  ;;  %v4890_v27 = vpack.c.bf16 %v4866_v61, %v4858_v36 }
 0x7e3   : > { %v4839_v11 = vadd.f32 %v4707_v17, %v7937_v50  ;;  %v4838_v40 = vadd.f32 %v4656_v35, %v7928_v20  ;;  %v4711_v6 = vadd.f32 %v4710_v41, %v8177_v13  ;;  %v4660_v44 = vadd.f32 %v4659_v1, %v8177_v13  ;;  %v4712_v26 = vpop.f32.mrb[111].mxu1  ;;  %4911 = vmatprep.subr.bf16.mxu0 %v4888_v38 }
 0x7e4   : > { %v4840_v24 = vadd.f32 %v4709_v22, %v7931_v7  ;;  %v4845_v60 = vadd.f32 %v4658_v12, %v7934_v0  ;;  %v4713_v10 = vadd.f32 %v4712_v26, %v8177_v13  ;;  %4952 = vmatprep.subr.bf16.mxu1 %v4890_v27  ;;  %4912 = vmatpush1.bf16.msra.mxu0 %v4887_v58  ;;  %v4871_v20 = vmax.f32 %v4837_v19, 0.0 }
 0x7e5   : > { %v4847_v49 = vadd.f32 %v4711_v6, %v7943_v29  ;;  %v4846_v50 = vadd.f32 %v4660_v44, %v7940_v46  ;;  %4953 = vmatpush1.bf16.msra.mxu1 %v4889_v32  ;;  %v4873_v2 = vmax.f32 %v4839_v11, 0.0  ;;  %v4872_v4 = vmax.f32 %v4838_v40, 0.0  ;;  %v8198_v46 = vld [vmem:[%s8311_s4] sm:$0x1] }
 0x7e6   : > { %v4879_v43 = vmax.f32 %v4845_v60, 0.0  ;;  %v4848_v53 = vadd.f32 %v4713_v10, %v7946_v47  ;;  %v4874_v7 = vmax.f32 %v4840_v24, 0.0 }
 0x7e7   : > { %v4881_v15 = vmax.f32 %v4847_v49, 0.0  ;;  %v4880_v42 = vmax.f32 %v4846_v50, 0.0 }
 0x7e8   : > { %v4895_v28 = vpack.c.bf16 %v4879_v43, %v4871_v20  ;;  %v4882_v0 = vmax.f32 %v4848_v53, 0.0 }
 0x7e9   : > { %v4897_v14 = vpack.c.bf16 %v4881_v15, %v4873_v2  ;;  %v4896_v56 = vpack.c.bf16 %v4880_v42, %v4872_v4 }
 0x7ea   : > { %v4898_v36 = vpack.c.bf16 %v4882_v0, %v4874_v7 }
 0x7eb   : > { %4913 = vmatprep.subr.bf16.mxu0 %v4896_v56 }
 0x7ec   : > { %4954 = vmatprep.subr.bf16.mxu1 %v4898_v36  ;;  %4914 = vmatpush1.bf16.msra.mxu0 %v4895_v28 }
 0x7ed   : > { %4955 = vmatpush1.bf16.msra.mxu1 %v4897_v14 }
 0x7ef   : > { %5337 = vmatmul.mubr.msk.bf16.vlgmr.msra.gmra.mrb[120].mxu0 %vm2938_vm1, %v8198_v46 }
 0x7f0   : > { %5338 = vmatmul.mubr.msk.bf16.vlgmr.msra.gmra.mrb[120].mxu1 %vm2938_vm1, %v8198_v46  ;;  %5025 = vmatprep.mubr.bf16.mxu0 %v8372_v48 }
 0x7f1   : > { %5066 = vmatprep.mubr.bf16.mxu1 %v8372_v48 }
 0x817   : > { %v4749_v29 = vpop.f32.mrb[112].mxu0 }
 0x818   : > { %v4750_v47 = vadd.f32 %v4749_v29, %v8155_v5  ;;  %v4802_v58 = vpop.f32.mrb[112].mxu1  ;;  %v4751_v61 = vpop.f32.mrb[113].mxu0 }
 0x819   : > { %v4803_v62 = vadd.f32 %v4802_v58, %v8155_v5  ;;  %v4752_v25 = vadd.f32 %v4751_v61, %v8155_v5  ;;  %v4804_v57 = vpop.f32.mrb[113].mxu1  ;;  %v4753_v32 = vpop.f32.mrb[114].mxu0 }
 0x81a   : > { %v4825_v17 = vadd.f32 %v4750_v47, %v7997_v63  ;;  %v4805_v35 = vadd.f32 %v4804_v57, %v8155_v5  ;;  %v4754_v31 = vadd.f32 %v4753_v32, %v8157_v54  ;;  %v4806_v23 = vpop.f32.mrb[114].mxu1  ;;  %v4755_v38 = vpop.f32.mrb[115].mxu0 }
 0x81b   : > { %v4827_v48 = vadd.f32 %v4803_v62, %v8003_v52  ;;  %v4826_v19 = vadd.f32 %v4752_v25, %v8000_v18  ;;  %v4807_v22 = vadd.f32 %v4806_v23, %v8157_v54  ;;  %v4756_v12 = vadd.f32 %v4755_v38, %v8157_v54  ;;  %v4808_v41 = vpop.f32.mrb[115].mxu1 }
 0x81c   : > { %v4828_v1 = vadd.f32 %v4805_v35, %v8006_v30  ;;  %v4833_v27 = vadd.f32 %v4754_v31, %v8009_v39  ;;  %v4809_v63 = vadd.f32 %v4808_v41, %v8157_v54  ;;  %v4859_v40 = vmax.f32 %v4825_v17, 0.0 }
 0x81d   : > { %v4835_v5 = vadd.f32 %v4807_v22, %v8012_v34  ;;  %v4834_v11 = vadd.f32 %v4756_v12, %v8015_v8  ;;  %v4861_v18 = vmax.f32 %v4827_v48, 0.0  ;;  %v4860_v44 = vmax.f32 %v4826_v19, 0.0 }
 0x81e   : > { %v4867_v6 = vmax.f32 %v4833_v27, 0.0  ;;  %v4836_v52 = vadd.f32 %v4809_v63, %v8023_v16  ;;  %v4862_v10 = vmax.f32 %v4828_v1, 0.0 }
 0x81f   : > { %v4869_v26 = vmax.f32 %v4835_v5, 0.0  ;;  %v4868_v24 = vmax.f32 %v4834_v11, 0.0  ;;  %v4759_v60 = vpop.f32.mrb[116].mxu0 }
 0x820   : > { %v4891_v49 = vpack.c.bf16 %v4867_v6, %v4859_v40  ;;  %v4870_v30 = vmax.f32 %v4836_v52, 0.0  ;;  %v4760_v39 = vadd.f32 %v4759_v60, %v8159_v3  ;;  %v4812_v50 = vpop.f32.mrb[116].mxu1  ;;  %v4761_v54 = vpop.f32.mrb[117].mxu0  ;;  %v8403_v6 = vld [vmem:[#allocation5_spill] sm:$0xff] }
 0x821   : > { %v4893_v20 = vpack.c.bf16 %v4869_v26, %v4861_v18  ;;  %v4813_v34 = vadd.f32 %v4812_v50, %v8159_v3  ;;  %v4762_v8 = vadd.f32 %v4761_v54, %v8159_v3  ;;  %v4814_v43 = vpop.f32.mrb[117].mxu1  ;;  %v4763_v53 = vpop.f32.mrb[118].mxu0  ;;  %v4892_v16 = vpack.c.bf16 %v4868_v24, %v4860_v44 }
 0x822   : > { %v4841_v2 = vadd.f32 %v4760_v39, %v8037_v51  ;;  %v4815_v4 = vadd.f32 %v4814_v43, %v8159_v3  ;;  %v4764_v15 = vadd.f32 %v4763_v53, %v8177_v13  ;;  %v4816_v42 = vpop.f32.mrb[118].mxu1  ;;  %v4765_v7 = vpop.f32.mrb[119].mxu0  ;;  %v4894_v28 = vpack.c.bf16 %v4870_v30, %v4862_v10 }
 0x823   : > { %v4843_v0 = vadd.f32 %v4813_v34, %v8049_v37  ;;  %v4842_v14 = vadd.f32 %v4762_v8, %v8040_v59  ;;  %v4817_v56 = vadd.f32 %v4816_v42, %v8177_v13  ;;  %v4766_v36 = vadd.f32 %v4765_v7, %v8177_v13  ;;  %v4818_v29 = vpop.f32.mrb[119].mxu1  ;;  %4993 = vmatprep.subr.bf16.mxu0 %v4892_v16 }
 0x824   : > { %v4844_v47 = vadd.f32 %v4815_v4, %v8043_v9  ;;  %v4849_v51 = vadd.f32 %v4764_v15, %v8046_v33  ;;  %v4819_v3 = vadd.f32 %v4818_v29, %v8177_v13  ;;  %5034 = vmatprep.subr.bf16.mxu1 %v4894_v28  ;;  %4994 = vmatpush1.bf16.msra.mxu0 %v4891_v49  ;;  %v4875_v59 = vmax.f32 %v4841_v2, 0.0 }
 0x825   : > { %v4851_v58 = vadd.f32 %v4817_v56, %v8052_v21  ;;  %v4850_v37 = vadd.f32 %v4766_v36, %v8055_v45  ;;  %5035 = vmatpush1.bf16.msra.mxu1 %v4893_v20  ;;  %v4877_v25 = vmax.f32 %v4843_v0, 0.0  ;;  %v4876_v57 = vmax.f32 %v4842_v14, 0.0  ;;  %v4906_v21 = vpop.permute.xlu0 %4905 }
 0x826   : > { %v4883_v61 = vmax.f32 %v4849_v51, 0.0  ;;  %v4852_v62 = vadd.f32 %v4819_v3, %v8059_v55  ;;  %v4878_v9 = vmax.f32 %v4844_v47, 0.0 }
 0x827   : > { %v4885_v32 = vmax.f32 %v4851_v58, 0.0  ;;  %v4884_v17 = vmax.f32 %v4850_v37, 0.0 }
 0x828   : > { %v4899_v35 = vpack.c.bf16 %v4883_v61, %v4875_v59  ;;  %v4886_v33 = vmax.f32 %v4852_v62, 0.0 }
 0x829   : > { %v4901_v31 = vpack.c.bf16 %v4885_v32, %v4877_v25  ;;  %v4900_v13 = vpack.c.bf16 %v4884_v17, %v4876_v57 }
 0x82a   : > { %v4902_v23 = vpack.c.bf16 %v4886_v33, %v4878_v9 }
 0x82b   : > { %4995 = vmatprep.subr.bf16.mxu0 %v4900_v13 }
 0x82c   : > { %5036 = vmatprep.subr.bf16.mxu1 %v4902_v23  ;;  %4996 = vmatpush1.bf16.msra.mxu0 %v4899_v35 }
 0x82d   : > { %5037 = vmatpush1.bf16.msra.mxu1 %v4901_v31 }
 0x82f   : > { %5339 = vmatmul.mubr.msk.bf16.vlgmr.msra.gmra.mrb[124].mxu0 %vm2938_vm1, %v8198_v46 }
 0x830   : > { %5340 = vmatmul.mubr.msk.bf16.vlgmr.msra.gmra.mrb[124].mxu1 %vm2938_vm1, %v8198_v46 }
 0x8c2   : > { %v4945_v45 = vpop.f32.mrb[120].mxu0 }
 0x8c3   : > { %v4986_v55 = vpop.f32.mrb[120].mxu1  ;;  %v4947_v38 = vpop.f32.mrb[121].mxu0  ;;  %v4946_v48 = vadd.f32 %v4945_v45, %v4906_v21 }
 0x8c4   : > { %v4988_v19 = vpop.f32.mrb[121].mxu1  ;;  %v4949_v22 = vpop.f32.mrb[122].mxu0  ;;  %v4948_v12 = vadd.f32 %v4947_v38, %v4906_v21  ;;  %v4987_v41 = vadd.f32 %v4986_v55, %v4906_v21 }
 0x8c5   : > { %v4990_v1 = vpop.f32.mrb[122].mxu1  ;;  %v4950_v27 = vpop.f32.mrb[123].mxu0  ;;  %v4989_v63 = vadd.f32 %v4988_v19, %v4906_v21 }
 0x8c6   : > { %v4991_v5 = vpop.f32.mrb[123].mxu1  ;;  %v5083_v11 = vcombine.low %v4946_v48, %v4948_v12 }
 0x8c7   : > { %v5084_v40 = vcombine.low %v4987_v41, %v4989_v63 }
 0x8c8   : > { %v5093_v52 = vrot.slane %v5083_v11, %v8403_v6 }
 0x8c9   : > { %v5100_v46 = vrot.slane %v5084_v40, %v8403_v6 }
 0x8cb   : > { %v5115_v18 = vcombine.low %v5093_v52, %v5100_v46 }
 0x8cd   : > { %v5123_v4 = vrot.slane %v5115_v18, %v8403_v6 }
 0x902   : > { %v5027_v44 = vpop.f32.mrb[124].mxu0 }
 0x903   : > { %v5068_v26 = vpop.f32.mrb[124].mxu1  ;;  %v5028_v24 = vadd.f32 %v5027_v44, %v4906_v21  ;;  %v5029_v60 = vpop.f32.mrb[125].mxu0 }
 0x904   : > { %v5030_v10 = vadd.f32 %v5029_v60, %v4906_v21  ;;  %v5069_v49 = vadd.f32 %v5068_v26, %v4906_v21  ;;  %v5070_v30 = vpop.f32.mrb[125].mxu1  ;;  %v5031_v39 = vpop.f32.mrb[126].mxu0 }
 0x905   : > { %v5071_v50 = vadd.f32 %v5070_v30, %v4906_v21  ;;  %v5072_v54 = vpop.f32.mrb[126].mxu1  ;;  %v5032_v20 = vpop.f32.mrb[127].mxu0 }
 0x906   : > { %v5085_v34 = vcombine.low %v5028_v24, %v5030_v10  ;;  %v5073_v8 = vpop.f32.mrb[127].mxu1 }
 0x907   : > { %v5086_v43 = vcombine.low %v5069_v49, %v5071_v50 }
 0x908   : > { %v5107_v53 = vrot.slane %v5085_v34, %v8403_v6 }
 0x909   : > { %v5114_v16 = vrot.slane %v5086_v43, %v8403_v6 }
 0x90b   : > { %v5116_v2 = vcombine.low %v5107_v53, %v5114_v16 }
 0x90d   : > { %v5130_v15 = vrot.slane %v5116_v2, %v8403_v6 }
 0x90f   : > { %v5131_v42 = vcombine.low %v5123_v4, %v5130_v15 }
 0x911   : > { %5133 = vst [vmem:[%s284_s12] sm:$0xff] %v5131_v42 }
 0x912   : > { %5700 = shalt.err (!%p5697_p7)
}
 0x913   : > { %s5701_s20 = scalar_lea.hbm %s8254_s25, 128  ;;  %s5705_s12 = scalar_lea.hbm %s8313_s6, 512 }
 0x914   : > { %p5702_p9 = scmp.ne.s32.totalorder %s8254_s25, %s5701_s20  ;;  %p5706_p12 = scmp.lt.u32.totalorder %s8254_s25, %s8313_s6 }
 0x915   : > { %p5707_p13 = scmp.lt.u32.totalorder %s5705_s12, %s5701_s20  ;;  %p5709_p1 = scmp.lt.u32.totalorder %s5701_s20, %s8254_s25 }
 0x916   : > { %p5703_p10 = pnand %p5702_p9, %p5887_p3 }
 0x917   : > { %p5708_p0 = por %p5707_p13, %p5706_p12 }
 0x918   : > { %p5704_p11 = pneg %p5703_p10 }
 0x919   : > { %p5710_p2 = por %p5709_p1, %p5708_p0 }
 0x91b   : > { %p5711_p4 = pnand %p5710_p2, %p5704_p11 }
 0x91d   : > { %5714 = shalt.err (!%p5711_p4)
}
 0x91e   : > { %5540 = dma.vmem_to_hbm [thread:$0]  (%p5887_p3), %s8256_s14, 128, %s8254_s25, %s5135_s16  }
 0x91f PF: > { %p5546_p5 = scmp.ge.s32.totalorder %s5781_s28, 2  ;;  %s5163_s18 = sand.u32 1, %s5753_s21  }
 0x920   : > { %s5164_s19 = scalar_lea.sflag [#allocation3], %s5163_s18 }
 0x921   : > { %p5543_p6 = pnand %p5546_p5, %p5896_p8 }
 0x923   : > { %5748 = dma.done.wait (!%p5543_p6), %s5164_s19, 128  }
 0x924   : > { %5750 = vsyncadd (!%p5543_p6), %s5164_s19, 4294967168  ;;  %s19_s28 = sadd.s32 1, %s5781_s28   ;;  %s8404_s21 = smov %s5757_s22 }
 0x925   : > { %p16_p7 = scmp.ge.s32.totalorder %s19_s28, 6   ;;  %s8405_s22 = smov %s5761_s23 }
 0x926   : > { %s8406_s23 = smov %s5905_s15  ;;  %s8407_s24 = smov %s5773_s26 }
 0x927   : > { %s8408_s25 = smov %s5777_s27  ;;  %s8409_s26 = smov %s8412_s7 }
 0x928   : > { %s8410_s27 = smov %s8416_s8  ;;  %18 = sbr.rel (!%p16_p7) target bundleno = 5 (0x5), region = 82 }
 0x92f   :  { %5169 = vsyncpa [#allocation3], 1 }
 0x930   :  { %5171 = vsyncpa [#allocation3 + $0x1], 1 }

</bundles_post_ra>
